<compile_context>
chip_gen: v7x
topology: tpu7x:2x2x1
jax: 0.10.0
libtpu: 0.0.40
codegen_flags: <defaults>
</compile_context>

<pallas_src>
import numpy as np
import jax
import jax.numpy as jnp
from jax.experimental import pallas as pl
from jax.experimental.pallas import tpu as pltpu


# ------------------------------ padding helpers ----------------------------- #

def _round_up(x, m):
    return ((x + m - 1) // m) * m


def _pad_gate_cols(w_t, H, Hp):
    """(Din, 3H) -> (Din, 3Hp): gate g placed at columns [g*Hp, g*Hp+H)."""
    D = w_t.shape[0]
    out = jnp.zeros((D, 3 * Hp), w_t.dtype)
    for g in range(3):
        out = out.at[:, g * Hp:g * Hp + H].set(w_t[:, g * H:(g + 1) * H])
    return out


def _pad_gate_bias(b, H, Hp):
    """(3H,) -> (1, 3Hp): gate g placed at [g*Hp, g*Hp+H).  Pads stay exactly 0."""
    out = jnp.zeros((3 * Hp,), b.dtype)
    for g in range(3):
        out = out.at[g * Hp:g * Hp + H].set(b[g * H:(g + 1) * H])
    return out[None, :]


def _pad_rows(w, Rp):
    R = w.shape[0]
    if R == Rp:
        return w
    return jnp.zeros((Rp,) + w.shape[1:], w.dtype).at[:R].set(w)


# ------------------------------ fused Pallas kernel -------------------------- #

def make_fused_gru_kernel(num_layers, T, Bp, Hp):
    f32, bf16 = jnp.float32, jnp.bfloat16

    def kernel(*refs):
        x_ref = refs[0]                                   # (T*Bp, 1)   f32
        layer_refs = refs[1:1 + 4 * num_layers]           # per layer: w_ih_t, w_hh_t, b_ih, b_hh
        h0_ref = refs[1 + 4 * num_layers]                 # (L, Bp, Hp) f32
        lin_w_ref = refs[2 + 4 * num_layers]              # (Hp, Op)    bf16
        lin_b_ref = refs[3 + 4 * num_layers]              # (1, Op)     f32
        out_ref = refs[4 + 4 * num_layers]                # (Bp, Op)    f32
        gi_scr = refs[5 + 4 * num_layers]                 # (T*Bp, 3Hp) f32 scratch
        y_scr = refs[6 + 4 * num_layers]                  # (T*Bp, Hp)  f32 scratch

        h_last = None
        for l in range(num_layers):
            w_ih_ref = layer_refs[4 * l + 0]
            w_hh_ref = layer_refs[4 * l + 1]
            b_i = layer_refs[4 * l + 2][...]              # (1, 3Hp) f32
            b_h = layer_refs[4 * l + 3][...]              # (1, 3Hp) f32

            # ---- input projection: hoisted off the serial critical path -----
            if l == 0:
                # D_in == 1: one fused VPU broadcast-multiply for all T steps.
                gi_scr[...] = x_ref[...] * w_ih_ref[...] + b_i
            else:
                # One (T*Bp, Hp) x (Hp, 3Hp) MXU GEMM straight from the layer
                # output scratch (no concatenate between layers).
                gi_scr[...] = jnp.dot(y_scr[...].astype(bf16), w_ih_ref[...],
                                      preferred_element_type=f32) + b_i

            # ---- serial recurrence: unrolled, h is a single f32 vreg ---------
            # TODO(synk): weight-stationary MXU driving (pltpu.matmul_push_rhs /
            # matmul_acc_lhs / matmul_pop) would avoid re-pushing the loop-
            # invariant (Hp,3Hp) RHS every timestep; the RHS is hoisted here and
            # left to Mosaic's scheduler for portability across v5e/v6e/v7x.
            w_hh = w_hh_ref[...]                          # (Hp, 3Hp) bf16, loop-invariant
            h = h0_ref[l]                                 # (Bp, Hp)  f32
            last = (l == num_layers - 1)
            for t in range(T):
                gi = gi_scr[t * Bp:(t + 1) * Bp, :]       # (Bp, 3Hp) static, aligned slice
                gh = jnp.dot(h.astype(bf16), w_hh,
                             preferred_element_type=f32) + b_h
                r = jax.nn.sigmoid(gi[:, 0:Hp] + gh[:, 0:Hp])
                z = jax.nn.sigmoid(gi[:, Hp:2 * Hp] + gh[:, Hp:2 * Hp])
                n = jnp.tanh(gi[:, 2 * Hp:3 * Hp] + r * gh[:, 2 * Hp:3 * Hp])
                h = (1.0 - z) * n + z * h
                if not last:
                    # Off the recurrence's data dependency; overlaps next matmul.
                    y_scr[t * Bp:(t + 1) * Bp, :] = h
            h_last = h

        # ---- linear head on the last hidden state of the top layer ----------
        out_ref[...] = (jnp.dot(h_last.astype(bf16), lin_w_ref[...],
                                preferred_element_type=f32) + lin_b_ref[...])

    return kernel


# --------------------------------- wrapper ----------------------------------- #

def gru_forward(input_seq, gru_params, lin_w, lin_b, h0):
    """input_seq: (B, T, 1) batch-first (PyTorch layout). Returns (B, output_size)."""
    B, T, D_in = input_seq.shape
    num_layers = len(gru_params)
    H = gru_params[0][1].shape[1]            # w_hh: (3H, H)
    O = lin_w.shape[0]

    Hp = _round_up(H, 128)                   # lane-dense hidden/gate blocks (do NOT pad to 256)
    Op = _round_up(O, 128)                   # lane-dense output store
    Bp = _round_up(max(B, 8), 8)             # sublane-dense batch

    f32, bf16 = jnp.float32, jnp.bfloat16

    # time-major, batch-padded, flattened to (T*Bp, 1)
    x_tbd = jnp.transpose(input_seq.astype(f32), (1, 0, 2))           # (T, B, 1)
    x_pad = jnp.zeros((T, Bp, D_in), f32).at[:, :B, :].set(x_tbd)
    x_flat = x_pad.reshape(T * Bp, D_in)

    inputs = [x_flat]
    for l, (w_ih, w_hh, b_ih, b_hh) in enumerate(gru_params):
        w_ih_t = _pad_gate_cols(w_ih.T.astype(f32), H, Hp)            # (Din, 3Hp)
        if l > 0:
            w_ih_t = _pad_rows(w_ih_t, Hp).astype(bf16)               # MXU path
        w_hh_t = _pad_rows(_pad_gate_cols(w_hh.T.astype(f32), H, Hp), Hp).astype(bf16)
        inputs += [w_ih_t, w_hh_t,
                   _pad_gate_bias(b_ih.astype(f32), H, Hp),
                   _pad_gate_bias(b_hh.astype(f32), H, Hp)]

    h0_pad = jnp.zeros((num_layers, Bp, Hp), f32).at[:, :B, :H].set(h0.astype(f32))
    lin_w_t = jnp.zeros((Hp, Op), f32).at[:H, :O].set(lin_w.T.astype(f32)).astype(bf16)
    lin_b_pad = jnp.zeros((1, Op), f32).at[0, :O].set(lin_b.astype(f32))
    inputs += [h0_pad, lin_w_t, lin_b_pad]

    vmem_spec = pl.BlockSpec(memory_space=pltpu.MemorySpace.VMEM)
    out_pad = pl.pallas_call(
        make_fused_gru_kernel(num_layers, T, Bp, Hp),
        out_shape=jax.ShapeDtypeStruct((Bp, Op), f32),
        in_specs=[vmem_spec] * len(inputs),
        out_specs=vmem_spec,
        scratch_shapes=[pltpu.VMEM((T * Bp, 3 * Hp), f32),   # gi staging
                        pltpu.VMEM((T * Bp, Hp), f32)],      # layer-output staging
    )(*inputs)
    return out_pad[:B, :O]


# --------------------------- pure-numpy reference ---------------------------- #

def gru_ref(input_seq, gru_params, lin_w, lin_b, h0):
    x = np.asarray(input_seq, dtype=np.float32)
    B, T, _ = x.shape
    layer_in = x
    for l, (w_ih, w_hh, b_ih, b_hh) in enumerate(gru_params):
        w_ih, w_hh = np.asarray(w_ih), np.asarray(w_hh)
        b_ih, b_hh = np.asarray(b_ih), np.asarray(b_hh)
        H = w_hh.shape[1]
        h = np.asarray(h0[l])
        ys = []
        for t in range(T):
            gi = layer_in[:, t, :] @ w_ih.T + b_ih
            gh = h @ w_hh.T + b_hh
            r = 1.0 / (1.0 + np.exp(-(gi[:, :H] + gh[:, :H])))
            z = 1.0 / (1.0 + np.exp(-(gi[:, H:2 * H] + gh[:, H:2 * H])))
            n = np.tanh(gi[:, 2 * H:] + r * gh[:, 2 * H:])
            h = (1.0 - z) * n + z * h
            ys.append(h)
        layer_in = np.stack(ys, axis=1)
    return layer_in[:, -1, :] @ np.asarray(lin_w).T + np.asarray(lin_b)


# ------------------------------------ main ------------------------------------ #

if __name__ == "__main__":
    hidden_size, output_size, num_layers = 32, 4, 2
    input_size = 1
    B, T = 2, 8

    key = jax.random.PRNGKey(0)
    keys = jax.random.split(key, 4 * num_layers + 4)

    k = 1.0 / np.sqrt(hidden_size)
    gru_params = []
    for l in range(num_layers):
        d_in = input_size if l == 0 else hidden_size
        kw = keys[4 * l: 4 * l + 4]
        w_ih = jax.random.uniform(kw[0], (3 * hidden_size, d_in), jnp.float32, -k, k)
        w_hh = jax.random.uniform(kw[1], (3 * hidden_size, hidden_size), jnp.float32, -k, k)
        b_ih = jax.random.uniform(kw[2], (3 * hidden_size,), jnp.float32, -k, k)
        b_hh = jax.random.uniform(kw[3], (3 * hidden_size,), jnp.float32, -k, k)
        gru_params.append((w_ih, w_hh, b_ih, b_hh))

    lin_w = jax.random.uniform(keys[-4], (output_size, hidden_size), jnp.float32, -k, k)
    lin_b = jax.random.uniform(keys[-3], (output_size,), jnp.float32, -k, k)

    input_seq = jax.random.normal(keys[-2], (B, T, input_size), jnp.float32)
    # torch.randn h_0 in forward -> deterministic normal draw here
    h0 = jax.random.normal(keys[-1], (num_layers, B, hidden_size), jnp.float32)

    fwd = jax.jit(gru_forward)
    pred = fwd(input_seq, gru_params, lin_w, lin_b, h0)
    pred = jax.block_until_ready(pred)

    ref = gru_ref(input_seq, gru_params, lin_w, lin_b, h0)
    assert pred.shape == (B, output_size)
    np.testing.assert_allclose(np.asarray(pred), ref, rtol=1e-2, atol=1e-2)

    print("KERNEL_OK")
</pallas_src>

<mosaic_0001>
module attributes {stable_mosaic.version = 11 : i64} {
  func.func @kernel(%arg0: memref<64x1xf32, #tpu.memory_space<vmem>>, %arg1: memref<1x384xf32, #tpu.memory_space<vmem>>, %arg2: memref<128x384xbf16, #tpu.memory_space<vmem>>, %arg3: memref<1x384xf32, #tpu.memory_space<vmem>>, %arg4: memref<1x384xf32, #tpu.memory_space<vmem>>, %arg5: memref<128x384xbf16, #tpu.memory_space<vmem>>, %arg6: memref<128x384xbf16, #tpu.memory_space<vmem>>, %arg7: memref<1x384xf32, #tpu.memory_space<vmem>>, %arg8: memref<1x384xf32, #tpu.memory_space<vmem>>, %arg9: memref<2x8x128xf32, #tpu.memory_space<vmem>>, %arg10: memref<128x128xbf16, #tpu.memory_space<vmem>>, %arg11: memref<1x128xf32, #tpu.memory_space<vmem>>, %arg12: memref<8x128xf32, #tpu.memory_space<vmem>>, %arg13: memref<64x384xf32, #tpu.memory_space<vmem>>, %arg14: memref<64x128xf32, #tpu.memory_space<vmem>>) attributes {dimension_semantics = [], scalar_prefetch = 0 : i64, scratch_operands = 2 : i64, tpu.core_type = #tpu.core_type<tc>} {
    %c0 = arith.constant 0 : index
    %c0_0 = arith.constant 0 : index
    %0 = vector.load %arg3[%c0, %c0_0] : memref<1x384xf32, #tpu.memory_space<vmem>>, vector<1x384xf32>
    %c0_1 = arith.constant 0 : index
    %c0_2 = arith.constant 0 : index
    %1 = vector.load %arg4[%c0_1, %c0_2] : memref<1x384xf32, #tpu.memory_space<vmem>>, vector<1x384xf32>
    %c0_3 = arith.constant 0 : index
    %c0_4 = arith.constant 0 : index
    %2 = vector.load %arg0[%c0_3, %c0_4] : memref<64x1xf32, #tpu.memory_space<vmem>>, vector<64x1xf32>
    %c0_5 = arith.constant 0 : index
    %c0_6 = arith.constant 0 : index
    %3 = vector.load %arg1[%c0_5, %c0_6] : memref<1x384xf32, #tpu.memory_space<vmem>>, vector<1x384xf32>
    %4 = vector.broadcast %2 : vector<64x1xf32> to vector<64x384xf32>
    %5 = vector.broadcast %3 : vector<1x384xf32> to vector<64x384xf32>
    %6 = arith.mulf %4, %5 : vector<64x384xf32>
    %7 = vector.broadcast %0 : vector<1x384xf32> to vector<64x384xf32>
    %8 = arith.addf %6, %7 : vector<64x384xf32>
    %c0_7 = arith.constant 0 : index
    %c0_8 = arith.constant 0 : index
    %9 = vector.load %arg13[%c0_7, %c0_8] : memref<64x384xf32, #tpu.memory_space<vmem>>, vector<64x384xf32>
    tpu.vector_store %arg13[%c0_7, %c0_8], %8 {strides = array<i32>} : memref<64x384xf32, #tpu.memory_space<vmem>>, vector<64x384xf32>,
    %c0_9 = arith.constant 0 : index
    %c0_10 = arith.constant 0 : index
    %10 = vector.load %arg2[%c0_9, %c0_10] : memref<128x384xbf16, #tpu.memory_space<vmem>>, vector<128x384xbf16>
    %c0_11 = arith.constant 0 : index
    %c0_12 = arith.constant 0 : index
    %c0_13 = arith.constant 0 : index
    %11 = vector.load %arg9[%c0_11, %c0_12, %c0_13] : memref<2x8x128xf32, #tpu.memory_space<vmem>>, vector<1x8x128xf32>
    %12 = vector.shape_cast %11 : vector<1x8x128xf32> to vector<8x128xf32>
    %c0_14 = arith.constant 0 : index
    %c0_15 = arith.constant 0 : index
    %13 = vector.load %arg13[%c0_14, %c0_15] : memref<64x384xf32, #tpu.memory_space<vmem>>, vector<8x384xf32>
    %14 = arith.truncf %12 : vector<8x128xf32> to vector<8x128xbf16>
    %cst = arith.constant dense<0.000000e+00> : vector<8x384xf32>
    %15 = tpu.matmul %14, %10, %cst {dimension_numbers = #tpu.dot_dimension_numbers<[1], [0], [0], [1], [0, 0, 1, 1], [], []>} : vector<8x128xbf16>, vector<128x384xbf16>, vector<8x384xf32> -> vector<8x384xf32>
    %16 = vector.broadcast %1 : vector<1x384xf32> to vector<8x384xf32>
    %17 = arith.addf %15, %16 : vector<8x384xf32>
    %18 = vector.extract_strided_slice %13 {offsets = [0, 0], sizes = [8, 128], strides = [1, 1]} : vector<8x384xf32> to vector<8x128xf32>
    %19 = vector.extract_strided_slice %17 {offsets = [0, 0], sizes = [8, 128], strides = [1, 1]} : vector<8x384xf32> to vector<8x128xf32>
    %20 = arith.addf %18, %19 : vector<8x128xf32>
    %21 = arith.negf %20 : vector<8x128xf32>
    %22 = math.exp %21 : vector<8x128xf32>
    %cst_16 = arith.constant 1.000000e+00 : f32
    %23 = vector.broadcast %cst_16 : f32 to vector<8x128xf32>
    %24 = arith.addf %23, %22 : vector<8x128xf32>
    %25 = arith.divf %23, %24 : vector<8x128xf32>
    %26 = vector.extract_strided_slice %13 {offsets = [0, 128], sizes = [8, 128], strides = [1, 1]} : vector<8x384xf32> to vector<8x128xf32>
    %27 = vector.extract_strided_slice %17 {offsets = [0, 128], sizes = [8, 128], strides = [1, 1]} : vector<8x384xf32> to vector<8x128xf32>
    %28 = arith.addf %26, %27 : vector<8x128xf32>
    %29 = arith.negf %28 : vector<8x128xf32>
    %30 = math.exp %29 : vector<8x128xf32>
    %cst_17 = arith.constant 1.000000e+00 : f32
    %31 = vector.broadcast %cst_17 : f32 to vector<8x128xf32>
    %32 = arith.addf %31, %30 : vector<8x128xf32>
    %33 = arith.divf %31, %32 : vector<8x128xf32>
    %34 = vector.extract_strided_slice %13 {offsets = [0, 256], sizes = [8, 128], strides = [1, 1]} : vector<8x384xf32> to vector<8x128xf32>
    %35 = vector.extract_strided_slice %17 {offsets = [0, 256], sizes = [8, 128], strides = [1, 1]} : vector<8x384xf32> to vector<8x128xf32>
    %36 = arith.mulf %25, %35 : vector<8x128xf32>
    %37 = arith.addf %34, %36 : vector<8x128xf32>
    %38 = math.tanh %37 : vector<8x128xf32>
    %cst_18 = arith.constant 1.000000e+00 : f32
    %39 = vector.broadcast %cst_18 : f32 to vector<8x128xf32>
    %40 = arith.subf %39, %33 : vector<8x128xf32>
    %41 = arith.mulf %40, %38 : vector<8x128xf32>
    %42 = arith.mulf %33, %12 : vector<8x128xf32>
    %43 = arith.addf %41, %42 : vector<8x128xf32>
    %c0_19 = arith.constant 0 : index
    %c0_20 = arith.constant 0 : index
    %44 = vector.load %arg14[%c0_19, %c0_20] : memref<64x128xf32, #tpu.memory_space<vmem>>, vector<8x128xf32>
    tpu.vector_store %arg14[%c0_19, %c0_20], %43 {strides = array<i32>} : memref<64x128xf32, #tpu.memory_space<vmem>>, vector<8x128xf32>,
    %c8 = arith.constant 8 : index
    %c0_21 = arith.constant 0 : index
    %45 = vector.load %arg13[%c8, %c0_21] : memref<64x384xf32, #tpu.memory_space<vmem>>, vector<8x384xf32>
    %46 = arith.truncf %43 : vector<8x128xf32> to vector<8x128xbf16>
    %cst_22 = arith.constant dense<0.000000e+00> : vector<8x384xf32>
    %47 = tpu.matmul %46, %10, %cst_22 {dimension_numbers = #tpu.dot_dimension_numbers<[1], [0], [0], [1], [0, 0, 1, 1], [], []>} : vector<8x128xbf16>, vector<128x384xbf16>, vector<8x384xf32> -> vector<8x384xf32>
    %48 = vector.broadcast %1 : vector<1x384xf32> to vector<8x384xf32>
    %49 = arith.addf %47, %48 : vector<8x384xf32>
    %50 = vector.extract_strided_slice %45 {offsets = [0, 0], sizes = [8, 128], strides = [1, 1]} : vector<8x384xf32> to vector<8x128xf32>
    %51 = vector.extract_strided_slice %49 {offsets = [0, 0], sizes = [8, 128], strides = [1, 1]} : vector<8x384xf32> to vector<8x128xf32>
    %52 = arith.addf %50, %51 : vector<8x128xf32>
    %53 = arith.negf %52 : vector<8x128xf32>
    %54 = math.exp %53 : vector<8x128xf32>
    %cst_23 = arith.constant 1.000000e+00 : f32
    %55 = vector.broadcast %cst_23 : f32 to vector<8x128xf32>
    %56 = arith.addf %55, %54 : vector<8x128xf32>
    %57 = arith.divf %55, %56 : vector<8x128xf32>
    %58 = vector.extract_strided_slice %45 {offsets = [0, 128], sizes = [8, 128], strides = [1, 1]} : vector<8x384xf32> to vector<8x128xf32>
    %59 = vector.extract_strided_slice %49 {offsets = [0, 128], sizes = [8, 128], strides = [1, 1]} : vector<8x384xf32> to vector<8x128xf32>
    %60 = arith.addf %58, %59 : vector<8x128xf32>
    %61 = arith.negf %60 : vector<8x128xf32>
    %62 = math.exp %61 : vector<8x128xf32>
    %cst_24 = arith.constant 1.000000e+00 : f32
    %63 = vector.broadcast %cst_24 : f32 to vector<8x128xf32>
    %64 = arith.addf %63, %62 : vector<8x128xf32>
    %65 = arith.divf %63, %64 : vector<8x128xf32>
    %66 = vector.extract_strided_slice %45 {offsets = [0, 256], sizes = [8, 128], strides = [1, 1]} : vector<8x384xf32> to vector<8x128xf32>
    %67 = vector.extract_strided_slice %49 {offsets = [0, 256], sizes = [8, 128], strides = [1, 1]} : vector<8x384xf32> to vector<8x128xf32>
    %68 = arith.mulf %57, %67 : vector<8x128xf32>
    %69 = arith.addf %66, %68 : vector<8x128xf32>
    %70 = math.tanh %69 : vector<8x128xf32>
    %cst_25 = arith.constant 1.000000e+00 : f32
    %71 = vector.broadcast %cst_25 : f32 to vector<8x128xf32>
    %72 = arith.subf %71, %65 : vector<8x128xf32>
    %73 = arith.mulf %72, %70 : vector<8x128xf32>
    %74 = arith.mulf %65, %43 : vector<8x128xf32>
    %75 = arith.addf %73, %74 : vector<8x128xf32>
    %c8_26 = arith.constant 8 : index
    %c0_27 = arith.constant 0 : index
    %76 = vector.load %arg14[%c8_26, %c0_27] : memref<64x128xf32, #tpu.memory_space<vmem>>, vector<8x128xf32>
    tpu.vector_store %arg14[%c8_26, %c0_27], %75 {strides = array<i32>} : memref<64x128xf32, #tpu.memory_space<vmem>>, vector<8x128xf32>,
    %c16 = arith.constant 16 : index
    %c0_28 = arith.constant 0 : index
    %77 = vector.load %arg13[%c16, %c0_28] : memref<64x384xf32, #tpu.memory_space<vmem>>, vector<8x384xf32>
    %78 = arith.truncf %75 : vector<8x128xf32> to vector<8x128xbf16>
    %cst_29 = arith.constant dense<0.000000e+00> : vector<8x384xf32>
    %79 = tpu.matmul %78, %10, %cst_29 {dimension_numbers = #tpu.dot_dimension_numbers<[1], [0], [0], [1], [0, 0, 1, 1], [], []>} : vector<8x128xbf16>, vector<128x384xbf16>, vector<8x384xf32> -> vector<8x384xf32>
    %80 = vector.broadcast %1 : vector<1x384xf32> to vector<8x384xf32>
    %81 = arith.addf %79, %80 : vector<8x384xf32>
    %82 = vector.extract_strided_slice %77 {offsets = [0, 0], sizes = [8, 128], strides = [1, 1]} : vector<8x384xf32> to vector<8x128xf32>
    %83 = vector.extract_strided_slice %81 {offsets = [0, 0], sizes = [8, 128], strides = [1, 1]} : vector<8x384xf32> to vector<8x128xf32>
    %84 = arith.addf %82, %83 : vector<8x128xf32>
    %85 = arith.negf %84 : vector<8x128xf32>
    %86 = math.exp %85 : vector<8x128xf32>
    %cst_30 = arith.constant 1.000000e+00 : f32
    %87 = vector.broadcast %cst_30 : f32 to vector<8x128xf32>
    %88 = arith.addf %87, %86 : vector<8x128xf32>
    %89 = arith.divf %87, %88 : vector<8x128xf32>
    %90 = vector.extract_strided_slice %77 {offsets = [0, 128], sizes = [8, 128], strides = [1, 1]} : vector<8x384xf32> to vector<8x128xf32>
    %91 = vector.extract_strided_slice %81 {offsets = [0, 128], sizes = [8, 128], strides = [1, 1]} : vector<8x384xf32> to vector<8x128xf32>
    %92 = arith.addf %90, %91 : vector<8x128xf32>
    %93 = arith.negf %92 : vector<8x128xf32>
    %94 = math.exp %93 : vector<8x128xf32>
    %cst_31 = arith.constant 1.000000e+00 : f32
    %95 = vector.broadcast %cst_31 : f32 to vector<8x128xf32>
    %96 = arith.addf %95, %94 : vector<8x128xf32>
    %97 = arith.divf %95, %96 : vector<8x128xf32>
    %98 = vector.extract_strided_slice %77 {offsets = [0, 256], sizes = [8, 128], strides = [1, 1]} : vector<8x384xf32> to vector<8x128xf32>
    %99 = vector.extract_strided_slice %81 {offsets = [0, 256], sizes = [8, 128], strides = [1, 1]} : vector<8x384xf32> to vector<8x128xf32>
    %100 = arith.mulf %89, %99 : vector<8x128xf32>
    %101 = arith.addf %98, %100 : vector<8x128xf32>
    %102 = math.tanh %101 : vector<8x128xf32>
    %cst_32 = arith.constant 1.000000e+00 : f32
    %103 = vector.broadcast %cst_32 : f32 to vector<8x128xf32>
    %104 = arith.subf %103, %97 : vector<8x128xf32>
    %105 = arith.mulf %104, %102 : vector<8x128xf32>
    %106 = arith.mulf %97, %75 : vector<8x128xf32>
    %107 = arith.addf %105, %106 : vector<8x128xf32>
    %c16_33 = arith.constant 16 : index
    %c0_34 = arith.constant 0 : index
    %108 = vector.load %arg14[%c16_33, %c0_34] : memref<64x128xf32, #tpu.memory_space<vmem>>, vector<8x128xf32>
    tpu.vector_store %arg14[%c16_33, %c0_34], %107 {strides = array<i32>} : memref<64x128xf32, #tpu.memory_space<vmem>>, vector<8x128xf32>,
    %c24 = arith.constant 24 : index
    %c0_35 = arith.constant 0 : index
    %109 = vector.load %arg13[%c24, %c0_35] : memref<64x384xf32, #tpu.memory_space<vmem>>, vector<8x384xf32>
    %110 = arith.truncf %107 : vector<8x128xf32> to vector<8x128xbf16>
    %cst_36 = arith.constant dense<0.000000e+00> : vector<8x384xf32>
    %111 = tpu.matmul %110, %10, %cst_36 {dimension_numbers = #tpu.dot_dimension_numbers<[1], [0], [0], [1], [0, 0, 1, 1], [], []>} : vector<8x128xbf16>, vector<128x384xbf16>, vector<8x384xf32> -> vector<8x384xf32>
    %112 = vector.broadcast %1 : vector<1x384xf32> to vector<8x384xf32>
    %113 = arith.addf %111, %112 : vector<8x384xf32>
    %114 = vector.extract_strided_slice %109 {offsets = [0, 0], sizes = [8, 128], strides = [1, 1]} : vector<8x384xf32> to vector<8x128xf32>
    %115 = vector.extract_strided_slice %113 {offsets = [0, 0], sizes = [8, 128], strides = [1, 1]} : vector<8x384xf32> to vector<8x128xf32>
    %116 = arith.addf %114, %115 : vector<8x128xf32>
    %117 = arith.negf %116 : vector<8x128xf32>
    %118 = math.exp %117 : vector<8x128xf32>
    %cst_37 = arith.constant 1.000000e+00 : f32
    %119 = vector.broadcast %cst_37 : f32 to vector<8x128xf32>
    %120 = arith.addf %119, %118 : vector<8x128xf32>
    %121 = arith.divf %119, %120 : vector<8x128xf32>
    %122 = vector.extract_strided_slice %109 {offsets = [0, 128], sizes = [8, 128], strides = [1, 1]} : vector<8x384xf32> to vector<8x128xf32>
    %123 = vector.extract_strided_slice %113 {offsets = [0, 128], sizes = [8, 128], strides = [1, 1]} : vector<8x384xf32> to vector<8x128xf32>
    %124 = arith.addf %122, %123 : vector<8x128xf32>
    %125 = arith.negf %124 : vector<8x128xf32>
    %126 = math.exp %125 : vector<8x128xf32>
    %cst_38 = arith.constant 1.000000e+00 : f32
    %127 = vector.broadcast %cst_38 : f32 to vector<8x128xf32>
    %128 = arith.addf %127, %126 : vector<8x128xf32>
    %129 = arith.divf %127, %128 : vector<8x128xf32>
    %130 = vector.extract_strided_slice %109 {offsets = [0, 256], sizes = [8, 128], strides = [1, 1]} : vector<8x384xf32> to vector<8x128xf32>
    %131 = vector.extract_strided_slice %113 {offsets = [0, 256], sizes = [8, 128], strides = [1, 1]} : vector<8x384xf32> to vector<8x128xf32>
    %132 = arith.mulf %121, %131 : vector<8x128xf32>
    %133 = arith.addf %130, %132 : vector<8x128xf32>
    %134 = math.tanh %133 : vector<8x128xf32>
    %cst_39 = arith.constant 1.000000e+00 : f32
    %135 = vector.broadcast %cst_39 : f32 to vector<8x128xf32>
    %136 = arith.subf %135, %129 : vector<8x128xf32>
    %137 = arith.mulf %136, %134 : vector<8x128xf32>
    %138 = arith.mulf %129, %107 : vector<8x128xf32>
    %139 = arith.addf %137, %138 : vector<8x128xf32>
    %c24_40 = arith.constant 24 : index
    %c0_41 = arith.constant 0 : index
    %140 = vector.load %arg14[%c24_40, %c0_41] : memref<64x128xf32, #tpu.memory_space<vmem>>, vector<8x128xf32>
    tpu.vector_store %arg14[%c24_40, %c0_41], %139 {strides = array<i32>} : memref<64x128xf32, #tpu.memory_space<vmem>>, vector<8x128xf32>,
    %c32 = arith.constant 32 : index
    %c0_42 = arith.constant 0 : index
    %141 = vector.load %arg13[%c32, %c0_42] : memref<64x384xf32, #tpu.memory_space<vmem>>, vector<8x384xf32>
    %142 = arith.truncf %139 : vector<8x128xf32> to vector<8x128xbf16>
    %cst_43 = arith.constant dense<0.000000e+00> : vector<8x384xf32>
    %143 = tpu.matmul %142, %10, %cst_43 {dimension_numbers = #tpu.dot_dimension_numbers<[1], [0], [0], [1], [0, 0, 1, 1], [], []>} : vector<8x128xbf16>, vector<128x384xbf16>, vector<8x384xf32> -> vector<8x384xf32>
    %144 = vector.broadcast %1 : vector<1x384xf32> to vector<8x384xf32>
    %145 = arith.addf %143, %144 : vector<8x384xf32>
    %146 = vector.extract_strided_slice %141 {offsets = [0, 0], sizes = [8, 128], strides = [1, 1]} : vector<8x384xf32> to vector<8x128xf32>
    %147 = vector.extract_strided_slice %145 {offsets = [0, 0], sizes = [8, 128], strides = [1, 1]} : vector<8x384xf32> to vector<8x128xf32>
    %148 = arith.addf %146, %147 : vector<8x128xf32>
    %149 = arith.negf %148 : vector<8x128xf32>
    %150 = math.exp %149 : vector<8x128xf32>
    %cst_44 = arith.constant 1.000000e+00 : f32
    %151 = vector.broadcast %cst_44 : f32 to vector<8x128xf32>
    %152 = arith.addf %151, %150 : vector<8x128xf32>
    %153 = arith.divf %151, %152 : vector<8x128xf32>
    %154 = vector.extract_strided_slice %141 {offsets = [0, 128], sizes = [8, 128], strides = [1, 1]} : vector<8x384xf32> to vector<8x128xf32>
    %155 = vector.extract_strided_slice %145 {offsets = [0, 128], sizes = [8, 128], strides = [1, 1]} : vector<8x384xf32> to vector<8x128xf32>
    %156 = arith.addf %154, %155 : vector<8x128xf32>
    %157 = arith.negf %156 : vector<8x128xf32>
    %158 = math.exp %157 : vector<8x128xf32>
    %cst_45 = arith.constant 1.000000e+00 : f32
    %159 = vector.broadcast %cst_45 : f32 to vector<8x128xf32>
    %160 = arith.addf %159, %158 : vector<8x128xf32>
    %161 = arith.divf %159, %160 : vector<8x128xf32>
    %162 = vector.extract_strided_slice %141 {offsets = [0, 256], sizes = [8, 128], strides = [1, 1]} : vector<8x384xf32> to vector<8x128xf32>
    %163 = vector.extract_strided_slice %145 {offsets = [0, 256], sizes = [8, 128], strides = [1, 1]} : vector<8x384xf32> to vector<8x128xf32>
    %164 = arith.mulf %153, %163 : vector<8x128xf32>
    %165 = arith.addf %162, %164 : vector<8x128xf32>
    %166 = math.tanh %165 : vector<8x128xf32>
    %cst_46 = arith.constant 1.000000e+00 : f32
    %167 = vector.broadcast %cst_46 : f32 to vector<8x128xf32>
    %168 = arith.subf %167, %161 : vector<8x128xf32>
    %169 = arith.mulf %168, %166 : vector<8x128xf32>
    %170 = arith.mulf %161, %139 : vector<8x128xf32>
    %171 = arith.addf %169, %170 : vector<8x128xf32>
    %c32_47 = arith.constant 32 : index
    %c0_48 = arith.constant 0 : index
    %172 = vector.load %arg14[%c32_47, %c0_48] : memref<64x128xf32, #tpu.memory_space<vmem>>, vector<8x128xf32>
    tpu.vector_store %arg14[%c32_47, %c0_48], %171 {strides = array<i32>} : memref<64x128xf32, #tpu.memory_space<vmem>>, vector<8x128xf32>,
    %c40 = arith.constant 40 : index
    %c0_49 = arith.constant 0 : index
    %173 = vector.load %arg13[%c40, %c0_49] : memref<64x384xf32, #tpu.memory_space<vmem>>, vector<8x384xf32>
    %174 = arith.truncf %171 : vector<8x128xf32> to vector<8x128xbf16>
    %cst_50 = arith.constant dense<0.000000e+00> : vector<8x384xf32>
    %175 = tpu.matmul %174, %10, %cst_50 {dimension_numbers = #tpu.dot_dimension_numbers<[1], [0], [0], [1], [0, 0, 1, 1], [], []>} : vector<8x128xbf16>, vector<128x384xbf16>, vector<8x384xf32> -> vector<8x384xf32>
    %176 = vector.broadcast %1 : vector<1x384xf32> to vector<8x384xf32>
    %177 = arith.addf %175, %176 : vector<8x384xf32>
    %178 = vector.extract_strided_slice %173 {offsets = [0, 0], sizes = [8, 128], strides = [1, 1]} : vector<8x384xf32> to vector<8x128xf32>
    %179 = vector.extract_strided_slice %177 {offsets = [0, 0], sizes = [8, 128], strides = [1, 1]} : vector<8x384xf32> to vector<8x128xf32>
    %180 = arith.addf %178, %179 : vector<8x128xf32>
    %181 = arith.negf %180 : vector<8x128xf32>
    %182 = math.exp %181 : vector<8x128xf32>
    %cst_51 = arith.constant 1.000000e+00 : f32
    %183 = vector.broadcast %cst_51 : f32 to vector<8x128xf32>
    %184 = arith.addf %183, %182 : vector<8x128xf32>
    %185 = arith.divf %183, %184 : vector<8x128xf32>
    %186 = vector.extract_strided_slice %173 {offsets = [0, 128], sizes = [8, 128], strides = [1, 1]} : vector<8x384xf32> to vector<8x128xf32>
    %187 = vector.extract_strided_slice %177 {offsets = [0, 128], sizes = [8, 128], strides = [1, 1]} : vector<8x384xf32> to vector<8x128xf32>
    %188 = arith.addf %186, %187 : vector<8x128xf32>
    %189 = arith.negf %188 : vector<8x128xf32>
    %190 = math.exp %189 : vector<8x128xf32>
    %cst_52 = arith.constant 1.000000e+00 : f32
    %191 = vector.broadcast %cst_52 : f32 to vector<8x128xf32>
    %192 = arith.addf %191, %190 : vector<8x128xf32>
    %193 = arith.divf %191, %192 : vector<8x128xf32>
    %194 = vector.extract_strided_slice %173 {offsets = [0, 256], sizes = [8, 128], strides = [1, 1]} : vector<8x384xf32> to vector<8x128xf32>
    %195 = vector.extract_strided_slice %177 {offsets = [0, 256], sizes = [8, 128], strides = [1, 1]} : vector<8x384xf32> to vector<8x128xf32>
    %196 = arith.mulf %185, %195 : vector<8x128xf32>
    %197 = arith.addf %194, %196 : vector<8x128xf32>
    %198 = math.tanh %197 : vector<8x128xf32>
    %cst_53 = arith.constant 1.000000e+00 : f32
    %199 = vector.broadcast %cst_53 : f32 to vector<8x128xf32>
    %200 = arith.subf %199, %193 : vector<8x128xf32>
    %201 = arith.mulf %200, %198 : vector<8x128xf32>
    %202 = arith.mulf %193, %171 : vector<8x128xf32>
    %203 = arith.addf %201, %202 : vector<8x128xf32>
    %c40_54 = arith.constant 40 : index
    %c0_55 = arith.constant 0 : index
    %204 = vector.load %arg14[%c40_54, %c0_55] : memref<64x128xf32, #tpu.memory_space<vmem>>, vector<8x128xf32>
    tpu.vector_store %arg14[%c40_54, %c0_55], %203 {strides = array<i32>} : memref<64x128xf32, #tpu.memory_space<vmem>>, vector<8x128xf32>,
    %c48 = arith.constant 48 : index
    %c0_56 = arith.constant 0 : index
    %205 = vector.load %arg13[%c48, %c0_56] : memref<64x384xf32, #tpu.memory_space<vmem>>, vector<8x384xf32>
    %206 = arith.truncf %203 : vector<8x128xf32> to vector<8x128xbf16>
    %cst_57 = arith.constant dense<0.000000e+00> : vector<8x384xf32>
    %207 = tpu.matmul %206, %10, %cst_57 {dimension_numbers = #tpu.dot_dimension_numbers<[1], [0], [0], [1], [0, 0, 1, 1], [], []>} : vector<8x128xbf16>, vector<128x384xbf16>, vector<8x384xf32> -> vector<8x384xf32>
    %208 = vector.broadcast %1 : vector<1x384xf32> to vector<8x384xf32>
    %209 = arith.addf %207, %208 : vector<8x384xf32>
    %210 = vector.extract_strided_slice %205 {offsets = [0, 0], sizes = [8, 128], strides = [1, 1]} : vector<8x384xf32> to vector<8x128xf32>
    %211 = vector.extract_strided_slice %209 {offsets = [0, 0], sizes = [8, 128], strides = [1, 1]} : vector<8x384xf32> to vector<8x128xf32>
    %212 = arith.addf %210, %211 : vector<8x128xf32>
    %213 = arith.negf %212 : vector<8x128xf32>
    %214 = math.exp %213 : vector<8x128xf32>
    %cst_58 = arith.constant 1.000000e+00 : f32
    %215 = vector.broadcast %cst_58 : f32 to vector<8x128xf32>
    %216 = arith.addf %215, %214 : vector<8x128xf32>
    %217 = arith.divf %215, %216 : vector<8x128xf32>
    %218 = vector.extract_strided_slice %205 {offsets = [0, 128], sizes = [8, 128], strides = [1, 1]} : vector<8x384xf32> to vector<8x128xf32>
    %219 = vector.extract_strided_slice %209 {offsets = [0, 128], sizes = [8, 128], strides = [1, 1]} : vector<8x384xf32> to vector<8x128xf32>
    %220 = arith.addf %218, %219 : vector<8x128xf32>
    %221 = arith.negf %220 : vector<8x128xf32>
    %222 = math.exp %221 : vector<8x128xf32>
    %cst_59 = arith.constant 1.000000e+00 : f32
    %223 = vector.broadcast %cst_59 : f32 to vector<8x128xf32>
    %224 = arith.addf %223, %222 : vector<8x128xf32>
    %225 = arith.divf %223, %224 : vector<8x128xf32>
    %226 = vector.extract_strided_slice %205 {offsets = [0, 256], sizes = [8, 128], strides = [1, 1]} : vector<8x384xf32> to vector<8x128xf32>
    %227 = vector.extract_strided_slice %209 {offsets = [0, 256], sizes = [8, 128], strides = [1, 1]} : vector<8x384xf32> to vector<8x128xf32>
    %228 = arith.mulf %217, %227 : vector<8x128xf32>
    %229 = arith.addf %226, %228 : vector<8x128xf32>
    %230 = math.tanh %229 : vector<8x128xf32>
    %cst_60 = arith.constant 1.000000e+00 : f32
    %231 = vector.broadcast %cst_60 : f32 to vector<8x128xf32>
    %232 = arith.subf %231, %225 : vector<8x128xf32>
    %233 = arith.mulf %232, %230 : vector<8x128xf32>
    %234 = arith.mulf %225, %203 : vector<8x128xf32>
    %235 = arith.addf %233, %234 : vector<8x128xf32>
    %c48_61 = arith.constant 48 : index
    %c0_62 = arith.constant 0 : index
    %236 = vector.load %arg14[%c48_61, %c0_62] : memref<64x128xf32, #tpu.memory_space<vmem>>, vector<8x128xf32>
    tpu.vector_store %arg14[%c48_61, %c0_62], %235 {strides = array<i32>} : memref<64x128xf32, #tpu.memory_space<vmem>>, vector<8x128xf32>,
    %c56 = arith.constant 56 : index
    %c0_63 = arith.constant 0 : index
    %237 = vector.load %arg13[%c56, %c0_63] : memref<64x384xf32, #tpu.memory_space<vmem>>, vector<8x384xf32>
    %238 = arith.truncf %235 : vector<8x128xf32> to vector<8x128xbf16>
    %cst_64 = arith.constant dense<0.000000e+00> : vector<8x384xf32>
    %239 = tpu.matmul %238, %10, %cst_64 {dimension_numbers = #tpu.dot_dimension_numbers<[1], [0], [0], [1], [0, 0, 1, 1], [], []>} : vector<8x128xbf16>, vector<128x384xbf16>, vector<8x384xf32> -> vector<8x384xf32>
    %240 = vector.broadcast %1 : vector<1x384xf32> to vector<8x384xf32>
    %241 = arith.addf %239, %240 : vector<8x384xf32>
    %242 = vector.extract_strided_slice %237 {offsets = [0, 0], sizes = [8, 128], strides = [1, 1]} : vector<8x384xf32> to vector<8x128xf32>
    %243 = vector.extract_strided_slice %241 {offsets = [0, 0], sizes = [8, 128], strides = [1, 1]} : vector<8x384xf32> to vector<8x128xf32>
    %244 = arith.addf %242, %243 : vector<8x128xf32>
    %245 = arith.negf %244 : vector<8x128xf32>
    %246 = math.exp %245 : vector<8x128xf32>
    %cst_65 = arith.constant 1.000000e+00 : f32
    %247 = vector.broadcast %cst_65 : f32 to vector<8x128xf32>
    %248 = arith.addf %247, %246 : vector<8x128xf32>
    %249 = arith.divf %247, %248 : vector<8x128xf32>
    %250 = vector.extract_strided_slice %237 {offsets = [0, 128], sizes = [8, 128], strides = [1, 1]} : vector<8x384xf32> to vector<8x128xf32>
    %251 = vector.extract_strided_slice %241 {offsets = [0, 128], sizes = [8, 128], strides = [1, 1]} : vector<8x384xf32> to vector<8x128xf32>
    %252 = arith.addf %250, %251 : vector<8x128xf32>
    %253 = arith.negf %252 : vector<8x128xf32>
    %254 = math.exp %253 : vector<8x128xf32>
    %cst_66 = arith.constant 1.000000e+00 : f32
    %255 = vector.broadcast %cst_66 : f32 to vector<8x128xf32>
    %256 = arith.addf %255, %254 : vector<8x128xf32>
    %257 = arith.divf %255, %256 : vector<8x128xf32>
    %258 = vector.extract_strided_slice %237 {offsets = [0, 256], sizes = [8, 128], strides = [1, 1]} : vector<8x384xf32> to vector<8x128xf32>
    %259 = vector.extract_strided_slice %241 {offsets = [0, 256], sizes = [8, 128], strides = [1, 1]} : vector<8x384xf32> to vector<8x128xf32>
    %260 = arith.mulf %249, %259 : vector<8x128xf32>
    %261 = arith.addf %258, %260 : vector<8x128xf32>
    %262 = math.tanh %261 : vector<8x128xf32>
    %cst_67 = arith.constant 1.000000e+00 : f32
    %263 = vector.broadcast %cst_67 : f32 to vector<8x128xf32>
    %264 = arith.subf %263, %257 : vector<8x128xf32>
    %265 = arith.mulf %264, %262 : vector<8x128xf32>
    %266 = arith.mulf %257, %235 : vector<8x128xf32>
    %267 = arith.addf %265, %266 : vector<8x128xf32>
    %c56_68 = arith.constant 56 : index
    %c0_69 = arith.constant 0 : index
    %268 = vector.load %arg14[%c56_68, %c0_69] : memref<64x128xf32, #tpu.memory_space<vmem>>, vector<8x128xf32>
    tpu.vector_store %arg14[%c56_68, %c0_69], %267 {strides = array<i32>} : memref<64x128xf32, #tpu.memory_space<vmem>>, vector<8x128xf32>,
    %c0_70 = arith.constant 0 : index
    %c0_71 = arith.constant 0 : index
    %269 = vector.load %arg7[%c0_70, %c0_71] : memref<1x384xf32, #tpu.memory_space<vmem>>, vector<1x384xf32>
    %c0_72 = arith.constant 0 : index
    %c0_73 = arith.constant 0 : index
    %270 = vector.load %arg8[%c0_72, %c0_73] : memref<1x384xf32, #tpu.memory_space<vmem>>, vector<1x384xf32>
    %c0_74 = arith.constant 0 : index
    %c0_75 = arith.constant 0 : index
    %271 = vector.load %arg14[%c0_74, %c0_75] : memref<64x128xf32, #tpu.memory_space<vmem>>, vector<64x128xf32>
    %272 = arith.truncf %271 : vector<64x128xf32> to vector<64x128xbf16>
    %c0_76 = arith.constant 0 : index
    %c0_77 = arith.constant 0 : index
    %273 = vector.load %arg5[%c0_76, %c0_77] : memref<128x384xbf16, #tpu.memory_space<vmem>>, vector<128x384xbf16>
    %cst_78 = arith.constant dense<0.000000e+00> : vector<64x384xf32>
    %274 = tpu.matmul %272, %273, %cst_78 {dimension_numbers = #tpu.dot_dimension_numbers<[1], [0], [0], [1], [0, 0, 1, 1], [], []>} : vector<64x128xbf16>, vector<128x384xbf16>, vector<64x384xf32> -> vector<64x384xf32>
    %275 = vector.broadcast %269 : vector<1x384xf32> to vector<64x384xf32>
    %276 = arith.addf %274, %275 : vector<64x384xf32>
    %c0_79 = arith.constant 0 : index
    %c0_80 = arith.constant 0 : index
    %277 = vector.load %arg13[%c0_79, %c0_80] : memref<64x384xf32, #tpu.memory_space<vmem>>, vector<64x384xf32>
    tpu.vector_store %arg13[%c0_79, %c0_80], %276 {strides = array<i32>} : memref<64x384xf32, #tpu.memory_space<vmem>>, vector<64x384xf32>,
    %c0_81 = arith.constant 0 : index
    %c0_82 = arith.constant 0 : index
    %278 = vector.load %arg6[%c0_81, %c0_82] : memref<128x384xbf16, #tpu.memory_space<vmem>>, vector<128x384xbf16>
    %c1 = arith.constant 1 : index
    %c0_83 = arith.constant 0 : index
    %c0_84 = arith.constant 0 : index
    %279 = vector.load %arg9[%c1, %c0_83, %c0_84] : memref<2x8x128xf32, #tpu.memory_space<vmem>>, vector<1x8x128xf32>
    %280 = vector.shape_cast %279 : vector<1x8x128xf32> to vector<8x128xf32>
    %c0_85 = arith.constant 0 : index
    %c0_86 = arith.constant 0 : index
    %281 = vector.load %arg13[%c0_85, %c0_86] : memref<64x384xf32, #tpu.memory_space<vmem>>, vector<8x384xf32>
    %282 = arith.truncf %280 : vector<8x128xf32> to vector<8x128xbf16>
    %cst_87 = arith.constant dense<0.000000e+00> : vector<8x384xf32>
    %283 = tpu.matmul %282, %278, %cst_87 {dimension_numbers = #tpu.dot_dimension_numbers<[1], [0], [0], [1], [0, 0, 1, 1], [], []>} : vector<8x128xbf16>, vector<128x384xbf16>, vector<8x384xf32> -> vector<8x384xf32>
    %284 = vector.broadcast %270 : vector<1x384xf32> to vector<8x384xf32>
    %285 = arith.addf %283, %284 : vector<8x384xf32>
    %286 = vector.extract_strided_slice %281 {offsets = [0, 0], sizes = [8, 128], strides = [1, 1]} : vector<8x384xf32> to vector<8x128xf32>
    %287 = vector.extract_strided_slice %285 {offsets = [0, 0], sizes = [8, 128], strides = [1, 1]} : vector<8x384xf32> to vector<8x128xf32>
    %288 = arith.addf %286, %287 : vector<8x128xf32>
    %289 = arith.negf %288 : vector<8x128xf32>
    %290 = math.exp %289 : vector<8x128xf32>
    %cst_88 = arith.constant 1.000000e+00 : f32
    %291 = vector.broadcast %cst_88 : f32 to vector<8x128xf32>
    %292 = arith.addf %291, %290 : vector<8x128xf32>
    %293 = arith.divf %291, %292 : vector<8x128xf32>
    %294 = vector.extract_strided_slice %281 {offsets = [0, 128], sizes = [8, 128], strides = [1, 1]} : vector<8x384xf32> to vector<8x128xf32>
    %295 = vector.extract_strided_slice %285 {offsets = [0, 128], sizes = [8, 128], strides = [1, 1]} : vector<8x384xf32> to vector<8x128xf32>
    %296 = arith.addf %294, %295 : vector<8x128xf32>
    %297 = arith.negf %296 : vector<8x128xf32>
    %298 = math.exp %297 : vector<8x128xf32>
    %cst_89 = arith.constant 1.000000e+00 : f32
    %299 = vector.broadcast %cst_89 : f32 to vector<8x128xf32>
    %300 = arith.addf %299, %298 : vector<8x128xf32>
    %301 = arith.divf %299, %300 : vector<8x128xf32>
    %302 = vector.extract_strided_slice %281 {offsets = [0, 256], sizes = [8, 128], strides = [1, 1]} : vector<8x384xf32> to vector<8x128xf32>
    %303 = vector.extract_strided_slice %285 {offsets = [0, 256], sizes = [8, 128], strides = [1, 1]} : vector<8x384xf32> to vector<8x128xf32>
    %304 = arith.mulf %293, %303 : vector<8x128xf32>
    %305 = arith.addf %302, %304 : vector<8x128xf32>
    %306 = math.tanh %305 : vector<8x128xf32>
    %cst_90 = arith.constant 1.000000e+00 : f32
    %307 = vector.broadcast %cst_90 : f32 to vector<8x128xf32>
    %308 = arith.subf %307, %301 : vector<8x128xf32>
    %309 = arith.mulf %308, %306 : vector<8x128xf32>
    %310 = arith.mulf %301, %280 : vector<8x128xf32>
    %311 = arith.addf %309, %310 : vector<8x128xf32>
    %c8_91 = arith.constant 8 : index
    %c0_92 = arith.constant 0 : index
    %312 = vector.load %arg13[%c8_91, %c0_92] : memref<64x384xf32, #tpu.memory_space<vmem>>, vector<8x384xf32>
    %313 = arith.truncf %311 : vector<8x128xf32> to vector<8x128xbf16>
    %cst_93 = arith.constant dense<0.000000e+00> : vector<8x384xf32>
    %314 = tpu.matmul %313, %278, %cst_93 {dimension_numbers = #tpu.dot_dimension_numbers<[1], [0], [0], [1], [0, 0, 1, 1], [], []>} : vector<8x128xbf16>, vector<128x384xbf16>, vector<8x384xf32> -> vector<8x384xf32>
    %315 = vector.broadcast %270 : vector<1x384xf32> to vector<8x384xf32>
    %316 = arith.addf %314, %315 : vector<8x384xf32>
    %317 = vector.extract_strided_slice %312 {offsets = [0, 0], sizes = [8, 128], strides = [1, 1]} : vector<8x384xf32> to vector<8x128xf32>
    %318 = vector.extract_strided_slice %316 {offsets = [0, 0], sizes = [8, 128], strides = [1, 1]} : vector<8x384xf32> to vector<8x128xf32>
    %319 = arith.addf %317, %318 : vector<8x128xf32>
    %320 = arith.negf %319 : vector<8x128xf32>
    %321 = math.exp %320 : vector<8x128xf32>
    %cst_94 = arith.constant 1.000000e+00 : f32
    %322 = vector.broadcast %cst_94 : f32 to vector<8x128xf32>
    %323 = arith.addf %322, %321 : vector<8x128xf32>
    %324 = arith.divf %322, %323 : vector<8x128xf32>
    %325 = vector.extract_strided_slice %312 {offsets = [0, 128], sizes = [8, 128], strides = [1, 1]} : vector<8x384xf32> to vector<8x128xf32>
    %326 = vector.extract_strided_slice %316 {offsets = [0, 128], sizes = [8, 128], strides = [1, 1]} : vector<8x384xf32> to vector<8x128xf32>
    %327 = arith.addf %325, %326 : vector<8x128xf32>
    %328 = arith.negf %327 : vector<8x128xf32>
    %329 = math.exp %328 : vector<8x128xf32>
    %cst_95 = arith.constant 1.000000e+00 : f32
    %330 = vector.broadcast %cst_95 : f32 to vector<8x128xf32>
    %331 = arith.addf %330, %329 : vector<8x128xf32>
    %332 = arith.divf %330, %331 : vector<8x128xf32>
    %333 = vector.extract_strided_slice %312 {offsets = [0, 256], sizes = [8, 128], strides = [1, 1]} : vector<8x384xf32> to vector<8x128xf32>
    %334 = vector.extract_strided_slice %316 {offsets = [0, 256], sizes = [8, 128], strides = [1, 1]} : vector<8x384xf32> to vector<8x128xf32>
    %335 = arith.mulf %324, %334 : vector<8x128xf32>
    %336 = arith.addf %333, %335 : vector<8x128xf32>
    %337 = math.tanh %336 : vector<8x128xf32>
    %cst_96 = arith.constant 1.000000e+00 : f32
    %338 = vector.broadcast %cst_96 : f32 to vector<8x128xf32>
    %339 = arith.subf %338, %332 : vector<8x128xf32>
    %340 = arith.mulf %339, %337 : vector<8x128xf32>
    %341 = arith.mulf %332, %311 : vector<8x128xf32>
    %342 = arith.addf %340, %341 : vector<8x128xf32>
    %c16_97 = arith.constant 16 : index
    %c0_98 = arith.constant 0 : index
    %343 = vector.load %arg13[%c16_97, %c0_98] : memref<64x384xf32, #tpu.memory_space<vmem>>, vector<8x384xf32>
    %344 = arith.truncf %342 : vector<8x128xf32> to vector<8x128xbf16>
    %cst_99 = arith.constant dense<0.000000e+00> : vector<8x384xf32>
    %345 = tpu.matmul %344, %278, %cst_99 {dimension_numbers = #tpu.dot_dimension_numbers<[1], [0], [0], [1], [0, 0, 1, 1], [], []>} : vector<8x128xbf16>, vector<128x384xbf16>, vector<8x384xf32> -> vector<8x384xf32>
    %346 = vector.broadcast %270 : vector<1x384xf32> to vector<8x384xf32>
    %347 = arith.addf %345, %346 : vector<8x384xf32>
    %348 = vector.extract_strided_slice %343 {offsets = [0, 0], sizes = [8, 128], strides = [1, 1]} : vector<8x384xf32> to vector<8x128xf32>
    %349 = vector.extract_strided_slice %347 {offsets = [0, 0], sizes = [8, 128], strides = [1, 1]} : vector<8x384xf32> to vector<8x128xf32>
    %350 = arith.addf %348, %349 : vector<8x128xf32>
    %351 = arith.negf %350 : vector<8x128xf32>
    %352 = math.exp %351 : vector<8x128xf32>
    %cst_100 = arith.constant 1.000000e+00 : f32
    %353 = vector.broadcast %cst_100 : f32 to vector<8x128xf32>
    %354 = arith.addf %353, %352 : vector<8x128xf32>
    %355 = arith.divf %353, %354 : vector<8x128xf32>
    %356 = vector.extract_strided_slice %343 {offsets = [0, 128], sizes = [8, 128], strides = [1, 1]} : vector<8x384xf32> to vector<8x128xf32>
    %357 = vector.extract_strided_slice %347 {offsets = [0, 128], sizes = [8, 128], strides = [1, 1]} : vector<8x384xf32> to vector<8x128xf32>
    %358 = arith.addf %356, %357 : vector<8x128xf32>
    %359 = arith.negf %358 : vector<8x128xf32>
    %360 = math.exp %359 : vector<8x128xf32>
    %cst_101 = arith.constant 1.000000e+00 : f32
    %361 = vector.broadcast %cst_101 : f32 to vector<8x128xf32>
    %362 = arith.addf %361, %360 : vector<8x128xf32>
    %363 = arith.divf %361, %362 : vector<8x128xf32>
    %364 = vector.extract_strided_slice %343 {offsets = [0, 256], sizes = [8, 128], strides = [1, 1]} : vector<8x384xf32> to vector<8x128xf32>
    %365 = vector.extract_strided_slice %347 {offsets = [0, 256], sizes = [8, 128], strides = [1, 1]} : vector<8x384xf32> to vector<8x128xf32>
    %366 = arith.mulf %355, %365 : vector<8x128xf32>
    %367 = arith.addf %364, %366 : vector<8x128xf32>
    %368 = math.tanh %367 : vector<8x128xf32>
    %cst_102 = arith.constant 1.000000e+00 : f32
    %369 = vector.broadcast %cst_102 : f32 to vector<8x128xf32>
    %370 = arith.subf %369, %363 : vector<8x128xf32>
    %371 = arith.mulf %370, %368 : vector<8x128xf32>
    %372 = arith.mulf %363, %342 : vector<8x128xf32>
    %373 = arith.addf %371, %372 : vector<8x128xf32>
    %c24_103 = arith.constant 24 : index
    %c0_104 = arith.constant 0 : index
    %374 = vector.load %arg13[%c24_103, %c0_104] : memref<64x384xf32, #tpu.memory_space<vmem>>, vector<8x384xf32>
    %375 = arith.truncf %373 : vector<8x128xf32> to vector<8x128xbf16>
    %cst_105 = arith.constant dense<0.000000e+00> : vector<8x384xf32>
    %376 = tpu.matmul %375, %278, %cst_105 {dimension_numbers = #tpu.dot_dimension_numbers<[1], [0], [0], [1], [0, 0, 1, 1], [], []>} : vector<8x128xbf16>, vector<128x384xbf16>, vector<8x384xf32> -> vector<8x384xf32>
    %377 = vector.broadcast %270 : vector<1x384xf32> to vector<8x384xf32>
    %378 = arith.addf %376, %377 : vector<8x384xf32>
    %379 = vector.extract_strided_slice %374 {offsets = [0, 0], sizes = [8, 128], strides = [1, 1]} : vector<8x384xf32> to vector<8x128xf32>
    %380 = vector.extract_strided_slice %378 {offsets = [0, 0], sizes = [8, 128], strides = [1, 1]} : vector<8x384xf32> to vector<8x128xf32>
    %381 = arith.addf %379, %380 : vector<8x128xf32>
    %382 = arith.negf %381 : vector<8x128xf32>
    %383 = math.exp %382 : vector<8x128xf32>
    %cst_106 = arith.constant 1.000000e+00 : f32
    %384 = vector.broadcast %cst_106 : f32 to vector<8x128xf32>
    %385 = arith.addf %384, %383 : vector<8x128xf32>
    %386 = arith.divf %384, %385 : vector<8x128xf32>
    %387 = vector.extract_strided_slice %374 {offsets = [0, 128], sizes = [8, 128], strides = [1, 1]} : vector<8x384xf32> to vector<8x128xf32>
    %388 = vector.extract_strided_slice %378 {offsets = [0, 128], sizes = [8, 128], strides = [1, 1]} : vector<8x384xf32> to vector<8x128xf32>
    %389 = arith.addf %387, %388 : vector<8x128xf32>
    %390 = arith.negf %389 : vector<8x128xf32>
    %391 = math.exp %390 : vector<8x128xf32>
    %cst_107 = arith.constant 1.000000e+00 : f32
    %392 = vector.broadcast %cst_107 : f32 to vector<8x128xf32>
    %393 = arith.addf %392, %391 : vector<8x128xf32>
    %394 = arith.divf %392, %393 : vector<8x128xf32>
    %395 = vector.extract_strided_slice %374 {offsets = [0, 256], sizes = [8, 128], strides = [1, 1]} : vector<8x384xf32> to vector<8x128xf32>
    %396 = vector.extract_strided_slice %378 {offsets = [0, 256], sizes = [8, 128], strides = [1, 1]} : vector<8x384xf32> to vector<8x128xf32>
    %397 = arith.mulf %386, %396 : vector<8x128xf32>
    %398 = arith.addf %395, %397 : vector<8x128xf32>
    %399 = math.tanh %398 : vector<8x128xf32>
    %cst_108 = arith.constant 1.000000e+00 : f32
    %400 = vector.broadcast %cst_108 : f32 to vector<8x128xf32>
    %401 = arith.subf %400, %394 : vector<8x128xf32>
    %402 = arith.mulf %401, %399 : vector<8x128xf32>
    %403 = arith.mulf %394, %373 : vector<8x128xf32>
    %404 = arith.addf %402, %403 : vector<8x128xf32>
    %c32_109 = arith.constant 32 : index
    %c0_110 = arith.constant 0 : index
    %405 = vector.load %arg13[%c32_109, %c0_110] : memref<64x384xf32, #tpu.memory_space<vmem>>, vector<8x384xf32>
    %406 = arith.truncf %404 : vector<8x128xf32> to vector<8x128xbf16>
    %cst_111 = arith.constant dense<0.000000e+00> : vector<8x384xf32>
    %407 = tpu.matmul %406, %278, %cst_111 {dimension_numbers = #tpu.dot_dimension_numbers<[1], [0], [0], [1], [0, 0, 1, 1], [], []>} : vector<8x128xbf16>, vector<128x384xbf16>, vector<8x384xf32> -> vector<8x384xf32>
    %408 = vector.broadcast %270 : vector<1x384xf32> to vector<8x384xf32>
    %409 = arith.addf %407, %408 : vector<8x384xf32>
    %410 = vector.extract_strided_slice %405 {offsets = [0, 0], sizes = [8, 128], strides = [1, 1]} : vector<8x384xf32> to vector<8x128xf32>
    %411 = vector.extract_strided_slice %409 {offsets = [0, 0], sizes = [8, 128], strides = [1, 1]} : vector<8x384xf32> to vector<8x128xf32>
    %412 = arith.addf %410, %411 : vector<8x128xf32>
    %413 = arith.negf %412 : vector<8x128xf32>
    %414 = math.exp %413 : vector<8x128xf32>
    %cst_112 = arith.constant 1.000000e+00 : f32
    %415 = vector.broadcast %cst_112 : f32 to vector<8x128xf32>
    %416 = arith.addf %415, %414 : vector<8x128xf32>
    %417 = arith.divf %415, %416 : vector<8x128xf32>
    %418 = vector.extract_strided_slice %405 {offsets = [0, 128], sizes = [8, 128], strides = [1, 1]} : vector<8x384xf32> to vector<8x128xf32>
    %419 = vector.extract_strided_slice %409 {offsets = [0, 128], sizes = [8, 128], strides = [1, 1]} : vector<8x384xf32> to vector<8x128xf32>
    %420 = arith.addf %418, %419 : vector<8x128xf32>
    %421 = arith.negf %420 : vector<8x128xf32>
    %422 = math.exp %421 : vector<8x128xf32>
    %cst_113 = arith.constant 1.000000e+00 : f32
    %423 = vector.broadcast %cst_113 : f32 to vector<8x128xf32>
    %424 = arith.addf %423, %422 : vector<8x128xf32>
    %425 = arith.divf %423, %424 : vector<8x128xf32>
    %426 = vector.extract_strided_slice %405 {offsets = [0, 256], sizes = [8, 128], strides = [1, 1]} : vector<8x384xf32> to vector<8x128xf32>
    %427 = vector.extract_strided_slice %409 {offsets = [0, 256], sizes = [8, 128], strides = [1, 1]} : vector<8x384xf32> to vector<8x128xf32>
    %428 = arith.mulf %417, %427 : vector<8x128xf32>
    %429 = arith.addf %426, %428 : vector<8x128xf32>
    %430 = math.tanh %429 : vector<8x128xf32>
    %cst_114 = arith.constant 1.000000e+00 : f32
    %431 = vector.broadcast %cst_114 : f32 to vector<8x128xf32>
    %432 = arith.subf %431, %425 : vector<8x128xf32>
    %433 = arith.mulf %432, %430 : vector<8x128xf32>
    %434 = arith.mulf %425, %404 : vector<8x128xf32>
    %435 = arith.addf %433, %434 : vector<8x128xf32>
    %c40_115 = arith.constant 40 : index
    %c0_116 = arith.constant 0 : index
    %436 = vector.load %arg13[%c40_115, %c0_116] : memref<64x384xf32, #tpu.memory_space<vmem>>, vector<8x384xf32>
    %437 = arith.truncf %435 : vector<8x128xf32> to vector<8x128xbf16>
    %cst_117 = arith.constant dense<0.000000e+00> : vector<8x384xf32>
    %438 = tpu.matmul %437, %278, %cst_117 {dimension_numbers = #tpu.dot_dimension_numbers<[1], [0], [0], [1], [0, 0, 1, 1], [], []>} : vector<8x128xbf16>, vector<128x384xbf16>, vector<8x384xf32> -> vector<8x384xf32>
    %439 = vector.broadcast %270 : vector<1x384xf32> to vector<8x384xf32>
    %440 = arith.addf %438, %439 : vector<8x384xf32>
    %441 = vector.extract_strided_slice %436 {offsets = [0, 0], sizes = [8, 128], strides = [1, 1]} : vector<8x384xf32> to vector<8x128xf32>
    %442 = vector.extract_strided_slice %440 {offsets = [0, 0], sizes = [8, 128], strides = [1, 1]} : vector<8x384xf32> to vector<8x128xf32>
    %443 = arith.addf %441, %442 : vector<8x128xf32>
    %444 = arith.negf %443 : vector<8x128xf32>
    %445 = math.exp %444 : vector<8x128xf32>
    %cst_118 = arith.constant 1.000000e+00 : f32
    %446 = vector.broadcast %cst_118 : f32 to vector<8x128xf32>
    %447 = arith.addf %446, %445 : vector<8x128xf32>
    %448 = arith.divf %446, %447 : vector<8x128xf32>
    %449 = vector.extract_strided_slice %436 {offsets = [0, 128], sizes = [8, 128], strides = [1, 1]} : vector<8x384xf32> to vector<8x128xf32>
    %450 = vector.extract_strided_slice %440 {offsets = [0, 128], sizes = [8, 128], strides = [1, 1]} : vector<8x384xf32> to vector<8x128xf32>
    %451 = arith.addf %449, %450 : vector<8x128xf32>
    %452 = arith.negf %451 : vector<8x128xf32>
    %453 = math.exp %452 : vector<8x128xf32>
    %cst_119 = arith.constant 1.000000e+00 : f32
    %454 = vector.broadcast %cst_119 : f32 to vector<8x128xf32>
    %455 = arith.addf %454, %453 : vector<8x128xf32>
    %456 = arith.divf %454, %455 : vector<8x128xf32>
    %457 = vector.extract_strided_slice %436 {offsets = [0, 256], sizes = [8, 128], strides = [1, 1]} : vector<8x384xf32> to vector<8x128xf32>
    %458 = vector.extract_strided_slice %440 {offsets = [0, 256], sizes = [8, 128], strides = [1, 1]} : vector<8x384xf32> to vector<8x128xf32>
    %459 = arith.mulf %448, %458 : vector<8x128xf32>
    %460 = arith.addf %457, %459 : vector<8x128xf32>
    %461 = math.tanh %460 : vector<8x128xf32>
    %cst_120 = arith.constant 1.000000e+00 : f32
    %462 = vector.broadcast %cst_120 : f32 to vector<8x128xf32>
    %463 = arith.subf %462, %456 : vector<8x128xf32>
    %464 = arith.mulf %463, %461 : vector<8x128xf32>
    %465 = arith.mulf %456, %435 : vector<8x128xf32>
    %466 = arith.addf %464, %465 : vector<8x128xf32>
    %c48_121 = arith.constant 48 : index
    %c0_122 = arith.constant 0 : index
    %467 = vector.load %arg13[%c48_121, %c0_122] : memref<64x384xf32, #tpu.memory_space<vmem>>, vector<8x384xf32>
    %468 = arith.truncf %466 : vector<8x128xf32> to vector<8x128xbf16>
    %cst_123 = arith.constant dense<0.000000e+00> : vector<8x384xf32>
    %469 = tpu.matmul %468, %278, %cst_123 {dimension_numbers = #tpu.dot_dimension_numbers<[1], [0], [0], [1], [0, 0, 1, 1], [], []>} : vector<8x128xbf16>, vector<128x384xbf16>, vector<8x384xf32> -> vector<8x384xf32>
    %470 = vector.broadcast %270 : vector<1x384xf32> to vector<8x384xf32>
    %471 = arith.addf %469, %470 : vector<8x384xf32>
    %472 = vector.extract_strided_slice %467 {offsets = [0, 0], sizes = [8, 128], strides = [1, 1]} : vector<8x384xf32> to vector<8x128xf32>
    %473 = vector.extract_strided_slice %471 {offsets = [0, 0], sizes = [8, 128], strides = [1, 1]} : vector<8x384xf32> to vector<8x128xf32>
    %474 = arith.addf %472, %473 : vector<8x128xf32>
    %475 = arith.negf %474 : vector<8x128xf32>
    %476 = math.exp %475 : vector<8x128xf32>
    %cst_124 = arith.constant 1.000000e+00 : f32
    %477 = vector.broadcast %cst_124 : f32 to vector<8x128xf32>
    %478 = arith.addf %477, %476 : vector<8x128xf32>
    %479 = arith.divf %477, %478 : vector<8x128xf32>
    %480 = vector.extract_strided_slice %467 {offsets = [0, 128], sizes = [8, 128], strides = [1, 1]} : vector<8x384xf32> to vector<8x128xf32>
    %481 = vector.extract_strided_slice %471 {offsets = [0, 128], sizes = [8, 128], strides = [1, 1]} : vector<8x384xf32> to vector<8x128xf32>
    %482 = arith.addf %480, %481 : vector<8x128xf32>
    %483 = arith.negf %482 : vector<8x128xf32>
    %484 = math.exp %483 : vector<8x128xf32>
    %cst_125 = arith.constant 1.000000e+00 : f32
    %485 = vector.broadcast %cst_125 : f32 to vector<8x128xf32>
    %486 = arith.addf %485, %484 : vector<8x128xf32>
    %487 = arith.divf %485, %486 : vector<8x128xf32>
    %488 = vector.extract_strided_slice %467 {offsets = [0, 256], sizes = [8, 128], strides = [1, 1]} : vector<8x384xf32> to vector<8x128xf32>
    %489 = vector.extract_strided_slice %471 {offsets = [0, 256], sizes = [8, 128], strides = [1, 1]} : vector<8x384xf32> to vector<8x128xf32>
    %490 = arith.mulf %479, %489 : vector<8x128xf32>
    %491 = arith.addf %488, %490 : vector<8x128xf32>
    %492 = math.tanh %491 : vector<8x128xf32>
    %cst_126 = arith.constant 1.000000e+00 : f32
    %493 = vector.broadcast %cst_126 : f32 to vector<8x128xf32>
    %494 = arith.subf %493, %487 : vector<8x128xf32>
    %495 = arith.mulf %494, %492 : vector<8x128xf32>
    %496 = arith.mulf %487, %466 : vector<8x128xf32>
    %497 = arith.addf %495, %496 : vector<8x128xf32>
    %c56_127 = arith.constant 56 : index
    %c0_128 = arith.constant 0 : index
    %498 = vector.load %arg13[%c56_127, %c0_128] : memref<64x384xf32, #tpu.memory_space<vmem>>, vector<8x384xf32>
    %499 = arith.truncf %497 : vector<8x128xf32> to vector<8x128xbf16>
    %cst_129 = arith.constant dense<0.000000e+00> : vector<8x384xf32>
    %500 = tpu.matmul %499, %278, %cst_129 {dimension_numbers = #tpu.dot_dimension_numbers<[1], [0], [0], [1], [0, 0, 1, 1], [], []>} : vector<8x128xbf16>, vector<128x384xbf16>, vector<8x384xf32> -> vector<8x384xf32>
    %501 = vector.broadcast %270 : vector<1x384xf32> to vector<8x384xf32>
    %502 = arith.addf %500, %501 : vector<8x384xf32>
    %503 = vector.extract_strided_slice %498 {offsets = [0, 0], sizes = [8, 128], strides = [1, 1]} : vector<8x384xf32> to vector<8x128xf32>
    %504 = vector.extract_strided_slice %502 {offsets = [0, 0], sizes = [8, 128], strides = [1, 1]} : vector<8x384xf32> to vector<8x128xf32>
    %505 = arith.addf %503, %504 : vector<8x128xf32>
    %506 = arith.negf %505 : vector<8x128xf32>
    %507 = math.exp %506 : vector<8x128xf32>
    %cst_130 = arith.constant 1.000000e+00 : f32
    %508 = vector.broadcast %cst_130 : f32 to vector<8x128xf32>
    %509 = arith.addf %508, %507 : vector<8x128xf32>
    %510 = arith.divf %508, %509 : vector<8x128xf32>
    %511 = vector.extract_strided_slice %498 {offsets = [0, 128], sizes = [8, 128], strides = [1, 1]} : vector<8x384xf32> to vector<8x128xf32>
    %512 = vector.extract_strided_slice %502 {offsets = [0, 128], sizes = [8, 128], strides = [1, 1]} : vector<8x384xf32> to vector<8x128xf32>
    %513 = arith.addf %511, %512 : vector<8x128xf32>
    %514 = arith.negf %513 : vector<8x128xf32>
    %515 = math.exp %514 : vector<8x128xf32>
    %cst_131 = arith.constant 1.000000e+00 : f32
    %516 = vector.broadcast %cst_131 : f32 to vector<8x128xf32>
    %517 = arith.addf %516, %515 : vector<8x128xf32>
    %518 = arith.divf %516, %517 : vector<8x128xf32>
    %519 = vector.extract_strided_slice %498 {offsets = [0, 256], sizes = [8, 128], strides = [1, 1]} : vector<8x384xf32> to vector<8x128xf32>
    %520 = vector.extract_strided_slice %502 {offsets = [0, 256], sizes = [8, 128], strides = [1, 1]} : vector<8x384xf32> to vector<8x128xf32>
    %521 = arith.mulf %510, %520 : vector<8x128xf32>
    %522 = arith.addf %519, %521 : vector<8x128xf32>
    %523 = math.tanh %522 : vector<8x128xf32>
    %cst_132 = arith.constant 1.000000e+00 : f32
    %524 = vector.broadcast %cst_132 : f32 to vector<8x128xf32>
    %525 = arith.subf %524, %518 : vector<8x128xf32>
    %526 = arith.mulf %525, %523 : vector<8x128xf32>
    %527 = arith.mulf %518, %497 : vector<8x128xf32>
    %528 = arith.addf %526, %527 : vector<8x128xf32>
    %529 = arith.truncf %528 : vector<8x128xf32> to vector<8x128xbf16>
    %c0_133 = arith.constant 0 : index
    %c0_134 = arith.constant 0 : index
    %530 = vector.load %arg10[%c0_133, %c0_134] : memref<128x128xbf16, #tpu.memory_space<vmem>>, vector<128x128xbf16>
    %cst_135 = arith.constant dense<0.000000e+00> : vector<8x128xf32>
    %531 = tpu.matmul %529, %530, %cst_135 {dimension_numbers = #tpu.dot_dimension_numbers<[1], [0], [0], [1], [0, 0, 1, 1], [], []>} : vector<8x128xbf16>, vector<128x128xbf16>, vector<8x128xf32> -> vector<8x128xf32>
    %c0_136 = arith.constant 0 : index
    %c0_137 = arith.constant 0 : index
    %532 = vector.load %arg11[%c0_136, %c0_137] : memref<1x128xf32, #tpu.memory_space<vmem>>, vector<1x128xf32>
    %533 = vector.broadcast %532 : vector<1x128xf32> to vector<8x128xf32>
    %534 = arith.addf %531, %533 : vector<8x128xf32>
    %c0_138 = arith.constant 0 : index
    %c0_139 = arith.constant 0 : index
    %535 = vector.load %arg12[%c0_138, %c0_139] : memref<8x128xf32, #tpu.memory_space<vmem>>, vector<8x128xf32>
    tpu.vector_store %arg12[%c0_138, %c0_139], %534 {strides = array<i32>} : memref<8x128xf32, #tpu.memory_space<vmem>>, vector<8x128xf32>,
    return
  }
}

</mosaic_0001>

<bundles_post_ra>
// kernel: gru_forward.1
= control target key start
LH: loop header
LB: loop body
LE: loop exit
PB: predicated region body
PF: predicated region fallthrough
CT: control target
= control target key end

     0   :  { %v5181_v1 = vmov 0.0   ;;  %v5179_v2 = vmov 0   ;;  %vm3687_vm0 = vmmov 0   ;;  %v94_v32 = vlaneseq  ;;  %s5166_s2 = inlined_call_operand.vmem [shape: bf16[128,384], index: 2, kind: input, shape index: {}]   ;;  %s5167_s0 = inlined_call_operand.vmem [shape: f32[64,1], index: 0, kind: input, shape index: {}]   ;;  %s5168_s9 = inlined_call_operand.vmem [shape: f32[2,8,128], index: 9, kind: input, shape index: {}]   ;;  %s5169_s1 = inlined_call_operand.vmem [shape: f32[1,384], index: 1, kind: input, shape index: {}]   ;;  %s5170_s3 = inlined_call_operand.vmem [shape: f32[1,384], index: 3, kind: input, shape index: {}]   ;;  %s5171_s4 = inlined_call_operand.vmem [shape: f32[1,384], index: 4, kind: input, shape index: {}]   ;;  %s5172_s5 = inlined_call_operand.vmem [shape: bf16[128,384], index: 5, kind: input, shape index: {}]   ;;  %s5173_s6 = inlined_call_operand.vmem [shape: bf16[128,384], index: 6, kind: input, shape index: {}]   ;;  %s5174_s7 = inlined_call_operand.vmem [shape: f32[1,384], index: 7, kind: input, shape index: {}]   ;;  %s5175_s8 = inlined_call_operand.vmem [shape: f32[1,384], index: 8, kind: input, shape index: {}]   ;;  %s5176_s10 = inlined_call_operand.vmem [shape: bf16[128,128], index: 10, kind: input, shape index: {}]   ;;  %s5177_s11 = inlined_call_operand.vmem [shape: f32[1,128], index: 11, kind: input, shape index: {}]   ;;  %s5178_s12 = inlined_call_operand.vmem [shape: f32[8,128], index: 12, kind: output, shape index: {}]  }
   0x1   :  { %v3756_v0 = vld [vmem:[%s5166_s2 + $0x4] ss:$12 sps:$4 sm:$0xff]   ;;  %3004 = vmatprep.subr.bf16.mxu1 %v5181_v1  ;;  %410 = vmatprep.mubr.bf16.mxu0 %v5179_v2  ;;  %v3763_v3 = vld [vmem:[%s5166_s2] ss:$12 sps:$4 sm:$0xff]   ;;  %v3772_v4 = vld [vmem:[%s5166_s2 + $0x1c] ss:$12 sps:$4 sm:$0xff]  }
   0x2   :  { %3020 = vmatprep.mubr.msk.bf16.mxu1 %vm3687_vm0, %v5181_v1  ;;  %3371 = vset.pattern.permute.xlu0 %v5179_v2  ;;  %v3779_v5 = vld [vmem:[%s5166_s2 + $0x18] ss:$12 sps:$4 sm:$0xff]   ;;  %v3785_v6 = vld [vmem:[%s5166_s2 + $0x34] ss:$12 sps:$4 sm:$0xff]   ;;  %v3791_v7 = vld [vmem:[%s5166_s2 + $0x30] ss:$12 sps:$4 sm:$0xff]  }
   0x3   :  { %378 = vmatprep.subr.bf16.mxu0 %v3756_v0  ;;  %3372 = vset.pattern.permute.xlu1 %v5179_v2  ;;  %v3797_v8 = vld [vmem:[%s5166_s2 + $0x4c] ss:$12 sps:$4 sm:$0xff]   ;;  %v3802_v9 = vld [vmem:[%s5166_s2 + $0x8] ss:$12 sps:$4 sm:$0xff]   ;;  %v3814_v11 = vld [vmem:[%s5166_s2 + $0x64] ss:$12 sps:$4 sm:$0xff]  }
   0x4   :  { %379 = vmatpush1.bf16.msra.mxu0 %v3763_v3  ;;  %v3808_v10 = vld [vmem:[%s5166_s2 + $0x48] ss:$12 sps:$4 sm:$0xff]   ;;  %3005 = vmatpush3.bf16.msra.mxu1 %v3802_v9  ;;  %v3820_v12 = vld [vmem:[%s5166_s2 + $0x20] ss:$12 sps:$4 sm:$0xff]   ;;  %v3839_v15 = vld [vmem:[%s5166_s2 + $0x38] ss:$12 sps:$4 sm:$0xff]  }
   0x5   :  { %380 = vmatprep.subr.bf16.mxu0 %v3772_v4  ;;  %3006 = vmatprep.subr.bf16.mxu1 %v5181_v1  ;;  %v3826_v13 = vld [vmem:[%s5166_s2 + $0x60] ss:$12 sps:$4 sm:$0xff]   ;;  %v3832_v14 = vld [vmem:[%s5166_s2 + $0x7c] ss:$12 sps:$4 sm:$0xff]   ;;  %v3846_v16 = vld [vmem:[%s5166_s2 + $0x78] ss:$12 sps:$4 sm:$0xff]  }
   0x6   :  { %v44_v17 = vld [vmem:[%s5167_s0] sm:$0xff]  ;;  %v3861_v19 = vld [vmem:[%s5166_s2 + $0x50] ss:$12 sps:$4 sm:$0xff]   ;;  %v45_v20 = vld [vmem:[%s5167_s0 + $0x8] sm:$0xff]  ;;  %v95_v33 = vshrl.u32 %v94_v32, 7 }
   0x7   :  { %v3855_v18 = vld [vmem:[%s5166_s2 + $0x94] ss:$12 sps:$4 sm:$0xff]   ;;  %55 = vperm.xlu0 %3371, %v44_v17   ;;  %v3871_v21 = vld [vmem:[%s5166_s2 + $0x90] ss:$12 sps:$4 sm:$0xff]   ;;  %v3877_v22 = vld [vmem:[%s5166_s2 + $0xac] ss:$12 sps:$4 sm:$0xff]  }
   0x8   :  { %381 = vmatpush1.bf16.msra.mxu0 %v3779_v5  ;;  %3007 = vmatpush3.bf16.msra.mxu1 %v3820_v12  ;;  %v3883_v23 = vld [vmem:[%s5166_s2 + $0x68] ss:$12 sps:$4 sm:$0xff]   ;;  %v48_v24 = vld [vmem:[%s5167_s0 + $0x20] sm:$0xff]  ;;  %v3928_v31 = vld [vmem:[%s5166_s2 + $0xb0] ss:$12 sps:$4 sm:$0xff]   ;;  %v3966_v34 = vsub.s32 0, %v95_v33 }
   0x9   :  { %382 = vmatprep.subr.bf16.mxu0 %v3785_v6  ;;  %3008 = vmatprep.subr.bf16.mxu1 %v5181_v1  ;;  %v3893_v25 = vld [vmem:[%s5166_s2 + $0xa8] ss:$12 sps:$4 sm:$0xff]   ;;  %v3898_v26 = vld [vmem:[%s5168_s9] sm:$0xff]  ;;  %v3971_v36 = vsub.s32 1, %v95_v33 }
   0xa   :  { %v3905_v27 = vld [vmem:[%s5166_s2 + $0x80] ss:$12 sps:$4 sm:$0xff]   ;;  %v233_v28 = vpack.c.bf16 %v3898_v26, %v3898_v26  ;;  %v50_v29 = vld [vmem:[%s5167_s0 + $0x30] sm:$0xff]  ;;  %v3918_v30 = vld [vmem:[%s5166_s2 + $0x98] ss:$12 sps:$4 sm:$0xff]  }
   0xb   :  { %60 = vperm.xlu0 %3371, %v45_v20   ;;  %v52_v35 = vld [vmem:[%s5169_s1] sm:$0x7] }
   0xc   :  { %383 = vmatpush1.bf16.msra.mxu0 %v3791_v7  ;;  %3009 = vmatpush3.bf16.msra.mxu1 %v3839_v15  ;;  %v3974_v37 = vrot.slane %v52_v35, %v3966_v34  ;;  %v42_v38 = vld [vmem:[%s5170_s3] sm:$0x7]  ;;  %v3980_v39 = vrot.slane %v52_v35, %v3971_v36 }
   0xd   :  { %384 = vmatprep.subr.bf16.mxu0 %v3797_v8  ;;  %3010 = vmatprep.subr.bf16.mxu1 %v5181_v1  ;;  %v43_v41 = vld [vmem:[%s5171_s4] sm:$0x7]  ;;  %v3987_v43 = vrot.slane %v42_v38, %v3966_v34  ;;  %v3994_v46 = vrot.slane %v42_v38, %v3971_v36 }
   0xe   :  { %v3990_v44 = vrot.slane %v43_v41, %v3966_v34  ;;  %v3997_v47 = vrot.slane %v43_v41, %v3971_v36 }
   0xf   :  { %75 = vperm.xlu0 %3371, %v48_v24   ;;  %v4003_v24 = vsub.s32 2, %v95_v33 }
  0x10   :  { %385 = vmatpush1.bf16.msra.mxu0 %v3808_v10  ;;  %3011 = vmatpush3.bf16.msra.mxu1 %v3861_v19 }
  0x11   :  { %386 = vmatprep.subr.bf16.mxu0 %v3814_v11  ;;  %3012 = vmatprep.subr.bf16.mxu1 %v5181_v1 }
  0x13   :  { %85 = vperm.xlu0 %3371, %v50_v29   ;;  %v4009_v29 = vrot.slane %v43_v41, %v4003_v24 }
  0x14   :  { %387 = vmatpush1.bf16.msra.mxu0 %v3826_v13  ;;  %3013 = vmatpush3.bf16.msra.mxu1 %v3883_v23 }
  0x15   :  { %388 = vmatprep.subr.bf16.mxu0 %v3832_v14  ;;  %3014 = vmatprep.subr.bf16.mxu1 %v5181_v1 }
  0x18   :  { %389 = vmatpush1.bf16.msra.mxu0 %v3846_v16  ;;  %3015 = vmatpush3.bf16.msra.mxu1 %v3905_v27 }
  0x19   :  { %390 = vmatprep.subr.bf16.mxu0 %v3855_v18  ;;  %3016 = vmatprep.subr.bf16.mxu1 %v5181_v1 }
  0x1c   :  { %391 = vmatpush1.bf16.msra.mxu0 %v3871_v21  ;;  %3017 = vmatpush3.bf16.msra.mxu1 %v3918_v30 }
  0x1d   :  { %392 = vmatprep.subr.bf16.mxu0 %v3877_v22  ;;  %3018 = vmatprep.subr.bf16.mxu1 %v5181_v1 }
  0x20   :  { %393 = vmatpush1.bf16.msra.mxu0 %v3893_v25  ;;  %3019 = vmatpush3.bf16.msra.mxu1 %v3928_v31 }
  0x21   :  { %485 = vmatprep.subr.bf16.mxu0 %v3756_v0  ;;  %3024 = vmatprep.subr.bf16.mxu1 %v5181_v1 }
  0x23   :  { %411 = vmatmul.mubr.bf16.vlgmr.msra.gmra.mrb[0].mxu0 %v233_v28  ;;  %3021 = vmatmul.mubr.bf16.vlgmr.msra.gmra.mrb[0].mxu1 %v233_v28  ;;  %v4006_v28 = vrot.slane %v52_v35, %v4003_v24 }
  0x24   :  { %486 = vmatpush1.bf16.msra.mxu0 %v3763_v3  ;;  %517 = vmatprep.mubr.bf16.mxu0 %v5179_v2 }
  0x25   :  { %487 = vmatprep.subr.bf16.mxu0 %v3772_v4  ;;  %3025 = vmatpush3.bf16.msra.mxu1 %v3802_v9 }
  0x26   :  { %3026 = vmatprep.subr.bf16.mxu1 %v5181_v1  ;;  %3040 = vmatprep.mubr.msk.bf16.mxu1 %vm3687_vm0, %v5181_v1 }
  0x28   :  { %488 = vmatpush1.bf16.msra.mxu0 %v3779_v5 }
  0x29   :  { %489 = vmatprep.subr.bf16.mxu0 %v3785_v6  ;;  %3027 = vmatpush3.bf16.msra.mxu1 %v3820_v12 }
  0x2a   :  { %3028 = vmatprep.subr.bf16.mxu1 %v5181_v1 }
  0x2c   :  { %490 = vmatpush1.bf16.msra.mxu0 %v3791_v7 }
  0x2d   :  { %491 = vmatprep.subr.bf16.mxu0 %v3797_v8  ;;  %3029 = vmatpush3.bf16.msra.mxu1 %v3839_v15 }
  0x2e   :  { %3030 = vmatprep.subr.bf16.mxu1 %v5181_v1 }
  0x30   :  { %492 = vmatpush1.bf16.msra.mxu0 %v3808_v10 }
  0x31   :  { %493 = vmatprep.subr.bf16.mxu0 %v3814_v11  ;;  %3031 = vmatpush3.bf16.msra.mxu1 %v3861_v19 }
  0x32   :  { %3032 = vmatprep.subr.bf16.mxu1 %v5181_v1 }
  0x34   :  { %494 = vmatpush1.bf16.msra.mxu0 %v3826_v13 }
  0x35   :  { %495 = vmatprep.subr.bf16.mxu0 %v3832_v14  ;;  %3033 = vmatpush3.bf16.msra.mxu1 %v3883_v23 }
  0x36   :  { %3034 = vmatprep.subr.bf16.mxu1 %v5181_v1 }
  0x38   :  { %496 = vmatpush1.bf16.msra.mxu0 %v3846_v16 }
  0x39   :  { %497 = vmatprep.subr.bf16.mxu0 %v3855_v18  ;;  %3035 = vmatpush3.bf16.msra.mxu1 %v3905_v27 }
  0x3a   :  { %3036 = vmatprep.subr.bf16.mxu1 %v5181_v1 }
  0x3c   :  { %498 = vmatpush1.bf16.msra.mxu0 %v3871_v21 }
  0x3d   :  { %499 = vmatprep.subr.bf16.mxu0 %v3877_v22  ;;  %3037 = vmatpush3.bf16.msra.mxu1 %v3918_v30 }
  0x3e   :  { %3038 = vmatprep.subr.bf16.mxu1 %v5181_v1 }
  0x40   :  { %500 = vmatpush1.bf16.msra.mxu0 %v3893_v25 }
  0x41   :  { %592 = vmatprep.subr.bf16.mxu0 %v3756_v0  ;;  %3039 = vmatpush3.bf16.msra.mxu1 %v3928_v31 }
  0x42   :  { %3044 = vmatprep.subr.bf16.mxu1 %v5181_v1 }
  0x86   :  { %v56_v40 = vpop.permute.xlu0 %55 }
  0x87   :  { %v109_v42 = vmul.f32 %v3974_v37, %v56_v40  ;;  %v110_v45 = vmul.f32 %v3980_v39, %v56_v40 }
  0x89   :  { %v149_v48 = vadd.f32 %v3987_v43, %v109_v42  ;;  %v150_v52 = vadd.f32 %v3994_v46, %v110_v45  ;;  %v4012_v42 = vrot.slane %v42_v38, %v4003_v24  ;;  %v111_v45 = vmul.f32 %v4006_v28, %v56_v40 }
  0x8b   :  { %v151_v33 = vadd.f32 %v4012_v42, %v111_v45 }
  0xf6   :  { %v412_v49 = vpop.f32.mrb[0].mxu0  ;;  %v453_v59 = vpop.f32.mrb[0].mxu1 }
  0xf7   :  { %v413_v50 = vadd.f32 %v412_v49, %v3990_v44  ;;  %v414_v51 = vpop.f32.mrb[1].mxu0  ;;  %v3022_v61 = vpop.f32.mrb[1].mxu1  ;;  %v454_v49 = vadd.f32 %v453_v59, %v4009_v29 }
  0xf8   :  { %v415_v53 = vadd.f32 %v414_v51, %v3997_v47  ;;  %v416_v54 = vpop.f32.mrb[2].mxu0  ;;  %v456_v62 = vpop.f32.mrb[2].mxu1 }
  0xf9   :  { %v459_v55 = vadd.f32 %v413_v50, %v149_v48  ;;  %v417_v56 = vpop.f32.mrb[3].mxu0  ;;  %v3023_v63 = vpop.f32.mrb[3].mxu1 }
  0xfa   :  { %v466_v58 = vadd.f32 %v415_v53, %v150_v52  ;;  %v47_v56 = vld [vmem:[%s5167_s0 + $0x18] sm:$0xff]  ;;  %v61_v59 = vpop.permute.xlu0 %60 }
  0xfb   :  { %v2749_v57 = vmul.f32 -1.442695, %v459_v55  ;;  %v113_v61 = vmul.f32 %v3980_v39, %v61_v59 }
  0xfc   :  { %v2750_v60 = vmul.f32 -1.442695, %v466_v58  ;;  %v51_v58 = vld [vmem:[%s5167_s0 + $0x38] sm:$0xff] }
  0xfd   :  { %3477 = vpow2.f32 %v2749_v57  ;;  %v49_v57 = vld [vmem:[%s5167_s0 + $0x28] sm:$0xff] }
  0xfe   :  { %3479 = vpow2.f32 %v2750_v60  ;;  %v112_v60 = vmul.f32 %v3974_v37, %v61_v59 }
 0x107   :  { %v3478_v17 = vpop.eup %3477 }
 0x108   :  { %v463_v20 = vadd.f32 1.0, %v3478_v17  ;;  %v3480_v32 = vpop.eup %3479  ;;  %v152_v17 = vadd.f32 %v3987_v43, %v112_v60 }
 0x109   :  { %v470_v48 = vadd.f32 1.0, %v3480_v32 }
 0x10a   :  { %3481 = vrcp.f32 %v463_v20 }
 0x10b   :  { %3483 = vrcp.f32 %v470_v48 }
 0x114   :  { %v3482_v50 = vpop.eup %3481 }
 0x115   :  { %v473_v51 = vmul.f32 %v3482_v50, %v454_v49  ;;  %v3484_v35 = vpop.eup %3483 }
 0x116   :  { %v476_v53 = vsub.f32 1.0, %v3484_v35  ;;  %v478_v55 = vmul.f32 %v3484_v35, %v3898_v26  ;;  %v46_v26 = vld [vmem:[%s5167_s0 + $0x10] sm:$0xff]  ;;  %v153_v35 = vadd.f32 %v3994_v46, %v113_v61 }
 0x117   :  { %v474_v52 = vadd.f32 %v473_v51, %v151_v33  ;;  %65 = vperm.xlu1 %3372, %v46_v26  }
 0x119   :  { %3485 = vtanh.f32 %v474_v52 }
 0x11b   :  { %70 = vperm.xlu1 %3372, %v47_v56   ;;  %v114_v56 = vmul.f32 %v4006_v28, %v61_v59 }
 0x11f   :  { %80 = vperm.xlu1 %3372, %v49_v57  }
 0x123   :  { %v3486_v41 = vpop.eup %3485  ;;  %90 = vperm.xlu1 %3372, %v51_v58  }
 0x124   :  { %v477_v54 = vmul.f32 %v3486_v41, %v476_v53 }
 0x126   :  { %v4018_v38 = vadd.f32 %v478_v55, %v477_v54 }
 0x128   :  { %v484_v40 = vpack.c.bf16 %v4018_v38, %v4018_v38 }
 0x12a   :  { %518 = vmatmul.mubr.bf16.vlgmr.msra.gmra.mrb[4].mxu0 %v484_v40  ;;  %3041 = vmatmul.mubr.bf16.vlgmr.msra.gmra.mrb[4].mxu1 %v484_v40 }
 0x12b   :  { %593 = vmatpush1.bf16.msra.mxu0 %v3763_v3  ;;  %3045 = vmatpush3.bf16.msra.mxu1 %v3802_v9 }
 0x12c   :  { %594 = vmatprep.subr.bf16.mxu0 %v3772_v4  ;;  %3046 = vmatprep.subr.bf16.mxu1 %v5181_v1 }
 0x12d   :  { %624 = vmatprep.mubr.bf16.mxu0 %v5179_v2  ;;  %3060 = vmatprep.mubr.msk.bf16.mxu1 %vm3687_vm0, %v5181_v1 }
 0x12f   :  { %595 = vmatpush1.bf16.msra.mxu0 %v3779_v5  ;;  %3047 = vmatpush3.bf16.msra.mxu1 %v3820_v12 }
 0x130   :  { %596 = vmatprep.subr.bf16.mxu0 %v3785_v6  ;;  %3048 = vmatprep.subr.bf16.mxu1 %v5181_v1 }
 0x133   :  { %597 = vmatpush1.bf16.msra.mxu0 %v3791_v7  ;;  %3049 = vmatpush3.bf16.msra.mxu1 %v3839_v15 }
 0x134   :  { %598 = vmatprep.subr.bf16.mxu0 %v3797_v8  ;;  %3050 = vmatprep.subr.bf16.mxu1 %v5181_v1 }
 0x137   :  { %599 = vmatpush1.bf16.msra.mxu0 %v3808_v10  ;;  %3051 = vmatpush3.bf16.msra.mxu1 %v3861_v19 }
 0x138   :  { %600 = vmatprep.subr.bf16.mxu0 %v3814_v11  ;;  %3052 = vmatprep.subr.bf16.mxu1 %v5181_v1 }
 0x13b   :  { %601 = vmatpush1.bf16.msra.mxu0 %v3826_v13  ;;  %3053 = vmatpush3.bf16.msra.mxu1 %v3883_v23 }
 0x13c   :  { %602 = vmatprep.subr.bf16.mxu0 %v3832_v14  ;;  %3054 = vmatprep.subr.bf16.mxu1 %v5181_v1 }
 0x13f   :  { %603 = vmatpush1.bf16.msra.mxu0 %v3846_v16  ;;  %3055 = vmatpush3.bf16.msra.mxu1 %v3905_v27 }
 0x140   :  { %604 = vmatprep.subr.bf16.mxu0 %v3855_v18  ;;  %3056 = vmatprep.subr.bf16.mxu1 %v5181_v1 }
 0x143   :  { %605 = vmatpush1.bf16.msra.mxu0 %v3871_v21  ;;  %3057 = vmatpush3.bf16.msra.mxu1 %v3918_v30 }
 0x144   :  { %606 = vmatprep.subr.bf16.mxu0 %v3877_v22  ;;  %3058 = vmatprep.subr.bf16.mxu1 %v5181_v1 }
 0x147   :  { %607 = vmatpush1.bf16.msra.mxu0 %v3893_v25  ;;  %3059 = vmatpush3.bf16.msra.mxu1 %v3928_v31 }
 0x148   :  { %699 = vmatprep.subr.bf16.mxu0 %v3756_v0  ;;  %3064 = vmatprep.subr.bf16.mxu1 %v5181_v1 }
 0x1fd   :  { %v519_v62 = vpop.f32.mrb[4].mxu0  ;;  %v560_v63 = vpop.f32.mrb[4].mxu1 }
 0x1fe   :  { %v520_v20 = vadd.f32 %v519_v62, %v3990_v44  ;;  %v521_v32 = vpop.f32.mrb[5].mxu0  ;;  %v3042_v45 = vpop.f32.mrb[5].mxu1  ;;  %v561_v58 = vadd.f32 %v560_v63, %v4009_v29  ;;  %v154_v62 = vadd.f32 %v4012_v42, %v114_v56 }
 0x1ff   :  { %v522_v48 = vadd.f32 %v521_v32, %v3997_v47  ;;  %v523_v49 = vpop.f32.mrb[6].mxu0  ;;  %v563_v50 = vpop.f32.mrb[6].mxu1 }
 0x200   :  { %v566_v33 = vadd.f32 %v520_v20, %v152_v17  ;;  %v524_v51 = vpop.f32.mrb[7].mxu0  ;;  %v3043_v52 = vpop.f32.mrb[7].mxu1 }
 0x201   :  { %v573_v41 = vadd.f32 %v522_v48, %v153_v35  ;;  %v66_v63 = vpop.permute.xlu1 %65 }
 0x202   :  { %v2751_v53 = vmul.f32 -1.442695, %v566_v33  ;;  %v115_v33 = vmul.f32 %v3974_v37, %v66_v63  ;;  %v116_v51 = vmul.f32 %v3980_v39, %v66_v63 }
 0x203   :  { %v2752_v54 = vmul.f32 -1.442695, %v573_v41 }
 0x204   :  { %3487 = vpow2.f32 %v2751_v53  ;;  %v155_v52 = vadd.f32 %v3987_v43, %v115_v33 }
 0x205   :  { %3489 = vpow2.f32 %v2752_v54 }
 0x20e   :  { %v3488_v55 = vpop.eup %3487 }
 0x20f   :  { %v570_v40 = vadd.f32 1.0, %v3488_v55  ;;  %v3490_v26 = vpop.eup %3489 }
 0x210   :  { %v577_v57 = vadd.f32 1.0, %v3490_v26 }
 0x211   :  { %3491 = vrcp.f32 %v570_v40  ;;  %v156_v40 = vadd.f32 %v3994_v46, %v116_v51 }
 0x212   :  { %3493 = vrcp.f32 %v577_v57 }
 0x21b   :  { %v3492_v60 = vpop.eup %3491 }
 0x21c   :  { %v580_v17 = vmul.f32 %v3492_v60, %v561_v58  ;;  %v3494_v20 = vpop.eup %3493 }
 0x21d   :  { %v583_v32 = vsub.f32 1.0, %v3494_v20  ;;  %v585_v49 = vmul.f32 %v3494_v20, %v4018_v38 }
 0x21e   :  { %v581_v61 = vadd.f32 %v580_v17, %v154_v62 }
 0x220   :  { %3495 = vtanh.f32 %v581_v61 }
 0x22a   :  { %v3496_v45 = vpop.eup %3495 }
 0x22b   :  { %v584_v48 = vmul.f32 %v3496_v45, %v583_v32 }
 0x22d   :  { %v4079_v50 = vadd.f32 %v585_v49, %v584_v48  ;;  %v117_v49 = vmul.f32 %v4006_v28, %v66_v63 }
 0x22f   :  { %v591_v59 = vpack.c.bf16 %v4079_v50, %v4079_v50 }
 0x231   :  { %625 = vmatmul.mubr.bf16.vlgmr.msra.gmra.mrb[8].mxu0 %v591_v59  ;;  %3061 = vmatmul.mubr.bf16.vlgmr.msra.gmra.mrb[8].mxu1 %v591_v59 }
 0x232   :  { %700 = vmatpush1.bf16.msra.mxu0 %v3763_v3  ;;  %3065 = vmatpush3.bf16.msra.mxu1 %v3802_v9 }
 0x233   :  { %701 = vmatprep.subr.bf16.mxu0 %v3772_v4  ;;  %3066 = vmatprep.subr.bf16.mxu1 %v5181_v1 }
 0x234   :  { %731 = vmatprep.mubr.bf16.mxu0 %v5179_v2  ;;  %3080 = vmatprep.mubr.msk.bf16.mxu1 %vm3687_vm0, %v5181_v1 }
 0x236   :  { %702 = vmatpush1.bf16.msra.mxu0 %v3779_v5  ;;  %3067 = vmatpush3.bf16.msra.mxu1 %v3820_v12 }
 0x237   :  { %703 = vmatprep.subr.bf16.mxu0 %v3785_v6  ;;  %3068 = vmatprep.subr.bf16.mxu1 %v5181_v1 }
 0x23a   :  { %704 = vmatpush1.bf16.msra.mxu0 %v3791_v7  ;;  %3069 = vmatpush3.bf16.msra.mxu1 %v3839_v15 }
 0x23b   :  { %705 = vmatprep.subr.bf16.mxu0 %v3797_v8  ;;  %3070 = vmatprep.subr.bf16.mxu1 %v5181_v1 }
 0x23e   :  { %706 = vmatpush1.bf16.msra.mxu0 %v3808_v10  ;;  %3071 = vmatpush3.bf16.msra.mxu1 %v3861_v19 }
 0x23f   :  { %707 = vmatprep.subr.bf16.mxu0 %v3814_v11  ;;  %3072 = vmatprep.subr.bf16.mxu1 %v5181_v1 }
 0x242   :  { %708 = vmatpush1.bf16.msra.mxu0 %v3826_v13  ;;  %3073 = vmatpush3.bf16.msra.mxu1 %v3883_v23 }
 0x243   :  { %709 = vmatprep.subr.bf16.mxu0 %v3832_v14  ;;  %3074 = vmatprep.subr.bf16.mxu1 %v5181_v1 }
 0x246   :  { %710 = vmatpush1.bf16.msra.mxu0 %v3846_v16  ;;  %3075 = vmatpush3.bf16.msra.mxu1 %v3905_v27 }
 0x247   :  { %711 = vmatprep.subr.bf16.mxu0 %v3855_v18  ;;  %3076 = vmatprep.subr.bf16.mxu1 %v5181_v1 }
 0x24a   :  { %712 = vmatpush1.bf16.msra.mxu0 %v3871_v21  ;;  %3077 = vmatpush3.bf16.msra.mxu1 %v3918_v30 }
 0x24b   :  { %713 = vmatprep.subr.bf16.mxu0 %v3877_v22  ;;  %3078 = vmatprep.subr.bf16.mxu1 %v5181_v1 }
 0x24e   :  { %714 = vmatpush1.bf16.msra.mxu0 %v3893_v25  ;;  %3079 = vmatpush3.bf16.msra.mxu1 %v3928_v31 }
 0x24f   :  { %806 = vmatprep.subr.bf16.mxu0 %v3756_v0  ;;  %3084 = vmatprep.subr.bf16.mxu1 %v5181_v1 }
 0x304   :  { %v626_v35 = vpop.f32.mrb[8].mxu0  ;;  %v667_v53 = vpop.f32.mrb[8].mxu1 }
 0x305   :  { %v627_v41 = vadd.f32 %v626_v35, %v3990_v44  ;;  %v628_v54 = vpop.f32.mrb[9].mxu0  ;;  %v3062_v55 = vpop.f32.mrb[9].mxu1  ;;  %v668_v33 = vadd.f32 %v667_v53, %v4009_v29  ;;  %v157_v35 = vadd.f32 %v4012_v42, %v117_v49 }
 0x306   :  { %v629_v26 = vadd.f32 %v628_v54, %v3997_v47  ;;  %v630_v56 = vpop.f32.mrb[10].mxu0  ;;  %v670_v57 = vpop.f32.mrb[10].mxu1 }
 0x307   :  { %v673_v58 = vadd.f32 %v627_v41, %v155_v52  ;;  %v631_v60 = vpop.f32.mrb[11].mxu0  ;;  %v3063_v62 = vpop.f32.mrb[11].mxu1 }
 0x308   :  { %v680_v61 = vadd.f32 %v629_v26, %v156_v40  ;;  %v71_v53 = vpop.permute.xlu1 %70 }
 0x309   :  { %v2753_v17 = vmul.f32 -1.442695, %v673_v58  ;;  %v118_v58 = vmul.f32 %v3974_v37, %v71_v53  ;;  %v119_v60 = vmul.f32 %v3980_v39, %v71_v53 }
 0x30a   :  { %v2754_v20 = vmul.f32 -1.442695, %v680_v61 }
 0x30b   :  { %3497 = vpow2.f32 %v2753_v17  ;;  %v158_v61 = vadd.f32 %v3987_v43, %v118_v58 }
 0x30c   :  { %3499 = vpow2.f32 %v2754_v20 }
 0x315   :  { %v3498_v32 = vpop.eup %3497 }
 0x316   :  { %v677_v45 = vadd.f32 1.0, %v3498_v32  ;;  %v3500_v48 = vpop.eup %3499 }
 0x317   :  { %v684_v59 = vadd.f32 1.0, %v3500_v48 }
 0x318   :  { %3501 = vrcp.f32 %v677_v45 }
 0x319   :  { %3503 = vrcp.f32 %v684_v59 }
 0x322   :  { %v3502_v51 = vpop.eup %3501 }
 0x323   :  { %v687_v52 = vmul.f32 %v3502_v51, %v668_v33  ;;  %v3504_v54 = vpop.eup %3503 }
 0x324   :  { %v690_v55 = vsub.f32 1.0, %v3504_v54  ;;  %v692_v56 = vmul.f32 %v3504_v54, %v4079_v50 }
 0x325   :  { %v688_v41 = vadd.f32 %v687_v52, %v157_v35  ;;  %v159_v52 = vadd.f32 %v3994_v46, %v119_v60 }
 0x327   :  { %3505 = vtanh.f32 %v688_v41 }
 0x331   :  { %v3506_v40 = vpop.eup %3505 }
 0x332   :  { %v691_v26 = vmul.f32 %v3506_v40, %v690_v55 }
 0x334   :  { %v4128_v57 = vadd.f32 %v692_v56, %v691_v26 }
 0x336   :  { %v698_v63 = vpack.c.bf16 %v4128_v57, %v4128_v57 }
 0x338   :  { %732 = vmatmul.mubr.bf16.vlgmr.msra.gmra.mrb[12].mxu0 %v698_v63  ;;  %3081 = vmatmul.mubr.bf16.vlgmr.msra.gmra.mrb[12].mxu1 %v698_v63  ;;  %v120_v63 = vmul.f32 %v4006_v28, %v71_v53 }
 0x339   :  { %807 = vmatpush1.bf16.msra.mxu0 %v3763_v3  ;;  %3085 = vmatpush3.bf16.msra.mxu1 %v3802_v9 }
 0x33a   :  { %808 = vmatprep.subr.bf16.mxu0 %v3772_v4  ;;  %3086 = vmatprep.subr.bf16.mxu1 %v5181_v1 }
 0x33b   :  { %838 = vmatprep.mubr.bf16.mxu0 %v5179_v2  ;;  %3100 = vmatprep.mubr.msk.bf16.mxu1 %vm3687_vm0, %v5181_v1 }
 0x33d   :  { %809 = vmatpush1.bf16.msra.mxu0 %v3779_v5  ;;  %3087 = vmatpush3.bf16.msra.mxu1 %v3820_v12 }
 0x33e   :  { %810 = vmatprep.subr.bf16.mxu0 %v3785_v6  ;;  %3088 = vmatprep.subr.bf16.mxu1 %v5181_v1 }
 0x341   :  { %811 = vmatpush1.bf16.msra.mxu0 %v3791_v7  ;;  %3089 = vmatpush3.bf16.msra.mxu1 %v3839_v15 }
 0x342   :  { %812 = vmatprep.subr.bf16.mxu0 %v3797_v8  ;;  %3090 = vmatprep.subr.bf16.mxu1 %v5181_v1 }
 0x345   :  { %813 = vmatpush1.bf16.msra.mxu0 %v3808_v10  ;;  %3091 = vmatpush3.bf16.msra.mxu1 %v3861_v19 }
 0x346   :  { %814 = vmatprep.subr.bf16.mxu0 %v3814_v11  ;;  %3092 = vmatprep.subr.bf16.mxu1 %v5181_v1 }
 0x349   :  { %815 = vmatpush1.bf16.msra.mxu0 %v3826_v13  ;;  %3093 = vmatpush3.bf16.msra.mxu1 %v3883_v23 }
 0x34a   :  { %816 = vmatprep.subr.bf16.mxu0 %v3832_v14  ;;  %3094 = vmatprep.subr.bf16.mxu1 %v5181_v1 }
 0x34d   :  { %817 = vmatpush1.bf16.msra.mxu0 %v3846_v16  ;;  %3095 = vmatpush3.bf16.msra.mxu1 %v3905_v27 }
 0x34e   :  { %818 = vmatprep.subr.bf16.mxu0 %v3855_v18  ;;  %3096 = vmatprep.subr.bf16.mxu1 %v5181_v1 }
 0x351   :  { %819 = vmatpush1.bf16.msra.mxu0 %v3871_v21  ;;  %3097 = vmatpush3.bf16.msra.mxu1 %v3918_v30 }
 0x352   :  { %820 = vmatprep.subr.bf16.mxu0 %v3877_v22  ;;  %3098 = vmatprep.subr.bf16.mxu1 %v5181_v1 }
 0x355   :  { %821 = vmatpush1.bf16.msra.mxu0 %v3893_v25  ;;  %3099 = vmatpush3.bf16.msra.mxu1 %v3928_v31 }
 0x356   :  { %913 = vmatprep.subr.bf16.mxu0 %v3756_v0  ;;  %3104 = vmatprep.subr.bf16.mxu1 %v5181_v1 }
 0x40b   :  { %v733_v62 = vpop.f32.mrb[12].mxu0  ;;  %v774_v17 = vpop.f32.mrb[12].mxu1 }
 0x40c   :  { %v734_v20 = vadd.f32 %v733_v62, %v3990_v44  ;;  %v735_v32 = vpop.f32.mrb[13].mxu0  ;;  %v3082_v45 = vpop.f32.mrb[13].mxu1  ;;  %v775_v62 = vadd.f32 %v774_v17, %v4009_v29 }
 0x40d   :  { %v736_v48 = vadd.f32 %v735_v32, %v3997_v47  ;;  %v737_v49 = vpop.f32.mrb[14].mxu0  ;;  %v777_v59 = vpop.f32.mrb[14].mxu1 }
 0x40e   :  { %v780_v33 = vadd.f32 %v734_v20, %v158_v61  ;;  %v738_v51 = vpop.f32.mrb[15].mxu0  ;;  %v3083_v35 = vpop.f32.mrb[15].mxu1  ;;  %v160_v61 = vadd.f32 %v4012_v42, %v120_v63 }
 0x40f   :  { %v787_v54 = vadd.f32 %v736_v48, %v159_v52 }
 0x410   :  { %v2755_v41 = vmul.f32 -1.442695, %v780_v33 }
 0x411   :  { %v2756_v55 = vmul.f32 -1.442695, %v787_v54 }
 0x412   :  { %3507 = vpow2.f32 %v2755_v41 }
 0x413   :  { %3509 = vpow2.f32 %v2756_v55 }
 0x41c   :  { %v3508_v40 = vpop.eup %3507 }
 0x41d   :  { %v784_v26 = vadd.f32 1.0, %v3508_v40  ;;  %v3510_v56 = vpop.eup %3509 }
 0x41e   :  { %v791_v58 = vadd.f32 1.0, %v3510_v56 }
 0x41f   :  { %3511 = vrcp.f32 %v784_v26 }
 0x420   :  { %3513 = vrcp.f32 %v791_v58 }
 0x429   :  { %v3512_v32 = vpop.eup %3511 }
 0x42a   :  { %v794_v20 = vmul.f32 %v3512_v32, %v775_v62  ;;  %v3514_v45 = vpop.eup %3513 }
 0x42b   :  { %v797_v48 = vsub.f32 1.0, %v3514_v45  ;;  %v799_v33 = vmul.f32 %v3514_v45, %v4128_v57 }
 0x42c   :  { %v795_v60 = vadd.f32 %v794_v20, %v160_v61 }
 0x42e   :  { %3515 = vtanh.f32 %v795_v60 }
 0x438   :  { %v3516_v49 = vpop.eup %3515 }
 0x439   :  { %v798_v59 = vmul.f32 %v3516_v49, %v797_v48 }
 0x43b   :  { %v4177_v51 = vadd.f32 %v799_v33, %v798_v59 }
 0x43d   :  { %v805_v53 = vpack.c.bf16 %v4177_v51, %v4177_v51 }
 0x43f   :  { %839 = vmatmul.mubr.bf16.vlgmr.msra.gmra.mrb[16].mxu0 %v805_v53  ;;  %3101 = vmatmul.mubr.bf16.vlgmr.msra.gmra.mrb[16].mxu1 %v805_v53 }
 0x440   :  { %914 = vmatpush1.bf16.msra.mxu0 %v3763_v3  ;;  %3105 = vmatpush3.bf16.msra.mxu1 %v3802_v9  ;;  %v76_v3 = vpop.permute.xlu0 %75 }
 0x441   :  { %915 = vmatprep.subr.bf16.mxu0 %v3772_v4  ;;  %3106 = vmatprep.subr.bf16.mxu1 %v5181_v1  ;;  %v121_v4 = vmul.f32 %v3974_v37, %v76_v3  ;;  %v123_v49 = vmul.f32 %v4006_v28, %v76_v3 }
 0x442   :  { %945 = vmatprep.mubr.bf16.mxu0 %v5179_v2  ;;  %3120 = vmatprep.mubr.msk.bf16.mxu1 %vm3687_vm0, %v5181_v1 }
 0x443   :  { %v161_v52 = vadd.f32 %v3987_v43, %v121_v4  ;;  %v163_v4 = vadd.f32 %v4012_v42, %v123_v49 }
 0x444   :  { %916 = vmatpush1.bf16.msra.mxu0 %v3779_v5  ;;  %3107 = vmatpush3.bf16.msra.mxu1 %v3820_v12  ;;  %v122_v5 = vmul.f32 %v3980_v39, %v76_v3 }
 0x445   :  { %917 = vmatprep.subr.bf16.mxu0 %v3785_v6  ;;  %3108 = vmatprep.subr.bf16.mxu1 %v5181_v1 }
 0x446   :  { %v162_v62 = vadd.f32 %v3994_v46, %v122_v5 }
 0x448   :  { %918 = vmatpush1.bf16.msra.mxu0 %v3791_v7  ;;  %3109 = vmatpush3.bf16.msra.mxu1 %v3839_v15 }
 0x449   :  { %919 = vmatprep.subr.bf16.mxu0 %v3797_v8  ;;  %3110 = vmatprep.subr.bf16.mxu1 %v5181_v1 }
 0x44c   :  { %920 = vmatpush1.bf16.msra.mxu0 %v3808_v10  ;;  %3111 = vmatpush3.bf16.msra.mxu1 %v3861_v19 }
 0x44d   :  { %921 = vmatprep.subr.bf16.mxu0 %v3814_v11  ;;  %3112 = vmatprep.subr.bf16.mxu1 %v5181_v1 }
 0x450   :  { %922 = vmatpush1.bf16.msra.mxu0 %v3826_v13  ;;  %3113 = vmatpush3.bf16.msra.mxu1 %v3883_v23 }
 0x451   :  { %923 = vmatprep.subr.bf16.mxu0 %v3832_v14  ;;  %3114 = vmatprep.subr.bf16.mxu1 %v5181_v1 }
 0x454   :  { %924 = vmatpush1.bf16.msra.mxu0 %v3846_v16  ;;  %3115 = vmatpush3.bf16.msra.mxu1 %v3905_v27 }
 0x455   :  { %925 = vmatprep.subr.bf16.mxu0 %v3855_v18  ;;  %3116 = vmatprep.subr.bf16.mxu1 %v5181_v1 }
 0x458   :  { %926 = vmatpush1.bf16.msra.mxu0 %v3871_v21  ;;  %3117 = vmatpush3.bf16.msra.mxu1 %v3918_v30 }
 0x459   :  { %927 = vmatprep.subr.bf16.mxu0 %v3877_v22  ;;  %3118 = vmatprep.subr.bf16.mxu1 %v5181_v1 }
 0x45c   :  { %928 = vmatpush1.bf16.msra.mxu0 %v3893_v25  ;;  %3119 = vmatpush3.bf16.msra.mxu1 %v3928_v31 }
 0x45d   :  { %1020 = vmatprep.subr.bf16.mxu0 %v3756_v0  ;;  %3124 = vmatprep.subr.bf16.mxu1 %v5181_v1 }
 0x512   :  { %v840_v17 = vpop.f32.mrb[16].mxu0  ;;  %v881_v35 = vpop.f32.mrb[16].mxu1 }
 0x513   :  { %v841_v41 = vadd.f32 %v840_v17, %v3990_v44  ;;  %v842_v54 = vpop.f32.mrb[17].mxu0  ;;  %v3102_v55 = vpop.f32.mrb[17].mxu1  ;;  %v882_v33 = vadd.f32 %v881_v35, %v4009_v29  ;;  %v4233_v35 = vld [vmem:[%s5166_s2] ss:$12 sps:$4 sm:$0xff]  }
 0x514   :  { %v843_v40 = vadd.f32 %v842_v54, %v3997_v47  ;;  %v844_v26 = vpop.f32.mrb[18].mxu0  ;;  %v884_v56 = vpop.f32.mrb[18].mxu1 }
 0x515   :  { %v887_v0 = vadd.f32 %v841_v41, %v161_v52  ;;  %v845_v63 = vpop.f32.mrb[19].mxu0  ;;  %v3103_v58 = vpop.f32.mrb[19].mxu1  ;;  %v4240_v56 = vld [vmem:[%s5166_s2 + $0x1c] ss:$12 sps:$4 sm:$0xff]  }
 0x516   :  { %v894_v61 = vadd.f32 %v843_v40, %v162_v62 }
 0x517   :  { %v2757_v32 = vmul.f32 -1.442695, %v887_v0  ;;  %v4250_v0 = vld [vmem:[%s5166_s2 + $0x18] ss:$12 sps:$4 sm:$0xff]  }
 0x518   :  { %v2758_v20 = vmul.f32 -1.442695, %v894_v61 }
 0x519   :  { %3517 = vpow2.f32 %v2757_v32 }
 0x51a   :  { %3519 = vpow2.f32 %v2758_v20 }
 0x523   :  { %v3518_v60 = vpop.eup %3517 }
 0x524   :  { %v891_v45 = vadd.f32 1.0, %v3518_v60  ;;  %v3520_v48 = vpop.eup %3519 }
 0x525   :  { %v898_v59 = vadd.f32 1.0, %v3520_v48 }
 0x526   :  { %3521 = vrcp.f32 %v891_v45 }
 0x527   :  { %3523 = vrcp.f32 %v898_v59 }
 0x530   :  { %v3522_v53 = vpop.eup %3521 }
 0x531   :  { %v901_v17 = vmul.f32 %v3522_v53, %v882_v33  ;;  %v3524_v52 = vpop.eup %3523 }
 0x532   :  { %v904_v41 = vsub.f32 1.0, %v3524_v52  ;;  %v906_v40 = vmul.f32 %v3524_v52, %v4177_v51 }
 0x533   :  { %v902_v5 = vadd.f32 %v901_v17, %v163_v4 }
 0x535   :  { %3525 = vtanh.f32 %v902_v5 }
 0x53f   :  { %v3526_v54 = vpop.eup %3525 }
 0x540   :  { %v905_v55 = vmul.f32 %v3526_v54, %v904_v41  ;;  %v3641_v41 = vld [vmem:[%s5166_s2 + $0x8] ss:$12 sps:$4 sm:$0xff]   ;;  %v3642_v54 = vld [vmem:[%s5166_s2 + $0x20] ss:$12 sps:$4 sm:$0xff]  }
 0x542   :  { %v4226_v26 = vadd.f32 %v906_v40, %v905_v55  ;;  %v3643_v55 = vld [vmem:[%s5166_s2 + $0x34] ss:$12 sps:$4 sm:$0xff]   ;;  %v3644_v40 = vld [vmem:[%s5166_s2 + $0x30] ss:$12 sps:$4 sm:$0xff]  }
 0x544   :  { %v912_v3 = vpack.c.bf16 %v4226_v26, %v4226_v26 }
 0x546   :  { %946 = vmatmul.mubr.bf16.vlgmr.msra.gmra.mrb[20].mxu0 %v912_v3  ;;  %3121 = vmatmul.mubr.bf16.vlgmr.msra.gmra.mrb[20].mxu1 %v912_v3  ;;  %v3645_v3 = vld [vmem:[%s5166_s2 + $0x38] ss:$12 sps:$4 sm:$0xff]  }
 0x547   :  { %1021 = vmatpush1.bf16.msra.mxu0 %v4233_v35  ;;  %3125 = vmatpush3.bf16.msra.mxu1 %v3802_v9 }
 0x548   :  { %1022 = vmatprep.subr.bf16.mxu0 %v4240_v56  ;;  %3126 = vmatprep.subr.bf16.mxu1 %v5181_v1 }
 0x549   :  { %1052 = vmatprep.mubr.bf16.mxu0 %v5179_v2  ;;  %3140 = vmatprep.mubr.msk.bf16.mxu1 %vm3687_vm0, %v5181_v1 }
 0x54b   :  { %1023 = vmatpush1.bf16.msra.mxu0 %v4250_v0  ;;  %3127 = vmatpush3.bf16.msra.mxu1 %v3820_v12 }
 0x54c   :  { %1024 = vmatprep.subr.bf16.mxu0 %v3785_v6  ;;  %3128 = vmatprep.subr.bf16.mxu1 %v5181_v1  ;;  %v3640_v6 = vld [vmem:[%s5166_s2 + $0x4] ss:$12 sps:$4 sm:$0xff]  }
 0x54f   :  { %1025 = vmatpush1.bf16.msra.mxu0 %v3791_v7  ;;  %3129 = vmatpush3.bf16.msra.mxu1 %v3839_v15  ;;  %v81_v7 = vpop.permute.xlu1 %80 }
 0x550   :  { %1026 = vmatprep.subr.bf16.mxu0 %v3797_v8  ;;  %3130 = vmatprep.subr.bf16.mxu1 %v5181_v1  ;;  %v124_v8 = vmul.f32 %v3974_v37, %v81_v7  ;;  %v125_v9 = vmul.f32 %v3980_v39, %v81_v7  ;;  %v126_v32 = vmul.f32 %v4006_v28, %v81_v7  ;;  %v3650_v7 = vld [vmem:[%s5166_s2 + $0x60] ss:$12 sps:$4 sm:$0xff]  }
 0x552   :  { %v164_v12 = vadd.f32 %v3987_v43, %v124_v8  ;;  %v166_v45 = vadd.f32 %v4012_v42, %v126_v32  ;;  %v3651_v8 = vld [vmem:[%s5166_s2 + $0x68] ss:$12 sps:$4 sm:$0xff]  }
 0x553   :  { %1027 = vmatpush1.bf16.msra.mxu0 %v3808_v10  ;;  %3131 = vmatpush3.bf16.msra.mxu1 %v3861_v19 }
 0x554   :  { %1028 = vmatprep.subr.bf16.mxu0 %v3814_v11  ;;  %3132 = vmatprep.subr.bf16.mxu1 %v5181_v1 }
 0x557   :  { %1029 = vmatpush1.bf16.msra.mxu0 %v3826_v13  ;;  %3133 = vmatpush3.bf16.msra.mxu1 %v3883_v23 }
 0x558   :  { %1030 = vmatprep.subr.bf16.mxu0 %v3832_v14  ;;  %3134 = vmatprep.subr.bf16.mxu1 %v5181_v1 }
 0x55b   :  { %1031 = vmatpush1.bf16.msra.mxu0 %v3846_v16  ;;  %3135 = vmatpush3.bf16.msra.mxu1 %v3905_v27 }
 0x55c   :  { %1032 = vmatprep.subr.bf16.mxu0 %v3855_v18  ;;  %3136 = vmatprep.subr.bf16.mxu1 %v5181_v1 }
 0x55f   :  { %1033 = vmatpush1.bf16.msra.mxu0 %v3871_v21  ;;  %3137 = vmatpush3.bf16.msra.mxu1 %v3918_v30 }
 0x560   :  { %1034 = vmatprep.subr.bf16.mxu0 %v3877_v22  ;;  %3138 = vmatprep.subr.bf16.mxu1 %v5181_v1 }
 0x563   :  { %1035 = vmatpush1.bf16.msra.mxu0 %v3893_v25  ;;  %3139 = vmatpush3.bf16.msra.mxu1 %v3928_v31  ;;  %v165_v25 = vadd.f32 %v3994_v46, %v125_v9  ;;  %v3652_v9 = vld [vmem:[%s5166_s2 + $0x7c] ss:$12 sps:$4 sm:$0xff]  }
 0x564   :  { %1127 = vmatprep.subr.bf16.mxu0 %v3640_v6  ;;  %3144 = vmatprep.subr.bf16.mxu1 %v5181_v1  ;;  %v3649_v6 = vld [vmem:[%s5166_s2 + $0x64] ss:$12 sps:$4 sm:$0xff]  }
 0x619   :  { %v947_v10 = vpop.f32.mrb[20].mxu0  ;;  %v988_v11 = vpop.f32.mrb[20].mxu1 }
 0x61a   :  { %v948_v13 = vadd.f32 %v947_v10, %v3990_v44  ;;  %v949_v14 = vpop.f32.mrb[21].mxu0  ;;  %v3122_v15 = vpop.f32.mrb[21].mxu1  ;;  %v989_v20 = vadd.f32 %v988_v11, %v4009_v29  ;;  %v3653_v10 = vld [vmem:[%s5166_s2 + $0x78] ss:$12 sps:$4 sm:$0xff]   ;;  %v3654_v11 = vld [vmem:[%s5166_s2 + $0x80] ss:$12 sps:$4 sm:$0xff]  }
 0x61b   :  { %v950_v16 = vadd.f32 %v949_v14, %v3997_v47  ;;  %v951_v18 = vpop.f32.mrb[22].mxu0  ;;  %v991_v19 = vpop.f32.mrb[22].mxu1  ;;  %v3657_v14 = vld [vmem:[%s5166_s2 + $0x98] ss:$12 sps:$4 sm:$0xff]  }
 0x61c   :  { %v994_v21 = vadd.f32 %v948_v13, %v164_v12  ;;  %v952_v22 = vpop.f32.mrb[23].mxu0  ;;  %v3123_v23 = vpop.f32.mrb[23].mxu1  ;;  %v3655_v12 = vld [vmem:[%s5166_s2 + $0x94] ss:$12 sps:$4 sm:$0xff]   ;;  %v3656_v13 = vld [vmem:[%s5166_s2 + $0x90] ss:$12 sps:$4 sm:$0xff]  }
 0x61d   :  { %v1001_v30 = vadd.f32 %v950_v16, %v165_v25  ;;  %v3658_v15 = vld [vmem:[%s5166_s2 + $0xac] ss:$12 sps:$4 sm:$0xff]   ;;  %v3659_v16 = vld [vmem:[%s5166_s2 + $0xa8] ss:$12 sps:$4 sm:$0xff]   ;;  %v3660_v18 = vld [vmem:[%s5166_s2 + $0xb0] ss:$12 sps:$4 sm:$0xff]   ;;  %v86_v22 = vpop.permute.xlu0 %85 }
 0x61e   :  { %v2759_v27 = vmul.f32 -1.442695, %v994_v21  ;;  %v3407_v19 = vld [vmem:[%s5172_s5 + $0x4] ss:$12 sps:$4 sm:$0xff]   ;;  %v3408_v21 = vld [vmem:[%s5172_s5 + $0x8] ss:$12 sps:$4 sm:$0xff]   ;;  %v127_v23 = vmul.f32 %v3974_v37, %v86_v22  ;;  %v128_v25 = vmul.f32 %v3980_v39, %v86_v22 }
 0x61f   :  { %v2760_v31 = vmul.f32 -1.442695, %v1001_v30 }
 0x620   :  { %3527 = vpow2.f32 %v2759_v27 }
 0x621   :  { %3529 = vpow2.f32 %v2760_v31  ;;  %v167_v31 = vadd.f32 %v3987_v43, %v127_v23  ;;  %v3423_v23 = vld [vmem:[%s5172_s5 + $0x64] ss:$12 sps:$4 sm:$0xff]  }
 0x62a   :  { %v3528_v63 = vpop.eup %3527 }
 0x62b   :  { %v998_v58 = vadd.f32 1.0, %v3528_v63  ;;  %v3530_v62 = vpop.eup %3529 }
 0x62c   :  { %v1005_v61 = vadd.f32 1.0, %v3530_v62 }
 0x62d   :  { %3531 = vrcp.f32 %v998_v58 }
 0x62e   :  { %3533 = vrcp.f32 %v1005_v61 }
 0x637   :  { %v3532_v60 = vpop.eup %3531 }
 0x638   :  { %v1008_v48 = vmul.f32 %v3532_v60, %v989_v20  ;;  %v3534_v59 = vpop.eup %3533 }
 0x639   :  { %v1011_v33 = vsub.f32 1.0, %v3534_v59  ;;  %v1013_v17 = vmul.f32 %v3534_v59, %v4226_v26 }
 0x63a   :  { %v1009_v49 = vadd.f32 %v1008_v48, %v166_v45 }
 0x63c   :  { %3535 = vtanh.f32 %v1009_v49  ;;  %v168_v49 = vadd.f32 %v3994_v46, %v128_v25  ;;  %v3424_v25 = vld [vmem:[%s5172_s5 + $0x68] ss:$12 sps:$4 sm:$0xff]  }
 0x646   :  { %v3536_v53 = vpop.eup %3535 }
 0x647   :  { %v1012_v4 = vmul.f32 %v3536_v53, %v1011_v33 }
 0x649   :  { %v4292_v5 = vadd.f32 %v1013_v17, %v1012_v4 }
 0x64b   :  { %v1019_v52 = vpack.c.bf16 %v4292_v5, %v4292_v5 }
 0x64d   :  { %1053 = vmatmul.mubr.bf16.vlgmr.msra.gmra.mrb[24].mxu0 %v1019_v52  ;;  %3141 = vmatmul.mubr.bf16.vlgmr.msra.gmra.mrb[24].mxu1 %v1019_v52 }
 0x64e   :  { %1128 = vmatpush1.bf16.msra.mxu0 %v4233_v35  ;;  %3145 = vmatpush3.bf16.msra.mxu1 %v3641_v41  ;;  %v3646_v35 = vld [vmem:[%s5166_s2 + $0x4c] ss:$12 sps:$4 sm:$0xff]   ;;  %v129_v41 = vmul.f32 %v4006_v28, %v86_v22  ;;  %v3417_v22 = vld [vmem:[%s5172_s5 + $0x48] ss:$12 sps:$4 sm:$0xff]  }
 0x64f   :  { %1129 = vmatprep.subr.bf16.mxu0 %v4240_v56  ;;  %3146 = vmatprep.subr.bf16.mxu1 %v5181_v1  ;;  %v3647_v56 = vld [vmem:[%s5166_s2 + $0x48] ss:$12 sps:$4 sm:$0xff]  }
 0x650   :  { %1159 = vmatprep.mubr.bf16.mxu0 %v5179_v2  ;;  %3160 = vmatprep.mubr.msk.bf16.mxu1 %vm3687_vm0, %v5181_v1 }
 0x652   :  { %1130 = vmatpush1.bf16.msra.mxu0 %v4250_v0  ;;  %3147 = vmatpush3.bf16.msra.mxu1 %v3642_v54  ;;  %v3648_v0 = vld [vmem:[%s5166_s2 + $0x50] ss:$12 sps:$4 sm:$0xff]  }
 0x653   :  { %1131 = vmatprep.subr.bf16.mxu0 %v3643_v55  ;;  %3148 = vmatprep.subr.bf16.mxu1 %v5181_v1 }
 0x656   :  { %1132 = vmatpush1.bf16.msra.mxu0 %v3644_v40  ;;  %3149 = vmatpush3.bf16.msra.mxu1 %v3645_v3  ;;  %v169_v3 = vadd.f32 %v4012_v42, %v129_v41  ;;  %v4534_v41 = vld [vmem:[%s5173_s6 + $0x78] ss:$12 sps:$4 sm:$0xff]  }
 0x657   :  { %1133 = vmatprep.subr.bf16.mxu0 %v3646_v35  ;;  %3150 = vmatprep.subr.bf16.mxu1 %v5181_v1 }
 0x65a   :  { %1134 = vmatpush1.bf16.msra.mxu0 %v3647_v56  ;;  %3151 = vmatpush3.bf16.msra.mxu1 %v3648_v0 }
 0x65b   :  { %1135 = vmatprep.subr.bf16.mxu0 %v3649_v6  ;;  %3152 = vmatprep.subr.bf16.mxu1 %v5181_v1 }
 0x65e   :  { %1136 = vmatpush1.bf16.msra.mxu0 %v3650_v7  ;;  %3153 = vmatpush3.bf16.msra.mxu1 %v3651_v8 }
 0x65f   :  { %1137 = vmatprep.subr.bf16.mxu0 %v3652_v9  ;;  %3154 = vmatprep.subr.bf16.mxu1 %v5181_v1 }
 0x662   :  { %1138 = vmatpush1.bf16.msra.mxu0 %v3653_v10  ;;  %3155 = vmatpush3.bf16.msra.mxu1 %v3654_v11  ;;  %v3405_v11 = vld [vmem:[%s5172_s5] ss:$12 sps:$4 sm:$0xff]  }
 0x663   :  { %1139 = vmatprep.subr.bf16.mxu0 %v3655_v12  ;;  %3156 = vmatprep.subr.bf16.mxu1 %v5181_v1 }
 0x666   :  { %1140 = vmatpush1.bf16.msra.mxu0 %v3656_v13  ;;  %3157 = vmatpush3.bf16.msra.mxu1 %v3657_v14  ;;  %v3411_v13 = vld [vmem:[%s5172_s5 + $0x1c] ss:$12 sps:$4 sm:$0xff]   ;;  %v3412_v14 = vld [vmem:[%s5172_s5 + $0x20] ss:$12 sps:$4 sm:$0xff]  }
 0x667   :  { %1141 = vmatprep.subr.bf16.mxu0 %v3658_v15  ;;  %3158 = vmatprep.subr.bf16.mxu1 %v5181_v1  ;;  %v1240_v15 = vpack.c.bf16 %v4079_v50, %v4018_v38  ;;  %v3413_v38 = vld [vmem:[%s5172_s5 + $0x30] ss:$12 sps:$4 sm:$0xff]   ;;  %v3419_v50 = vld [vmem:[%s5172_s5 + $0x4c] ss:$12 sps:$4 sm:$0xff]  }
 0x66a   :  { %1142 = vmatpush1.bf16.msra.mxu0 %v3659_v16  ;;  %3159 = vmatpush3.bf16.msra.mxu1 %v3660_v18  ;;  %v3409_v16 = vld [vmem:[%s5172_s5 + $0x18] ss:$12 sps:$4 sm:$0xff]   ;;  %v3415_v18 = vld [vmem:[%s5172_s5 + $0x34] ss:$12 sps:$4 sm:$0xff]  }
 0x66b   :  { %1420 = vmatprep.subr.bf16.mxu0 %v3407_v19  ;;  %3164 = vmatprep.subr.bf16.mxu1 %v3408_v21  ;;  %v3416_v19 = vld [vmem:[%s5172_s5 + $0x38] ss:$12 sps:$4 sm:$0xff]  }
 0x720   :  { %v1054_v27 = vpop.f32.mrb[24].mxu0  ;;  %v1095_v30 = vpop.f32.mrb[24].mxu1 }
 0x721   :  { %v1055_v63 = vadd.f32 %v1054_v27, %v3990_v44  ;;  %v1056_v58 = vpop.f32.mrb[25].mxu0  ;;  %v3142_v62 = vpop.f32.mrb[25].mxu1  ;;  %v1096_v55 = vadd.f32 %v1095_v30, %v4009_v29  ;;  %v3421_v27 = vld [vmem:[%s5172_s5 + $0x60] ss:$12 sps:$4 sm:$0xff]   ;;  %v3427_v30 = vld [vmem:[%s5172_s5 + $0x7c] ss:$12 sps:$4 sm:$0xff]  }
 0x722   :  { %v1057_v32 = vadd.f32 %v1056_v58, %v3997_v47  ;;  %v1058_v61 = vpop.f32.mrb[26].mxu0  ;;  %v1098_v20 = vpop.f32.mrb[26].mxu1  ;;  %v3431_v58 = vld [vmem:[%s5172_s5 + $0x94] ss:$12 sps:$4 sm:$0xff]   ;;  %v3432_v62 = vld [vmem:[%s5172_s5 + $0x98] ss:$12 sps:$4 sm:$0xff]  }
 0x723   :  { %v1101_v60 = vadd.f32 %v1055_v63, %v167_v31  ;;  %v1059_v45 = vpop.f32.mrb[27].mxu0  ;;  %v3143_v48 = vpop.f32.mrb[27].mxu1  ;;  %v3428_v31 = vld [vmem:[%s5172_s5 + $0x80] ss:$12 sps:$4 sm:$0xff]   ;;  %v3425_v63 = vld [vmem:[%s5172_s5 + $0x78] ss:$12 sps:$4 sm:$0xff]  }
 0x724   :  { %v1108_v33 = vadd.f32 %v1057_v32, %v168_v49  ;;  %v3429_v32 = vld [vmem:[%s5172_s5 + $0x90] ss:$12 sps:$4 sm:$0xff]   ;;  %v3435_v61 = vld [vmem:[%s5172_s5 + $0xac] ss:$12 sps:$4 sm:$0xff]   ;;  %v1241_v45 = vpack.c.bf16 %v4177_v51, %v4128_v57  ;;  %v1242_v48 = vpack.c.bf16 %v4292_v5, %v4226_v26  ;;  %v4493_v49 = vld [vmem:[%s5173_s6 + $0x34] ss:$12 sps:$4 sm:$0xff]  }
 0x725   :  { %v2761_v59 = vmul.f32 -1.442695, %v1101_v60  ;;  %v3436_v20 = vld [vmem:[%s5172_s5 + $0xb0] ss:$12 sps:$4 sm:$0xff]   ;;  %v3433_v60 = vld [vmem:[%s5172_s5 + $0xa8] ss:$12 sps:$4 sm:$0xff]  }
 0x726   :  { %v2762_v53 = vmul.f32 -1.442695, %v1108_v33  ;;  %v4469_v57 = vld [vmem:[%s5173_s6 + $0x4] ss:$12 sps:$4 sm:$0xff]   ;;  %v4474_v51 = vld [vmem:[%s5173_s6] ss:$12 sps:$4 sm:$0xff]  }
 0x727   :  { %3537 = vpow2.f32 %v2761_v59  ;;  %v4481_v26 = vld [vmem:[%s5173_s6 + $0x1c] ss:$12 sps:$4 sm:$0xff]   ;;  %v4505_v33 = vld [vmem:[%s5173_s6 + $0x4c] ss:$12 sps:$4 sm:$0xff]  }
 0x728   :  { %3539 = vpow2.f32 %v2762_v53  ;;  %v4498_v59 = vld [vmem:[%s5173_s6 + $0x30] ss:$12 sps:$4 sm:$0xff]   ;;  %v4510_v53 = vld [vmem:[%s5173_s6 + $0x48] ss:$12 sps:$4 sm:$0xff]  }
 0x731   :  { %v3538_v4 = vpop.eup %3537 }
 0x732   :  { %v1105_v17 = vadd.f32 1.0, %v3538_v4  ;;  %v3540_v52 = vpop.eup %3539  ;;  %v4517_v4 = vld [vmem:[%s5173_s6 + $0x64] ss:$12 sps:$4 sm:$0xff]  }
 0x733   :  { %v1112_v54 = vadd.f32 1.0, %v3540_v52  ;;  %v4529_v52 = vld [vmem:[%s5173_s6 + $0x7c] ss:$12 sps:$4 sm:$0xff]  }
 0x734   :  { %3541 = vrcp.f32 %v1105_v17  ;;  %v4522_v17 = vld [vmem:[%s5173_s6 + $0x60] ss:$12 sps:$4 sm:$0xff]  }
 0x735   :  { %3543 = vrcp.f32 %v1112_v54  ;;  %v4541_v54 = vld [vmem:[%s5173_s6 + $0x94] ss:$12 sps:$4 sm:$0xff]  }
 0x73e   :  { %v3542_v40 = vpop.eup %3541 }
 0x73f   :  { %v1115_v35 = vmul.f32 %v3542_v40, %v1096_v55  ;;  %v3544_v0 = vpop.eup %3543  ;;  %v4546_v55 = vld [vmem:[%s5173_s6 + $0x90] ss:$12 sps:$4 sm:$0xff]   ;;  %v4551_v40 = vld [vmem:[%s5173_s6 + $0x8] ss:$12 sps:$4 sm:$0xff]  }
 0x740   :  { %v1118_v6 = vsub.f32 1.0, %v3544_v0  ;;  %v1120_v9 = vmul.f32 %v3544_v0, %v4292_v5  ;;  %v4486_v5 = vld [vmem:[%s5173_s6 + $0x18] ss:$12 sps:$4 sm:$0xff]  }
 0x741   :  { %v1116_v56 = vadd.f32 %v1115_v35, %v169_v3  ;;  %v4556_v3 = vld [vmem:[%s5173_s6 + $0xac] ss:$12 sps:$4 sm:$0xff]   ;;  %v4564_v35 = vld [vmem:[%s5173_s6 + $0xa8] ss:$12 sps:$4 sm:$0xff]  }
 0x742   :  { %v4580_v0 = vld [vmem:[%s5173_s6 + $0x38] ss:$12 sps:$4 sm:$0xff]  }
 0x743   :  { %3545 = vtanh.f32 %v1116_v56  ;;  %v4569_v56 = vld [vmem:[%s5173_s6 + $0x20] ss:$12 sps:$4 sm:$0xff]  }
 0x74d   :  { %v3546_v7 = vpop.eup %3545 }
 0x74e   :  { %v1119_v8 = vmul.f32 %v3546_v7, %v1118_v6  ;;  %v4586_v6 = vld [vmem:[%s5173_s6 + $0x50] ss:$12 sps:$4 sm:$0xff]   ;;  %v4593_v7 = vld [vmem:[%s5173_s6 + $0x68] ss:$12 sps:$4 sm:$0xff]  }
 0x750   :  { %v4385_v10 = vadd.f32 %v1120_v9, %v1119_v8  ;;  %v4600_v8 = vld [vmem:[%s5173_s6 + $0x80] ss:$12 sps:$4 sm:$0xff]   ;;  %v4607_v9 = vld [vmem:[%s5173_s6 + $0x98] ss:$12 sps:$4 sm:$0xff]  }
 0x752   :  { %v1126_v12 = vpack.c.bf16 %v4385_v10, %v4385_v10 }
 0x754   :  { %1160 = vmatmul.mubr.bf16.vlgmr.msra.gmra.mrb[28].mxu0 %v1126_v12  ;;  %3161 = vmatmul.mubr.bf16.vlgmr.msra.gmra.mrb[28].mxu1 %v1126_v12  ;;  %v91_v12 = vpop.permute.xlu1 %90 }
 0x755   :  { %1421 = vmatpush1.bf16.msra.mxu0 %v3405_v11  ;;  %3165 = vmatpush3.bf16.msra.mxu1 %v3408_v21  ;;  %v3420_v21 = vld [vmem:[%s5172_s5 + $0x50] ss:$12 sps:$4 sm:$0xff]  }
 0x756   :  { %3180 = vmatprep.mubr.bf16.mxu1 %v1240_v15  ;;  %1422 = vmatprep.subr.bf16.mxu0 %v3411_v13  ;;  %v4614_v11 = vld [vmem:[%s5173_s6 + $0xb0] ss:$12 sps:$4 sm:$0xff]   ;;  %v130_v13 = vmul.f32 %v3974_v37, %v91_v12 }
 0x757   :  { %3166 = vmatprep.subr.bf16.mxu1 %v3412_v14  ;;  %1452 = vmatprep.mubr.bf16.mxu0 %v5179_v2 }
 0x759   :  { %1423 = vmatpush1.bf16.msra.mxu0 %v3409_v16  ;;  %3167 = vmatpush3.bf16.msra.mxu1 %v3412_v14  ;;  %v131_v14 = vmul.f32 %v3980_v39, %v91_v12 }
 0x75a   :  { %1424 = vmatprep.subr.bf16.mxu0 %v3415_v18  ;;  %3168 = vmatprep.subr.bf16.mxu1 %v3416_v19  ;;  %v170_v18 = vadd.f32 %v3987_v43, %v130_v13 }
 0x75d   :  { %1425 = vmatpush1.bf16.msra.mxu0 %v3413_v38  ;;  %3169 = vmatpush3.bf16.msra.mxu1 %v3416_v19 }
 0x75e   :  { %1426 = vmatprep.subr.bf16.mxu0 %v3419_v50  ;;  %3170 = vmatprep.subr.bf16.mxu1 %v3420_v21 }
 0x761   :  { %1427 = vmatpush1.bf16.msra.mxu0 %v3417_v22  ;;  %3171 = vmatpush3.bf16.msra.mxu1 %v3420_v21 }
 0x762   :  { %1428 = vmatprep.subr.bf16.mxu0 %v3423_v23  ;;  %3172 = vmatprep.subr.bf16.mxu1 %v3424_v25 }
 0x765   :  { %1429 = vmatpush1.bf16.msra.mxu0 %v3421_v27  ;;  %3173 = vmatpush3.bf16.msra.mxu1 %v3424_v25 }
 0x766   :  { %1430 = vmatprep.subr.bf16.mxu0 %v3427_v30  ;;  %3174 = vmatprep.subr.bf16.mxu1 %v3428_v31 }
 0x769   :  { %1431 = vmatpush1.bf16.msra.mxu0 %v3425_v63  ;;  %3175 = vmatpush3.bf16.msra.mxu1 %v3428_v31  ;;  %v171_v31 = vadd.f32 %v3994_v46, %v131_v14 }
 0x76a   :  { %1432 = vmatprep.subr.bf16.mxu0 %v3431_v58  ;;  %3176 = vmatprep.subr.bf16.mxu1 %v3432_v62 }
 0x76d   :  { %1433 = vmatpush1.bf16.msra.mxu0 %v3429_v32  ;;  %3177 = vmatpush3.bf16.msra.mxu1 %v3432_v62  ;;  %v132_v62 = vmul.f32 %v4006_v28, %v91_v12 }
 0x76e   :  { %1434 = vmatprep.subr.bf16.mxu0 %v3435_v61  ;;  %3178 = vmatprep.subr.bf16.mxu1 %v3436_v20 }
 0x771   :  { %1435 = vmatpush1.bf16.msra.mxu0 %v3433_v60  ;;  %3179 = vmatpush3.bf16.msra.mxu1 %v3436_v20  ;;  %v172_v20 = vadd.f32 %v4012_v42, %v132_v62 }
 0x772   :  { %3188 = vmatprep.subr.bf16.mxu1 %v5181_v1  ;;  %1764 = vmatprep.subr.bf16.mxu0 %v4469_v57 }
 0x774   :  { %1453 = vmatmul.mubr.bf16.vlgmr.msra.gmra.mrb[32].mxu0 %v1240_v15  ;;  %3181 = vmatmul.mubr.bf16.vlgmr.msra.gmra.mrb[32].mxu1 %v1241_v45 }
 0x775   :  { %3184 = vmatprep.mubr.bf16.mxu1 %v1242_v48  ;;  %1462 = vmatprep.mubr.bf16.mxu0 %v5179_v2 }
 0x776   :  { %1765 = vmatpush1.bf16.msra.mxu0 %v4474_v51  ;;  %3189 = vmatpush3.bf16.msra.mxu1 %v4551_v40 }
 0x777   :  { %1766 = vmatprep.subr.bf16.mxu0 %v4481_v26  ;;  %3190 = vmatprep.subr.bf16.mxu1 %v5181_v1 }
 0x77a   :  { %1767 = vmatpush1.bf16.msra.mxu0 %v4486_v5  ;;  %3191 = vmatpush3.bf16.msra.mxu1 %v4569_v56 }
 0x77b   :  { %1768 = vmatprep.subr.bf16.mxu0 %v4493_v49  ;;  %3192 = vmatprep.subr.bf16.mxu1 %v5181_v1 }
 0x77c   :  { %1463 = vmatmul.mubr.bf16.gmra.mrb[36].mxu0 %v1241_v45 }
 0x77d   :  { %1472 = vmatprep.mubr.bf16.mxu0 %v5179_v2 }
 0x77e   :  { %1769 = vmatpush1.bf16.msra.mxu0 %v4498_v59  ;;  %3193 = vmatpush3.bf16.msra.mxu1 %v4580_v0 }
 0x77f   :  { %1770 = vmatprep.subr.bf16.mxu0 %v4505_v33  ;;  %3194 = vmatprep.subr.bf16.mxu1 %v5181_v1 }
 0x782   :  { %1771 = vmatpush1.bf16.msra.mxu0 %v4510_v53  ;;  %3195 = vmatpush3.bf16.msra.mxu1 %v4586_v6 }
 0x783   :  { %1772 = vmatprep.subr.bf16.mxu0 %v4517_v4  ;;  %3196 = vmatprep.subr.bf16.mxu1 %v5181_v1 }
 0x784   :  { %1473 = vmatmul.mubr.bf16.gmra.mrb[40].mxu0 %v1242_v48 }
 0x785   :  { %1482 = vmatprep.mubr.bf16.mxu0 %v5179_v2 }
 0x786   :  { %1773 = vmatpush1.bf16.msra.mxu0 %v4522_v17  ;;  %3197 = vmatpush3.bf16.msra.mxu1 %v4593_v7 }
 0x787   :  { %1774 = vmatprep.subr.bf16.mxu0 %v4529_v52  ;;  %3198 = vmatprep.subr.bf16.mxu1 %v5181_v1 }
 0x78a   :  { %1775 = vmatpush1.bf16.msra.mxu0 %v4534_v41  ;;  %3199 = vmatpush3.bf16.msra.mxu1 %v4600_v8 }
 0x78b   :  { %1776 = vmatprep.subr.bf16.mxu0 %v4541_v54  ;;  %3200 = vmatprep.subr.bf16.mxu1 %v5181_v1 }
 0x78e   :  { %1777 = vmatpush1.bf16.msra.mxu0 %v4546_v55  ;;  %3201 = vmatpush3.bf16.msra.mxu1 %v4607_v9 }
 0x78f   :  { %1778 = vmatprep.subr.bf16.mxu0 %v4556_v3  ;;  %3202 = vmatprep.subr.bf16.mxu1 %v5181_v1 }
 0x792   :  { %1779 = vmatpush1.bf16.msra.mxu0 %v4564_v35  ;;  %3203 = vmatpush3.bf16.msra.mxu1 %v4614_v11 }
 0x793   :  { %1870 = vmatprep.subr.bf16.mxu0 %v4469_v57  ;;  %3208 = vmatprep.subr.bf16.mxu1 %v5181_v1 }
 0x827   :  { %v1161_v15 = vpop.f32.mrb[28].mxu0  ;;  %v1202_v16 = vpop.f32.mrb[28].mxu1 }
 0x828   :  { %v1162_v19 = vadd.f32 %v1161_v15, %v3990_v44  ;;  %v1163_v38 = vpop.f32.mrb[29].mxu0  ;;  %v3162_v50 = vpop.f32.mrb[29].mxu1 }
 0x829   :  { %v1164_v21 = vadd.f32 %v1163_v38, %v3997_v47  ;;  %v1165_v22 = vpop.f32.mrb[30].mxu0  ;;  %v1205_v23 = vpop.f32.mrb[30].mxu1  ;;  %v1203_v47 = vadd.f32 %v1202_v16, %v4009_v29 }
 0x82a   :  { %v1208_v25 = vadd.f32 %v1162_v19, %v170_v18  ;;  %v1166_v27 = vpop.f32.mrb[31].mxu0  ;;  %v3163_v30 = vpop.f32.mrb[31].mxu1 }
 0x82b   :  { %v1215_v63 = vadd.f32 %v1164_v21, %v171_v31 }
 0x82c   :  { %v2763_v37 = vmul.f32 -1.442695, %v1208_v25 }
 0x82d   :  { %v2764_v39 = vmul.f32 -1.442695, %v1215_v63 }
 0x82e   :  { %3547 = vpow2.f32 %v2763_v37 }
 0x82f   :  { %3549 = vpow2.f32 %v2764_v39  ;;  %v4665_v39 = vld [vmem:[%s5168_s9 + $0x8] sm:$0xff] }
 0x838   :  { %v3548_v58 = vpop.eup %3547 }
 0x839   :  { %v1212_v43 = vadd.f32 1.0, %v3548_v58  ;;  %v3550_v44 = vpop.eup %3549  ;;  %v1619_v58 = vpack.c.bf16 %v4665_v39, %v4665_v39 }
 0x83a   :  { %v1219_v32 = vadd.f32 1.0, %v3550_v44 }
 0x83b   :  { %3551 = vrcp.f32 %v1212_v43 }
 0x83c   :  { %3553 = vrcp.f32 %v1219_v32  ;;  %v1230_v32 = vld [vmem:[%s5174_s7] sm:$0x7] }
 0x845   :  { %v3552_v61 = vpop.eup %3551 }
 0x846   :  { %v1222_v60 = vmul.f32 %v3552_v61, %v1203_v47  ;;  %v3554_v16 = vpop.eup %3553 }
 0x847   :  { %v4628_v46 = vpop.f32.mrb[32].mxu0  ;;  %v4630_v45 = vpop.f32.mrb[32].mxu1  ;;  %v1225_v50 = vsub.f32 1.0, %v3554_v16  ;;  %v1227_v23 = vmul.f32 %v3554_v16, %v4385_v10  ;;  %v4730_v16 = vrot.slane %v1230_v32, %v3966_v34 }
 0x848   :  { %v1223_v48 = vadd.f32 %v1222_v60, %v172_v20  ;;  %v4632_v13 = vpop.f32.mrb[33].mxu0  ;;  %v4634_v14 = vpop.f32.mrb[33].mxu1  ;;  %v1231_v20 = vld [vmem:[%s5175_s8] sm:$0x7] }
 0x849   :  { %v4636_v15 = vpop.f32.mrb[34].mxu0  ;;  %v4638_v28 = vpop.f32.mrb[34].mxu1 }
 0x84a   :  { %3555 = vtanh.f32 %v1223_v48  ;;  %v4640_v29 = vpop.f32.mrb[35].mxu0  ;;  %v4642_v12 = vpop.f32.mrb[35].mxu1 }
 0x84f   :  { %v4644_v42 = vpop.f32.mrb[36].mxu0 }
 0x850   :  { %v4646_v18 = vpop.f32.mrb[37].mxu0 }
 0x851   :  { %v4648_v19 = vpop.f32.mrb[38].mxu0 }
 0x852   :  { %v4650_v38 = vpop.f32.mrb[39].mxu0 }
 0x854   :  { %v3556_v21 = vpop.eup %3555 }
 0x855   :  { %v1226_v22 = vmul.f32 %v3556_v21, %v1225_v50  ;;  %v4733_v50 = vrot.slane %v1231_v20, %v3966_v34  ;;  %v4736_v21 = vrot.slane %v1230_v32, %v3971_v36 }
 0x857   :  { %v4653_v25 = vpop.f32.mrb[40].mxu0  ;;  %v1228_v27 = vadd.f32 %v1227_v23, %v1226_v22  ;;  %v4739_v22 = vrot.slane %v1231_v20, %v3971_v36 }
 0x858   :  { %v4655_v30 = vpop.f32.mrb[41].mxu0 }
 0x859   :  { %v4657_v31 = vpop.f32.mrb[42].mxu0  ;;  %v1243_v37 = vpack.c.bf16 %v1228_v27, %v4385_v10 }
 0x85a   :  { %5183 = vst [vmem:[#allocation4_spill] sm:$0xff] %v4657_v31  ;;  %v4660_v63 = vpop.f32.mrb[43].mxu0 }
 0x85b   :  { %5184 = vst [vmem:[#allocation5_spill] sm:$0xff] %v4660_v63  ;;  %1483 = vmatmul.mubr.bf16.gmra.mrb[44].mxu0 %v1243_v37  ;;  %3185 = vmatmul.mubr.bf16.gmra.mrb[36].mxu1 %v1243_v37  ;;  %v1455_v37 = vadd.f32 %v4628_v46, %v4730_v16 }
 0x85c   :  { %1796 = vmatprep.mubr.bf16.mxu0 %v5179_v2  ;;  %3204 = vmatprep.mubr.msk.bf16.mxu1 %vm3687_vm0, %v5181_v1 }
 0x863   :  { %1797 = vmatmul.mubr.bf16.vlgmr.msra.gmra.mrb[48].mxu0 %v1619_v58  ;;  %3205 = vmatmul.mubr.bf16.vlgmr.msra.gmra.mrb[40].mxu1 %v1619_v58 }
 0x864   :  { %1871 = vmatpush1.bf16.msra.mxu0 %v4474_v51  ;;  %3209 = vmatpush3.bf16.msra.mxu1 %v4551_v40 }
 0x865   :  { %1872 = vmatprep.subr.bf16.mxu0 %v4481_v26  ;;  %3210 = vmatprep.subr.bf16.mxu1 %v5181_v1 }
 0x866   :  { %1902 = vmatprep.mubr.bf16.mxu0 %v5179_v2  ;;  %3224 = vmatprep.mubr.msk.bf16.mxu1 %vm3687_vm0, %v5181_v1 }
 0x868   :  { %1873 = vmatpush1.bf16.msra.mxu0 %v4486_v5  ;;  %3211 = vmatpush3.bf16.msra.mxu1 %v4569_v56 }
 0x869   :  { %1874 = vmatprep.subr.bf16.mxu0 %v4493_v49  ;;  %3212 = vmatprep.subr.bf16.mxu1 %v5181_v1 }
 0x86c   :  { %1875 = vmatpush1.bf16.msra.mxu0 %v4498_v59  ;;  %3213 = vmatpush3.bf16.msra.mxu1 %v4580_v0 }
 0x86d   :  { %1876 = vmatprep.subr.bf16.mxu0 %v4505_v33  ;;  %3214 = vmatprep.subr.bf16.mxu1 %v5181_v1 }
 0x870   :  { %1877 = vmatpush1.bf16.msra.mxu0 %v4510_v53  ;;  %3215 = vmatpush3.bf16.msra.mxu1 %v4586_v6 }
 0x871   :  { %1878 = vmatprep.subr.bf16.mxu0 %v4517_v4  ;;  %3216 = vmatprep.subr.bf16.mxu1 %v5181_v1 }
 0x874   :  { %1879 = vmatpush1.bf16.msra.mxu0 %v4522_v17  ;;  %3217 = vmatpush3.bf16.msra.mxu1 %v4593_v7 }
 0x875   :  { %1880 = vmatprep.subr.bf16.mxu0 %v4529_v52  ;;  %3218 = vmatprep.subr.bf16.mxu1 %v5181_v1 }
 0x878   :  { %1881 = vmatpush1.bf16.msra.mxu0 %v4534_v41  ;;  %3219 = vmatpush3.bf16.msra.mxu1 %v4600_v8 }
 0x879   :  { %1882 = vmatprep.subr.bf16.mxu0 %v4541_v54  ;;  %3220 = vmatprep.subr.bf16.mxu1 %v5181_v1 }
 0x87c   :  { %1883 = vmatpush1.bf16.msra.mxu0 %v4546_v55  ;;  %3221 = vmatpush3.bf16.msra.mxu1 %v4607_v9 }
 0x87d   :  { %1884 = vmatprep.subr.bf16.mxu0 %v4556_v3  ;;  %3222 = vmatprep.subr.bf16.mxu1 %v5181_v1 }
 0x880   :  { %1885 = vmatpush1.bf16.msra.mxu0 %v4564_v35  ;;  %3223 = vmatpush3.bf16.msra.mxu1 %v4614_v11 }
 0x881   :  { %1976 = vmatprep.subr.bf16.mxu0 %v4469_v57  ;;  %3228 = vmatprep.subr.bf16.mxu1 %v5181_v1 }
 0x92e   :  { %v4707_v10 = vpop.f32.mrb[44].mxu0  ;;  %v4709_v43 = vpop.f32.mrb[36].mxu1 }
 0x92f   :  { %5185 = vst [vmem:[#allocation6_spill] sm:$0xff] %v4707_v10  ;;  %5186 = vst [vmem:[#allocation7_spill] sm:$0xff] %v4709_v43  ;;  %v4711_v44 = vpop.f32.mrb[45].mxu0  ;;  %v4713_v62 = vpop.f32.mrb[37].mxu1 }
 0x930   :  { %5187 = vst [vmem:[#allocation8_spill] sm:$0xff] %v4711_v44  ;;  %v4718_v47 = vpop.f32.mrb[46].mxu0  ;;  %v4720_v61 = vpop.f32.mrb[38].mxu1 }
 0x931   :  { %5188 = vst [vmem:[#allocation9_spill] sm:$0xff] %v4718_v47  ;;  %5189 = vst [vmem:[#allocation10_spill] sm:$0xff] %v4720_v61  ;;  %v4725_v60 = vpop.f32.mrb[47].mxu0  ;;  %v4727_v48 = vpop.f32.mrb[39].mxu1  ;;  %v1457_v61 = vadd.f32 %v4632_v13, %v4736_v21  ;;  %v4751_v13 = vrot.slane %v1230_v32, %v4003_v24  ;;  %v5193_v32 = vmov 0  }
 0x932   :  { %5190 = vst [vmem:[#allocation11_spill] sm:$0xff] %v4725_v60  ;;  %5191 = vst [vmem:[#allocation12_spill] sm:$0xff] %v4727_v48 }
 0x936   :  { %v1798_v23 = vpop.f32.mrb[48].mxu0  ;;  %v1839_v27 = vpop.f32.mrb[40].mxu1 }
 0x937   :  { %v1799_v58 = vadd.f32 %v1798_v23, %v4733_v50  ;;  %v1800_v2 = vpop.f32.mrb[49].mxu0  ;;  %v3206_v1 = vpop.f32.mrb[41].mxu1 }
 0x938   :  { %v1801_v34 = vadd.f32 %v1800_v2, %v4739_v22  ;;  %v1802_v60 = vpop.f32.mrb[50].mxu0  ;;  %v1842_v47 = vpop.f32.mrb[42].mxu1  ;;  %v4748_v1 = vrot.slane %v1231_v20, %v4003_v24 }
 0x939   :  { %v1845_v43 = vadd.f32 %v1799_v58, %v1455_v37  ;;  %v1803_v44 = vpop.f32.mrb[51].mxu0  ;;  %v3207_v36 = vpop.f32.mrb[43].mxu1  ;;  %v1459_v58 = vadd.f32 %v4636_v15, %v4730_v16 }
 0x93a   :  { %v1852_v10 = vadd.f32 %v1801_v34, %v1457_v61  ;;  %v1840_v47 = vadd.f32 %v1839_v27, %v4748_v1 }
 0x93b   :  { %v2814_v48 = vmul.f32 -1.442695, %v1845_v43  ;;  %v1528_v43 = vadd.f32 %v4634_v14, %v4751_v13  ;;  %v5192_v14 = vmov 0.0  }
 0x93c   :  { %v2815_v63 = vmul.f32 -1.442695, %v1852_v10 }
 0x93d   :  { %3557 = vpow2.f32 %v2814_v48 }
 0x93e   :  { %3559 = vpow2.f32 %v2815_v63 }
 0x947   :  { %v3558_v46 = vpop.eup %3557 }
 0x948   :  { %v1849_v31 = vadd.f32 1.0, %v3558_v46  ;;  %v3560_v23 = vpop.eup %3559 }
 0x949   :  { %v1856_v2 = vadd.f32 1.0, %v3560_v23  ;;  %v1461_v23 = vadd.f32 %v4640_v29, %v4736_v21 }
 0x94a   :  { %3561 = vrcp.f32 %v1849_v31 }
 0x94b   :  { %3563 = vrcp.f32 %v1856_v2 }
 0x954   :  { %v3562_v44 = vpop.eup %3561 }
 0x955   :  { %v1859_v10 = vmul.f32 %v3562_v44, %v1840_v47  ;;  %v3564_v61 = vpop.eup %3563 }
 0x956   :  { %v1862_v31 = vsub.f32 1.0, %v3564_v61  ;;  %v1864_v48 = vmul.f32 %v3564_v61, %v4665_v39 }
 0x957   :  { %v1860_v63 = vadd.f32 %v1859_v10, %v1528_v43 }
 0x959   :  { %3565 = vtanh.f32 %v1860_v63 }
 0x963   :  { %v3566_v60 = vpop.eup %3565 }
 0x964   :  { %v1863_v20 = vmul.f32 %v3566_v60, %v1862_v31 }
 0x966   :  { %v4757_v37 = vadd.f32 %v1864_v48, %v1863_v20 }
 0x968   :  { %v1869_v24 = vpack.c.bf16 %v4757_v37, %v4757_v37 }
 0x96a   :  { %1903 = vmatmul.mubr.bf16.vlgmr.msra.gmra.mrb[52].mxu0 %v1869_v24  ;;  %3225 = vmatmul.mubr.bf16.vlgmr.msra.gmra.mrb[44].mxu1 %v1869_v24 }
 0x96b   :  { %1977 = vmatpush1.bf16.msra.mxu0 %v4474_v51  ;;  %3229 = vmatpush3.bf16.msra.mxu1 %v4551_v40 }
 0x96c   :  { %1978 = vmatprep.subr.bf16.mxu0 %v4481_v26  ;;  %3230 = vmatprep.subr.bf16.mxu1 %v5192_v14 }
 0x96d   :  { %2008 = vmatprep.mubr.bf16.mxu0 %v5193_v32  ;;  %3244 = vmatprep.mubr.msk.bf16.mxu1 %vm3687_vm0, %v5192_v14 }
 0x96f   :  { %1979 = vmatpush1.bf16.msra.mxu0 %v4486_v5  ;;  %3231 = vmatpush3.bf16.msra.mxu1 %v4569_v56 }
 0x970   :  { %1980 = vmatprep.subr.bf16.mxu0 %v4493_v49  ;;  %3232 = vmatprep.subr.bf16.mxu1 %v5192_v14 }
 0x973   :  { %1981 = vmatpush1.bf16.msra.mxu0 %v4498_v59  ;;  %3233 = vmatpush3.bf16.msra.mxu1 %v4580_v0 }
 0x974   :  { %1982 = vmatprep.subr.bf16.mxu0 %v4505_v33  ;;  %3234 = vmatprep.subr.bf16.mxu1 %v5192_v14 }
 0x977   :  { %1983 = vmatpush1.bf16.msra.mxu0 %v4510_v53  ;;  %3235 = vmatpush3.bf16.msra.mxu1 %v4586_v6 }
 0x978   :  { %1984 = vmatprep.subr.bf16.mxu0 %v4517_v4  ;;  %3236 = vmatprep.subr.bf16.mxu1 %v5192_v14 }
 0x97b   :  { %1985 = vmatpush1.bf16.msra.mxu0 %v4522_v17  ;;  %3237 = vmatpush3.bf16.msra.mxu1 %v4593_v7 }
 0x97c   :  { %1986 = vmatprep.subr.bf16.mxu0 %v4529_v52  ;;  %3238 = vmatprep.subr.bf16.mxu1 %v5192_v14 }
 0x97f   :  { %1987 = vmatpush1.bf16.msra.mxu0 %v4534_v41  ;;  %3239 = vmatpush3.bf16.msra.mxu1 %v4600_v8 }
 0x980   :  { %1988 = vmatprep.subr.bf16.mxu0 %v4541_v54  ;;  %3240 = vmatprep.subr.bf16.mxu1 %v5192_v14 }
 0x983   :  { %1989 = vmatpush1.bf16.msra.mxu0 %v4546_v55  ;;  %3241 = vmatpush3.bf16.msra.mxu1 %v4607_v9 }
 0x984   :  { %1990 = vmatprep.subr.bf16.mxu0 %v4556_v3  ;;  %3242 = vmatprep.subr.bf16.mxu1 %v5192_v14 }
 0x987   :  { %1991 = vmatpush1.bf16.msra.mxu0 %v4564_v35  ;;  %3243 = vmatpush3.bf16.msra.mxu1 %v4614_v11 }
 0x988   :  { %2082 = vmatprep.subr.bf16.mxu0 %v4469_v57  ;;  %3248 = vmatprep.subr.bf16.mxu1 %v5192_v14 }
 0xa3d   :  { %v1904_v39 = vpop.f32.mrb[52].mxu0  ;;  %v1945_v27 = vpop.f32.mrb[44].mxu1 }
 0xa3e   :  { %v1905_v34 = vadd.f32 %v1904_v39, %v4733_v50  ;;  %v1906_v36 = vpop.f32.mrb[53].mxu0  ;;  %v3226_v46 = vpop.f32.mrb[45].mxu1  ;;  %v1946_v39 = vadd.f32 %v1945_v27, %v4748_v1  ;;  %v1465_v27 = vadd.f32 %v4644_v42, %v4730_v16 }
 0xa3f   :  { %v1907_v2 = vadd.f32 %v1906_v36, %v4739_v22  ;;  %v1908_v47 = vpop.f32.mrb[54].mxu0  ;;  %v1948_v44 = vpop.f32.mrb[46].mxu1  ;;  %v1531_v36 = vadd.f32 %v4642_v12, %v4751_v13 }
 0xa40   :  { %v1951_v43 = vadd.f32 %v1905_v34, %v1459_v58  ;;  %v1909_v10 = vpop.f32.mrb[55].mxu0  ;;  %v3227_v63 = vpop.f32.mrb[47].mxu1 }
 0xa41   :  { %v1958_v61 = vadd.f32 %v1907_v2, %v1461_v23 }
 0xa42   :  { %v2816_v31 = vmul.f32 -1.442695, %v1951_v43 }
 0xa43   :  { %v2817_v60 = vmul.f32 -1.442695, %v1958_v61 }
 0xa44   :  { %3567 = vpow2.f32 %v2816_v31 }
 0xa45   :  { %3569 = vpow2.f32 %v2817_v60  ;;  %v1467_v60 = vadd.f32 %v4646_v18, %v4736_v21 }
 0xa4e   :  { %v3568_v15 = vpop.eup %3567 }
 0xa4f   :  { %v1955_v20 = vadd.f32 1.0, %v3568_v15  ;;  %v3570_v48 = vpop.eup %3569 }
 0xa50   :  { %v1962_v24 = vadd.f32 1.0, %v3570_v48 }
 0xa51   :  { %3571 = vrcp.f32 %v1955_v20 }
 0xa52   :  { %3573 = vrcp.f32 %v1962_v24 }
 0xa5b   :  { %v3572_v29 = vpop.eup %3571 }
 0xa5c   :  { %v1965_v46 = vmul.f32 %v3572_v29, %v1946_v39  ;;  %v3574_v34 = vpop.eup %3573 }
 0xa5d   :  { %v1968_v23 = vsub.f32 1.0, %v3574_v34  ;;  %v1970_v44 = vmul.f32 %v3574_v34, %v4757_v37 }
 0xa5e   :  { %v1966_v58 = vadd.f32 %v1965_v46, %v1531_v36 }
 0xa60   :  { %3575 = vtanh.f32 %v1966_v58 }
 0xa6a   :  { %v3576_v2 = vpop.eup %3575 }
 0xa6b   :  { %v1969_v47 = vmul.f32 %v3576_v2, %v1968_v23 }
 0xa6d   :  { %v4806_v43 = vadd.f32 %v1970_v44, %v1969_v47  ;;  %v1536_v44 = vadd.f32 %v4630_v45, %v4751_v13 }
 0xa6f   :  { %v1975_v10 = vpack.c.bf16 %v4806_v43, %v4806_v43 }
 0xa71   :  { %2009 = vmatmul.mubr.bf16.vlgmr.msra.gmra.mrb[56].mxu0 %v1975_v10  ;;  %3245 = vmatmul.mubr.bf16.vlgmr.msra.gmra.mrb[48].mxu1 %v1975_v10 }
 0xa72   :  { %2083 = vmatpush1.bf16.msra.mxu0 %v4474_v51  ;;  %3249 = vmatpush3.bf16.msra.mxu1 %v4551_v40 }
 0xa73   :  { %2084 = vmatprep.subr.bf16.mxu0 %v4481_v26  ;;  %3250 = vmatprep.subr.bf16.mxu1 %v5192_v14 }
 0xa74   :  { %2114 = vmatprep.mubr.bf16.mxu0 %v5193_v32  ;;  %3264 = vmatprep.mubr.msk.bf16.mxu1 %vm3687_vm0, %v5192_v14 }
 0xa76   :  { %2085 = vmatpush1.bf16.msra.mxu0 %v4486_v5  ;;  %3251 = vmatpush3.bf16.msra.mxu1 %v4569_v56 }
 0xa77   :  { %2086 = vmatprep.subr.bf16.mxu0 %v4493_v49  ;;  %3252 = vmatprep.subr.bf16.mxu1 %v5192_v14 }
 0xa7a   :  { %2087 = vmatpush1.bf16.msra.mxu0 %v4498_v59  ;;  %3253 = vmatpush3.bf16.msra.mxu1 %v4580_v0 }
 0xa7b   :  { %2088 = vmatprep.subr.bf16.mxu0 %v4505_v33  ;;  %3254 = vmatprep.subr.bf16.mxu1 %v5192_v14 }
 0xa7e   :  { %2089 = vmatpush1.bf16.msra.mxu0 %v4510_v53  ;;  %3255 = vmatpush3.bf16.msra.mxu1 %v4586_v6 }
 0xa7f   :  { %2090 = vmatprep.subr.bf16.mxu0 %v4517_v4  ;;  %3256 = vmatprep.subr.bf16.mxu1 %v5192_v14 }
 0xa82   :  { %2091 = vmatpush1.bf16.msra.mxu0 %v4522_v17  ;;  %3257 = vmatpush3.bf16.msra.mxu1 %v4593_v7 }
 0xa83   :  { %2092 = vmatprep.subr.bf16.mxu0 %v4529_v52  ;;  %3258 = vmatprep.subr.bf16.mxu1 %v5192_v14 }
 0xa86   :  { %2093 = vmatpush1.bf16.msra.mxu0 %v4534_v41  ;;  %3259 = vmatpush3.bf16.msra.mxu1 %v4600_v8 }
 0xa87   :  { %2094 = vmatprep.subr.bf16.mxu0 %v4541_v54  ;;  %3260 = vmatprep.subr.bf16.mxu1 %v5192_v14 }
 0xa8a   :  { %2095 = vmatpush1.bf16.msra.mxu0 %v4546_v55  ;;  %3261 = vmatpush3.bf16.msra.mxu1 %v4607_v9 }
 0xa8b   :  { %2096 = vmatprep.subr.bf16.mxu0 %v4556_v3  ;;  %3262 = vmatprep.subr.bf16.mxu1 %v5192_v14 }
 0xa8e   :  { %2097 = vmatpush1.bf16.msra.mxu0 %v4564_v35  ;;  %3263 = vmatpush3.bf16.msra.mxu1 %v4614_v11 }
 0xa8f   :  { %2188 = vmatprep.subr.bf16.mxu0 %v4469_v57  ;;  %3268 = vmatprep.subr.bf16.mxu1 %v5192_v14 }
 0xb44   :  { %v2010_v12 = vpop.f32.mrb[56].mxu0  ;;  %v2051_v37 = vpop.f32.mrb[48].mxu1 }
 0xb45   :  { %v2011_v63 = vadd.f32 %v2010_v12, %v4733_v50  ;;  %v2012_v61 = vpop.f32.mrb[57].mxu0  ;;  %v3246_v31 = vpop.f32.mrb[49].mxu1  ;;  %v2052_v47 = vadd.f32 %v2051_v37, %v4748_v1  ;;  %v1469_v37 = vadd.f32 %v4648_v19, %v4730_v16 }
 0xb46   :  { %v2013_v15 = vadd.f32 %v2012_v61, %v4739_v22  ;;  %v2014_v20 = vpop.f32.mrb[58].mxu0  ;;  %v2054_v48 = vpop.f32.mrb[50].mxu1 }
 0xb47   :  { %v2057_v24 = vadd.f32 %v2011_v63, %v1465_v27  ;;  %v2015_v39 = vpop.f32.mrb[59].mxu0  ;;  %v3247_v29 = vpop.f32.mrb[51].mxu1 }
 0xb48   :  { %v2064_v36 = vadd.f32 %v2013_v15, %v1467_v60  ;;  %v1471_v29 = vadd.f32 %v4650_v38, %v4736_v21 }
 0xb49   :  { %v2818_v46 = vmul.f32 -1.442695, %v2057_v24 }
 0xb4a   :  { %v2819_v58 = vmul.f32 -1.442695, %v2064_v36 }
 0xb4b   :  { %3577 = vpow2.f32 %v2818_v46 }
 0xb4c   :  { %3579 = vpow2.f32 %v2819_v58 }
 0xb55   :  { %v3578_v42 = vpop.eup %3577 }
 0xb56   :  { %v2061_v34 = vadd.f32 1.0, %v3578_v42  ;;  %v3580_v23 = vpop.eup %3579 }
 0xb57   :  { %v2068_v2 = vadd.f32 1.0, %v3580_v23 }
 0xb58   :  { %3581 = vrcp.f32 %v2061_v34 }
 0xb59   :  { %3583 = vrcp.f32 %v2068_v2 }
 0xb62   :  { %v3582_v18 = vpop.eup %3581 }
 0xb63   :  { %v2071_v10 = vmul.f32 %v3582_v18, %v2052_v47  ;;  %v3584_v27 = vpop.eup %3583 }
 0xb64   :  { %v2074_v63 = vsub.f32 1.0, %v3584_v27  ;;  %v2076_v60 = vmul.f32 %v3584_v27, %v4806_v43 }
 0xb65   :  { %v2072_v12 = vadd.f32 %v2071_v10, %v1536_v44 }
 0xb67   :  { %3585 = vtanh.f32 %v2072_v12 }
 0xb71   :  { %v3586_v61 = vpop.eup %3585 }
 0xb72   :  { %v2075_v31 = vmul.f32 %v3586_v61, %v2074_v63  ;;  %v1539_v63 = vadd.f32 %v4638_v28, %v4751_v13 }
 0xb74   :  { %v4855_v15 = vadd.f32 %v2076_v60, %v2075_v31 }
 0xb76   :  { %v2081_v20 = vpack.c.bf16 %v4855_v15, %v4855_v15 }
 0xb78   :  { %2115 = vmatmul.mubr.bf16.vlgmr.msra.gmra.mrb[60].mxu0 %v2081_v20  ;;  %3265 = vmatmul.mubr.bf16.vlgmr.msra.gmra.mrb[52].mxu1 %v2081_v20 }
 0xb79   :  { %2189 = vmatpush1.bf16.msra.mxu0 %v4474_v51  ;;  %3269 = vmatpush3.bf16.msra.mxu1 %v4551_v40 }
 0xb7a   :  { %2190 = vmatprep.subr.bf16.mxu0 %v4481_v26  ;;  %3270 = vmatprep.subr.bf16.mxu1 %v5192_v14 }
 0xb7b   :  { %2220 = vmatprep.mubr.bf16.mxu0 %v5193_v32  ;;  %3284 = vmatprep.mubr.msk.bf16.mxu1 %vm3687_vm0, %v5192_v14 }
 0xb7d   :  { %2191 = vmatpush1.bf16.msra.mxu0 %v4486_v5  ;;  %3271 = vmatpush3.bf16.msra.mxu1 %v4569_v56 }
 0xb7e   :  { %2192 = vmatprep.subr.bf16.mxu0 %v4493_v49  ;;  %3272 = vmatprep.subr.bf16.mxu1 %v5192_v14 }
 0xb81   :  { %2193 = vmatpush1.bf16.msra.mxu0 %v4498_v59  ;;  %3273 = vmatpush3.bf16.msra.mxu1 %v4580_v0 }
 0xb82   :  { %2194 = vmatprep.subr.bf16.mxu0 %v4505_v33  ;;  %3274 = vmatprep.subr.bf16.mxu1 %v5192_v14 }
 0xb85   :  { %2195 = vmatpush1.bf16.msra.mxu0 %v4510_v53  ;;  %3275 = vmatpush3.bf16.msra.mxu1 %v4586_v6 }
 0xb86   :  { %2196 = vmatprep.subr.bf16.mxu0 %v4517_v4  ;;  %3276 = vmatprep.subr.bf16.mxu1 %v5192_v14 }
 0xb89   :  { %2197 = vmatpush1.bf16.msra.mxu0 %v4522_v17  ;;  %3277 = vmatpush3.bf16.msra.mxu1 %v4593_v7 }
 0xb8a   :  { %2198 = vmatprep.subr.bf16.mxu0 %v4529_v52  ;;  %3278 = vmatprep.subr.bf16.mxu1 %v5192_v14 }
 0xb8d   :  { %2199 = vmatpush1.bf16.msra.mxu0 %v4534_v41  ;;  %3279 = vmatpush3.bf16.msra.mxu1 %v4600_v8 }
 0xb8e   :  { %2200 = vmatprep.subr.bf16.mxu0 %v4541_v54  ;;  %3280 = vmatprep.subr.bf16.mxu1 %v5192_v14 }
 0xb91   :  { %2201 = vmatpush1.bf16.msra.mxu0 %v4546_v55  ;;  %3281 = vmatpush3.bf16.msra.mxu1 %v4607_v9 }
 0xb92   :  { %2202 = vmatprep.subr.bf16.mxu0 %v4556_v3  ;;  %3282 = vmatprep.subr.bf16.mxu1 %v5192_v14 }
 0xb95   :  { %2203 = vmatpush1.bf16.msra.mxu0 %v4564_v35  ;;  %3283 = vmatpush3.bf16.msra.mxu1 %v4614_v11 }
 0xb96   :  { %2294 = vmatprep.subr.bf16.mxu0 %v4469_v57  ;;  %3288 = vmatprep.subr.bf16.mxu1 %v5192_v14 }
 0xc4b   :  { %v2116_v45 = vpop.f32.mrb[60].mxu0  ;;  %v2157_v43 = vpop.f32.mrb[52].mxu1 }
 0xc4c   :  { %v2117_v48 = vadd.f32 %v2116_v45, %v4733_v50  ;;  %v2118_v24 = vpop.f32.mrb[61].mxu0  ;;  %v3266_v39 = vpop.f32.mrb[53].mxu1  ;;  %v2158_v27 = vadd.f32 %v2157_v43, %v4748_v1 }
 0xc4d   :  { %v2119_v36 = vadd.f32 %v2118_v24, %v4739_v22  ;;  %v2120_v46 = vpop.f32.mrb[62].mxu0  ;;  %v2160_v58 = vpop.f32.mrb[54].mxu1 }
 0xc4e   :  { %v2163_v42 = vadd.f32 %v2117_v48, %v1469_v37  ;;  %v2121_v34 = vpop.f32.mrb[63].mxu0  ;;  %v3267_v23 = vpop.f32.mrb[55].mxu1 }
 0xc4f   :  { %v2170_v2 = vadd.f32 %v2119_v36, %v1471_v29 }
 0xc50   :  { %v2820_v47 = vmul.f32 -1.442695, %v2163_v42 }
 0xc51   :  { %v2821_v18 = vmul.f32 -1.442695, %v2170_v2 }
 0xc52   :  { %3587 = vpow2.f32 %v2820_v47 }
 0xc53   :  { %3589 = vpow2.f32 %v2821_v18 }
 0xc5c   :  { %v3588_v19 = vpop.eup %3587 }
 0xc5d   :  { %v2167_v44 = vadd.f32 1.0, %v3588_v19  ;;  %v3590_v10 = vpop.eup %3589 }
 0xc5e   :  { %v2174_v12 = vadd.f32 1.0, %v3590_v10 }
 0xc5f   :  { %3591 = vrcp.f32 %v2167_v44  ;;  %v1544_v44 = vadd.f32 %v4713_v62, %v4751_v13  ;;  %v4960_v62 = vld [vmem:[%s5173_s6] ss:$12 sps:$4 sm:$0xff]  }
 0xc60   :  { %3593 = vrcp.f32 %v2174_v12 }
 0xc69   :  { %v3592_v38 = vpop.eup %3591 }
 0xc6a   :  { %v2177_v61 = vmul.f32 %v3592_v38, %v2158_v27  ;;  %v3594_v60 = vpop.eup %3593 }
 0xc6b   :  { %v2180_v20 = vsub.f32 1.0, %v3594_v60  ;;  %v2182_v48 = vmul.f32 %v3594_v60, %v4855_v15  ;;  %v1477_v15 = vadd.f32 %v4655_v30, %v4736_v21 }
 0xc6c   :  { %v2178_v31 = vadd.f32 %v2177_v61, %v1539_v63 }
 0xc6e   :  { %3595 = vtanh.f32 %v2178_v31 }
 0xc78   :  { %v3596_v45 = vpop.eup %3595 }
 0xc79   :  { %v2181_v37 = vmul.f32 %v3596_v45, %v2180_v20  ;;  %v4967_v45 = vld [vmem:[%s5173_s6 + $0x1c] ss:$12 sps:$4 sm:$0xff]  }
 0xc7b   :  { %v4904_v24 = vadd.f32 %v2182_v48, %v2181_v37  ;;  %v4977_v37 = vld [vmem:[%s5173_s6 + $0x18] ss:$12 sps:$4 sm:$0xff]   ;;  %v4991_v48 = vld [vmem:[%s5173_s6 + $0x30] ss:$12 sps:$4 sm:$0xff]  }
 0xc7d   :  { %v2187_v39 = vpack.c.bf16 %v4904_v24, %v4904_v24 }
 0xc7f   :  { %2221 = vmatmul.mubr.bf16.vlgmr.msra.gmra.mrb[64].mxu0 %v2187_v39  ;;  %3285 = vmatmul.mubr.bf16.vlgmr.msra.gmra.mrb[56].mxu1 %v2187_v39 }
 0xc80   :  { %2295 = vmatpush1.bf16.msra.mxu0 %v4474_v51  ;;  %3289 = vmatpush3.bf16.msra.mxu1 %v4551_v40 }
 0xc81   :  { %2296 = vmatprep.subr.bf16.mxu0 %v4481_v26  ;;  %3290 = vmatprep.subr.bf16.mxu1 %v5192_v14 }
 0xc82   :  { %2326 = vmatprep.mubr.bf16.mxu0 %v5193_v32  ;;  %3304 = vmatprep.mubr.msk.bf16.mxu1 %vm3687_vm0, %v5192_v14 }
 0xc84   :  { %2297 = vmatpush1.bf16.msra.mxu0 %v4486_v5  ;;  %3291 = vmatpush3.bf16.msra.mxu1 %v4569_v56  ;;  %v1475_v5 = vadd.f32 %v4653_v25, %v4730_v16 }
 0xc85   :  { %2298 = vmatprep.subr.bf16.mxu0 %v4493_v49  ;;  %3292 = vmatprep.subr.bf16.mxu1 %v5192_v14 }
 0xc88   :  { %2299 = vmatpush1.bf16.msra.mxu0 %v4498_v59  ;;  %3293 = vmatpush3.bf16.msra.mxu1 %v4580_v0 }
 0xc89   :  { %2300 = vmatprep.subr.bf16.mxu0 %v4505_v33  ;;  %3294 = vmatprep.subr.bf16.mxu1 %v5192_v14 }
 0xc8c   :  { %2301 = vmatpush1.bf16.msra.mxu0 %v4510_v53  ;;  %3295 = vmatpush3.bf16.msra.mxu1 %v4586_v6 }
 0xc8d   :  { %2302 = vmatprep.subr.bf16.mxu0 %v4517_v4  ;;  %3296 = vmatprep.subr.bf16.mxu1 %v5192_v14 }
 0xc90   :  { %2303 = vmatpush1.bf16.msra.mxu0 %v4522_v17  ;;  %3297 = vmatpush3.bf16.msra.mxu1 %v4593_v7 }
 0xc91   :  { %2304 = vmatprep.subr.bf16.mxu0 %v4529_v52  ;;  %3298 = vmatprep.subr.bf16.mxu1 %v5192_v14 }
 0xc94   :  { %2305 = vmatpush1.bf16.msra.mxu0 %v4534_v41  ;;  %3299 = vmatpush3.bf16.msra.mxu1 %v4600_v8 }
 0xc95   :  { %2306 = vmatprep.subr.bf16.mxu0 %v4541_v54  ;;  %3300 = vmatprep.subr.bf16.mxu1 %v5192_v14 }
 0xc98   :  { %2307 = vmatpush1.bf16.msra.mxu0 %v4546_v55  ;;  %3301 = vmatpush3.bf16.msra.mxu1 %v4607_v9 }
 0xc99   :  { %2308 = vmatprep.subr.bf16.mxu0 %v4556_v3  ;;  %3302 = vmatprep.subr.bf16.mxu1 %v5192_v14 }
 0xc9c   :  { %2309 = vmatpush1.bf16.msra.mxu0 %v4564_v35  ;;  %3303 = vmatpush3.bf16.msra.mxu1 %v4614_v11 }
 0xc9d   :  { %2400 = vmatprep.subr.bf16.mxu0 %v4469_v57  ;;  %3308 = vmatprep.subr.bf16.mxu1 %v5192_v14 }
 0xd52   :  { %v2222_v51 = vpop.f32.mrb[64].mxu0  ;;  %v2263_v26 = vpop.f32.mrb[56].mxu1 }
 0xd53   :  { %v2223_v49 = vadd.f32 %v2222_v51, %v4733_v50  ;;  %v2224_v59 = vpop.f32.mrb[65].mxu0  ;;  %v3286_v28 = vpop.f32.mrb[57].mxu1  ;;  %v2264_v19 = vadd.f32 %v2263_v26, %v4748_v1 }
 0xd54   :  { %v2225_v43 = vadd.f32 %v2224_v59, %v4739_v22  ;;  %v2226_v29 = vpop.f32.mrb[66].mxu0  ;;  %v2266_v36 = vpop.f32.mrb[58].mxu1 }
 0xd55   :  { %v2269_v46 = vadd.f32 %v2223_v49, %v1475_v5  ;;  %v2227_v57 = vpop.f32.mrb[67].mxu0  ;;  %v3287_v58 = vpop.f32.mrb[59].mxu1 }
 0xd56   :  { %v2276_v42 = vadd.f32 %v2225_v43, %v1477_v15  ;;  %v5196_v15 = vld [vmem:[#allocation12_spill] sm:$0xff] }
 0xd57   :  { %v2822_v34 = vmul.f32 -1.442695, %v2269_v46  ;;  %v1547_v43 = vadd.f32 %v5196_v15, %v4751_v13 }
 0xd58   :  { %v2823_v23 = vmul.f32 -1.442695, %v2276_v42 }
 0xd59   :  { %3597 = vpow2.f32 %v2822_v34 }
 0xd5a   :  { %3599 = vpow2.f32 %v2823_v23 }
 0xd63   :  { %v3598_v25 = vpop.eup %3597 }
 0xd64   :  { %v2273_v2 = vadd.f32 1.0, %v3598_v25  ;;  %v3600_v47 = vpop.eup %3599 }
 0xd65   :  { %v2280_v18 = vadd.f32 1.0, %v3600_v47  ;;  %v3668_v47 = vld [vmem:[%s5173_s6 + $0x20] ss:$12 sps:$4 sm:$0xff]  }
 0xd66   :  { %3601 = vrcp.f32 %v2273_v2  ;;  %v3667_v2 = vld [vmem:[%s5173_s6 + $0x8] ss:$12 sps:$4 sm:$0xff]  }
 0xd67   :  { %3603 = vrcp.f32 %v2280_v18  ;;  %v3670_v18 = vld [vmem:[%s5173_s6 + $0x4c] ss:$12 sps:$4 sm:$0xff]  }
 0xd70   :  { %v3602_v30 = vpop.eup %3601 }
 0xd71   :  { %v2283_v10 = vmul.f32 %v3602_v30, %v2264_v19  ;;  %v3604_v27 = vpop.eup %3603  ;;  %v3671_v19 = vld [vmem:[%s5173_s6 + $0x48] ss:$12 sps:$4 sm:$0xff]   ;;  %v3672_v30 = vld [vmem:[%s5173_s6 + $0x50] ss:$12 sps:$4 sm:$0xff]  }
 0xd72   :  { %v2286_v38 = vsub.f32 1.0, %v3604_v27  ;;  %v2288_v31 = vmul.f32 %v3604_v27, %v4904_v24  ;;  %v3676_v27 = vld [vmem:[%s5173_s6 + $0x7c] ss:$12 sps:$4 sm:$0xff]  }
 0xd73   :  { %v2284_v12 = vadd.f32 %v2283_v10, %v1544_v44  ;;  %v3673_v44 = vld [vmem:[%s5173_s6 + $0x64] ss:$12 sps:$4 sm:$0xff]   ;;  %v3674_v10 = vld [vmem:[%s5173_s6 + $0x60] ss:$12 sps:$4 sm:$0xff]  }
 0xd75   :  { %3605 = vtanh.f32 %v2284_v12  ;;  %v3675_v12 = vld [vmem:[%s5173_s6 + $0x68] ss:$12 sps:$4 sm:$0xff]  }
 0xd7f   :  { %v3606_v63 = vpop.eup %3605 }
 0xd80   :  { %v2287_v61 = vmul.f32 %v3606_v63, %v2286_v38  ;;  %v3677_v38 = vld [vmem:[%s5173_s6 + $0x78] ss:$12 sps:$4 sm:$0xff]   ;;  %v3678_v63 = vld [vmem:[%s5173_s6 + $0x80] ss:$12 sps:$4 sm:$0xff]  }
 0xd82   :  { %v4953_v60 = vadd.f32 %v2288_v31, %v2287_v61  ;;  %v3679_v61 = vld [vmem:[%s5173_s6 + $0x94] ss:$12 sps:$4 sm:$0xff]   ;;  %v3680_v31 = vld [vmem:[%s5173_s6 + $0x90] ss:$12 sps:$4 sm:$0xff]  }
 0xd84   :  { %v2293_v20 = vpack.c.bf16 %v4953_v60, %v4953_v60 }
 0xd86   :  { %2327 = vmatmul.mubr.bf16.vlgmr.msra.gmra.mrb[68].mxu0 %v2293_v20  ;;  %3305 = vmatmul.mubr.bf16.vlgmr.msra.gmra.mrb[60].mxu1 %v2293_v20  ;;  %v3682_v20 = vld [vmem:[%s5173_s6 + $0xac] ss:$12 sps:$4 sm:$0xff]  }
 0xd87   :  { %2401 = vmatpush1.bf16.msra.mxu0 %v4960_v62  ;;  %3309 = vmatpush3.bf16.msra.mxu1 %v4551_v40  ;;  %v4984_v40 = vld [vmem:[%s5173_s6 + $0x34] ss:$12 sps:$4 sm:$0xff]  }
 0xd88   :  { %2402 = vmatprep.subr.bf16.mxu0 %v4967_v45  ;;  %3310 = vmatprep.subr.bf16.mxu1 %v5192_v14 }
 0xd89   :  { %2432 = vmatprep.mubr.bf16.mxu0 %v5193_v32  ;;  %3324 = vmatprep.mubr.msk.bf16.mxu1 %vm3687_vm0, %v5192_v14 }
 0xd8b   :  { %2403 = vmatpush1.bf16.msra.mxu0 %v4977_v37  ;;  %3311 = vmatpush3.bf16.msra.mxu1 %v4569_v56 }
 0xd8c   :  { %2404 = vmatprep.subr.bf16.mxu0 %v4984_v40  ;;  %3312 = vmatprep.subr.bf16.mxu1 %v5192_v14 }
 0xd8f   :  { %2405 = vmatpush1.bf16.msra.mxu0 %v4991_v48  ;;  %3313 = vmatpush3.bf16.msra.mxu1 %v4580_v0 }
 0xd90   :  { %2406 = vmatprep.subr.bf16.mxu0 %v4505_v33  ;;  %3314 = vmatprep.subr.bf16.mxu1 %v5192_v14  ;;  %v3666_v33 = vld [vmem:[%s5173_s6 + $0x4] ss:$12 sps:$4 sm:$0xff]  }
 0xd93   :  { %2407 = vmatpush1.bf16.msra.mxu0 %v4510_v53  ;;  %3315 = vmatpush3.bf16.msra.mxu1 %v4586_v6 }
 0xd94   :  { %2408 = vmatprep.subr.bf16.mxu0 %v4517_v4  ;;  %3316 = vmatprep.subr.bf16.mxu1 %v5192_v14 }
 0xd97   :  { %2409 = vmatpush1.bf16.msra.mxu0 %v4522_v17  ;;  %3317 = vmatpush3.bf16.msra.mxu1 %v4593_v7  ;;  %v5194_v17 = vld [vmem:[#allocation4_spill] sm:$0xff] }
 0xd98   :  { %2410 = vmatprep.subr.bf16.mxu0 %v4529_v52  ;;  %3318 = vmatprep.subr.bf16.mxu1 %v5192_v14  ;;  %v1479_v52 = vadd.f32 %v5194_v17, %v4730_v16 }
 0xd9b   :  { %2411 = vmatpush1.bf16.msra.mxu0 %v4534_v41  ;;  %3319 = vmatpush3.bf16.msra.mxu1 %v4600_v8 }
 0xd9c   :  { %2412 = vmatprep.subr.bf16.mxu0 %v4541_v54  ;;  %3320 = vmatprep.subr.bf16.mxu1 %v5192_v14 }
 0xd9f   :  { %2413 = vmatpush1.bf16.msra.mxu0 %v4546_v55  ;;  %3321 = vmatpush3.bf16.msra.mxu1 %v4607_v9 }
 0xda0   :  { %2414 = vmatprep.subr.bf16.mxu0 %v4556_v3  ;;  %3322 = vmatprep.subr.bf16.mxu1 %v5192_v14  ;;  %v5195_v3 = vld [vmem:[#allocation5_spill] sm:$0xff] }
 0xda3   :  { %2415 = vmatpush1.bf16.msra.mxu0 %v4564_v35  ;;  %3323 = vmatpush3.bf16.msra.mxu1 %v4614_v11  ;;  %v1481_v35 = vadd.f32 %v5195_v3, %v4736_v21 }
 0xda4   :  { %2506 = vmatprep.subr.bf16.mxu0 %v3666_v33  ;;  %3328 = vmatprep.subr.bf16.mxu1 %v5192_v14 }
 0xe59   :  { %v2328_v53 = vpop.f32.mrb[68].mxu0  ;;  %v2369_v4 = vpop.f32.mrb[60].mxu1 }
 0xe5a   :  { %v2329_v41 = vadd.f32 %v2328_v53, %v4733_v50  ;;  %v2330_v54 = vpop.f32.mrb[69].mxu0  ;;  %v3306_v55 = vpop.f32.mrb[61].mxu1  ;;  %v2370_v59 = vadd.f32 %v2369_v4, %v4748_v1 }
 0xe5b   :  { %v2331_v56 = vadd.f32 %v2330_v54, %v4739_v22  ;;  %v2332_v0 = vpop.f32.mrb[70].mxu0  ;;  %v2372_v6 = vpop.f32.mrb[62].mxu1 }
 0xe5c   :  { %v2375_v7 = vadd.f32 %v2329_v41, %v1479_v52  ;;  %v2333_v8 = vpop.f32.mrb[71].mxu0  ;;  %v3307_v9 = vpop.f32.mrb[63].mxu1  ;;  %v5198_v52 = vld [vmem:[#allocation8_spill] sm:$0xff] }
 0xe5d   :  { %v2382_v11 = vadd.f32 %v2331_v56, %v1481_v35  ;;  %v1487_v41 = vadd.f32 %v5198_v52, %v4736_v21 }
 0xe5e   :  { %v2824_v24 = vmul.f32 -1.442695, %v2375_v7 }
 0xe5f   :  { %v2825_v39 = vmul.f32 -1.442695, %v2382_v11 }
 0xe60   :  { %3607 = vpow2.f32 %v2824_v24 }
 0xe61   :  { %3609 = vpow2.f32 %v2825_v39 }
 0xe6a   :  { %v3608_v51 = vpop.eup %3607 }
 0xe6b   :  { %v2379_v26 = vadd.f32 1.0, %v3608_v51  ;;  %v3610_v5 = vpop.eup %3609 }
 0xe6c   :  { %v2386_v49 = vadd.f32 1.0, %v3610_v5  ;;  %v5199_v5 = vld [vmem:[#allocation7_spill] sm:$0xff] }
 0xe6d   :  { %3611 = vrcp.f32 %v2379_v26 }
 0xe6e   :  { %3613 = vrcp.f32 %v2386_v49  ;;  %v1552_v49 = vadd.f32 %v5199_v5, %v4751_v13 }
 0xe77   :  { %v3612_v28 = vpop.eup %3611 }
 0xe78   :  { %v2389_v29 = vmul.f32 %v3612_v28, %v2370_v59  ;;  %v3614_v46 = vpop.eup %3613 }
 0xe79   :  { %v2392_v57 = vsub.f32 1.0, %v3614_v46  ;;  %v2394_v34 = vmul.f32 %v3614_v46, %v4953_v60  ;;  %v3681_v60 = vld [vmem:[%s5173_s6 + $0x98] ss:$12 sps:$4 sm:$0xff]  }
 0xe7a   :  { %v2390_v36 = vadd.f32 %v2389_v29, %v1547_v43 }
 0xe7c   :  { %3615 = vtanh.f32 %v2390_v36 }
 0xe86   :  { %v3616_v58 = vpop.eup %3615 }
 0xe87   :  { %v2393_v42 = vmul.f32 %v3616_v58, %v2392_v57 }
 0xe89   :  { %v5029_v23 = vadd.f32 %v2394_v34, %v2393_v42  ;;  %v3469_v42 = vld [vmem:[%s5176_s10] sm:$0xff]   ;;  %v3470_v34 = vld [vmem:[%s5176_s10 + $0x8] sm:$0xff]  }
 0xe8b   :  { %v2399_v25 = vpack.c.bf16 %v5029_v23, %v5029_v23 }
 0xe8d   :  { %2433 = vmatmul.mubr.bf16.vlgmr.msra.gmra.mrb[72].mxu0 %v2399_v25  ;;  %3325 = vmatmul.mubr.bf16.vlgmr.msra.gmra.mrb[64].mxu1 %v2399_v25  ;;  %v3472_v25 = vld [vmem:[%s5176_s10 + $0x18] sm:$0xff]  }
 0xe8e   :  { %2507 = vmatpush1.bf16.msra.mxu0 %v4960_v62  ;;  %3329 = vmatpush3.bf16.msra.mxu1 %v3667_v2  ;;  %v3683_v62 = vld [vmem:[%s5173_s6 + $0xa8] ss:$12 sps:$4 sm:$0xff]   ;;  %v3473_v2 = vld [vmem:[%s5176_s10 + $0x20] sm:$0xff]  }
 0xe8f   :  { %2508 = vmatprep.subr.bf16.mxu0 %v4967_v45  ;;  %3330 = vmatprep.subr.bf16.mxu1 %v5192_v14  ;;  %v3684_v45 = vld [vmem:[%s5173_s6 + $0xb0] ss:$12 sps:$4 sm:$0xff]  }
 0xe90   :  { %2538 = vmatprep.mubr.bf16.mxu0 %v5193_v32  ;;  %3344 = vmatprep.mubr.msk.bf16.mxu1 %vm3687_vm0, %v5192_v14  ;;  %v3669_v32 = vld [vmem:[%s5173_s6 + $0x38] ss:$12 sps:$4 sm:$0xff]  }
 0xe92   :  { %2509 = vmatpush1.bf16.msra.mxu0 %v4977_v37  ;;  %3331 = vmatpush3.bf16.msra.mxu1 %v3668_v47  ;;  %v3474_v47 = vld [vmem:[%s5176_s10 + $0x28] sm:$0xff]  }
 0xe93   :  { %2510 = vmatprep.subr.bf16.mxu0 %v4984_v40  ;;  %3332 = vmatprep.subr.bf16.mxu1 %v5192_v14 }
 0xe96   :  { %2511 = vmatpush1.bf16.msra.mxu0 %v4991_v48  ;;  %3333 = vmatpush3.bf16.msra.mxu1 %v3669_v32  ;;  %v5197_v48 = vld [vmem:[#allocation6_spill] sm:$0xff] }
 0xe97   :  { %2512 = vmatprep.subr.bf16.mxu0 %v3670_v18  ;;  %3334 = vmatprep.subr.bf16.mxu1 %v5192_v14  ;;  %v1485_v33 = vadd.f32 %v5197_v48, %v4730_v16  ;;  %v3475_v32 = vld [vmem:[%s5176_s10 + $0x30] sm:$0xff]   ;;  %v3476_v18 = vld [vmem:[%s5176_s10 + $0x38] sm:$0xff]  }
 0xe9a   :  { %2513 = vmatpush1.bf16.msra.mxu0 %v3671_v19  ;;  %3335 = vmatpush3.bf16.msra.mxu1 %v3672_v30 }
 0xe9b   :  { %2514 = vmatprep.subr.bf16.mxu0 %v3673_v44  ;;  %3336 = vmatprep.subr.bf16.mxu1 %v5192_v14  ;;  %v5200_v44 = vld [vmem:[#allocation9_spill] sm:$0xff] }
 0xe9e   :  { %2515 = vmatpush1.bf16.msra.mxu0 %v3674_v10  ;;  %3337 = vmatpush3.bf16.msra.mxu1 %v3675_v12  ;;  %v1489_v10 = vadd.f32 %v5200_v44, %v4730_v16 }
 0xe9f   :  { %2516 = vmatprep.subr.bf16.mxu0 %v3676_v27  ;;  %3338 = vmatprep.subr.bf16.mxu1 %v5192_v14 }
 0xea2   :  { %2517 = vmatpush1.bf16.msra.mxu0 %v3677_v38  ;;  %3339 = vmatpush3.bf16.msra.mxu1 %v3678_v63  ;;  %v5201_v63 = vld [vmem:[#allocation11_spill] sm:$0xff] }
 0xea3   :  { %2518 = vmatprep.subr.bf16.mxu0 %v3679_v61  ;;  %3340 = vmatprep.subr.bf16.mxu1 %v5192_v14  ;;  %v1491_v61 = vadd.f32 %v5201_v63, %v4736_v21 }
 0xea6   :  { %2519 = vmatpush1.bf16.msra.mxu0 %v3680_v31  ;;  %3341 = vmatpush3.bf16.msra.mxu1 %v3681_v60 }
 0xea7   :  { %2520 = vmatprep.subr.bf16.mxu0 %v3682_v20  ;;  %3342 = vmatprep.subr.bf16.mxu1 %v5192_v14 }
 0xeaa   :  { %2521 = vmatpush1.bf16.msra.mxu0 %v3683_v62  ;;  %3343 = vmatpush3.bf16.msra.mxu1 %v3684_v45 }
 0xeab   :  { %3348 = vmatprep.subr.bf16.mxu0 %v5192_v14 }
 0xf60   :  { %v2434_v37 = vpop.f32.mrb[72].mxu0  ;;  %v2475_v40 = vpop.f32.mrb[64].mxu1 }
 0xf61   :  { %v2435_v53 = vadd.f32 %v2434_v37, %v4733_v50  ;;  %v2436_v4 = vpop.f32.mrb[73].mxu0  ;;  %v3326_v17 = vpop.f32.mrb[65].mxu1  ;;  %v2476_v51 = vadd.f32 %v2475_v40, %v4748_v1 }
 0xf62   :  { %v2437_v54 = vadd.f32 %v2436_v4, %v4739_v22  ;;  %v2438_v55 = vpop.f32.mrb[74].mxu0  ;;  %v2478_v3 = vpop.f32.mrb[66].mxu1 }
 0xf63   :  { %v2481_v35 = vadd.f32 %v2435_v53, %v1485_v33  ;;  %v2439_v56 = vpop.f32.mrb[75].mxu0  ;;  %v3327_v0 = vpop.f32.mrb[67].mxu1 }
 0xf64   :  { %v2488_v6 = vadd.f32 %v2437_v54, %v1487_v41 }
 0xf65   :  { %v2826_v7 = vmul.f32 -1.442695, %v2481_v35 }
 0xf66   :  { %v2827_v8 = vmul.f32 -1.442695, %v2488_v6 }
 0xf67   :  { %3617 = vpow2.f32 %v2826_v7 }
 0xf68   :  { %3619 = vpow2.f32 %v2827_v8 }
 0xf71   :  { %v3618_v9 = vpop.eup %3617 }
 0xf72   :  { %v2485_v11 = vadd.f32 1.0, %v3618_v9  ;;  %v3620_v24 = vpop.eup %3619 }
 0xf73   :  { %v2492_v39 = vadd.f32 1.0, %v3620_v24 }
 0xf74   :  { %3621 = vrcp.f32 %v2485_v11 }
 0xf75   :  { %3623 = vrcp.f32 %v2492_v39 }
 0xf7e   :  { %v3622_v26 = vpop.eup %3621 }
 0xf7f   :  { %v2495_v59 = vmul.f32 %v3622_v26, %v2476_v51  ;;  %v3624_v15 = vpop.eup %3623 }
 0xf80   :  { %v2498_v43 = vsub.f32 1.0, %v3624_v15  ;;  %v2500_v46 = vmul.f32 %v3624_v15, %v5029_v23  ;;  %v3471_v23 = vld [vmem:[%s5176_s10 + $0x10] sm:$0xff]  }
 0xf81   :  { %v2496_v28 = vadd.f32 %v2495_v59, %v1552_v49 }
 0xf83   :  { %3625 = vtanh.f32 %v2496_v28 }
 0xf8d   :  { %v3626_v29 = vpop.eup %3625 }
 0xf8e   :  { %v2499_v36 = vmul.f32 %v3626_v29, %v2498_v43 }
 0xf90   :  { %v5113_v57 = vadd.f32 %v2500_v46, %v2499_v36 }
 0xf92   :  { %v2505_v58 = vpack.c.bf16 %v5113_v57, %v5113_v57 }
 0xf94   :  { %2539 = vmatmul.mubr.bf16.vlgmr.msra.gmra.mrb[76].mxu0 %v2505_v58  ;;  %3345 = vmatmul.mubr.bf16.vlgmr.msra.gmra.mrb[68].mxu1 %v2505_v58 }
 0xf95   :  { %3364 = vmatprep.mubr.msk.bf16.mxu0 %vm3687_vm0, %v5192_v14  ;;  %3349 = vmatpush3.bf16.msra.mxu0 %v3469_v42 }
 0xf96   :  { %3350 = vmatprep.subr.bf16.mxu0 %v5192_v14 }
 0xf99   :  { %3351 = vmatpush3.bf16.msra.mxu0 %v3470_v34 }
 0xf9a   :  { %3352 = vmatprep.subr.bf16.mxu0 %v5192_v14 }
 0xf9d   :  { %3353 = vmatpush3.bf16.msra.mxu0 %v3471_v23 }
 0xf9e   :  { %3354 = vmatprep.subr.bf16.mxu0 %v5192_v14 }
 0xfa1   :  { %3355 = vmatpush3.bf16.msra.mxu0 %v3472_v25 }
 0xfa2   :  { %3356 = vmatprep.subr.bf16.mxu0 %v5192_v14 }
 0xfa5   :  { %3357 = vmatpush3.bf16.msra.mxu0 %v3473_v2 }
 0xfa6   :  { %3358 = vmatprep.subr.bf16.mxu0 %v5192_v14 }
 0xfa9   :  { %3359 = vmatpush3.bf16.msra.mxu0 %v3474_v47 }
 0xfaa   :  { %3360 = vmatprep.subr.bf16.mxu0 %v5192_v14 }
 0xfad   :  { %3361 = vmatpush3.bf16.msra.mxu0 %v3475_v32 }
 0xfae   :  { %3362 = vmatprep.subr.bf16.mxu0 %v5192_v14 }
 0xfb1   :  { %3363 = vmatpush3.bf16.msra.mxu0 %v3476_v18 }
0x1067   :  { %v2540_v19 = vpop.f32.mrb[76].mxu0  ;;  %v2581_v30 = vpop.f32.mrb[68].mxu1 }
0x1068   :  { %v2541_v12 = vadd.f32 %v2540_v19, %v4733_v50  ;;  %v2542_v27 = vpop.f32.mrb[77].mxu0  ;;  %v3346_v38 = vpop.f32.mrb[69].mxu1  ;;  %v2582_v4 = vadd.f32 %v2581_v30, %v4748_v1  ;;  %v2830_v1 = vld [vmem:[%s5177_s11] ss:$0 sm:$0xff] }
0x1069   :  { %v2543_v31 = vadd.f32 %v2542_v27, %v4739_v22  ;;  %v2544_v60 = vpop.f32.mrb[78].mxu0  ;;  %v2584_v20 = vpop.f32.mrb[70].mxu1  ;;  %v5202_v22 = vld [vmem:[#allocation10_spill] sm:$0xff] }
0x106a   :  { %v2587_v62 = vadd.f32 %v2541_v12, %v1489_v10  ;;  %v2545_v45 = vpop.f32.mrb[79].mxu0  ;;  %v3347_v14 = vpop.f32.mrb[71].mxu1  ;;  %v1555_v17 = vadd.f32 %v5202_v22, %v4751_v13 }
0x106b   :  { %v2594_v37 = vadd.f32 %v2543_v31, %v1491_v61 }
0x106c   :  { %v2828_v40 = vmul.f32 -1.442695, %v2587_v62 }
0x106d   :  { %v2829_v48 = vmul.f32 -1.442695, %v2594_v37 }
0x106e   :  { %3627 = vpow2.f32 %v2828_v40 }
0x106f   :  { %3629 = vpow2.f32 %v2829_v48 }
0x1078   :  { %v3628_v16 = vpop.eup %3627 }
0x1079   :  { %v2591_v33 = vadd.f32 1.0, %v3628_v16  ;;  %v3630_v50 = vpop.eup %3629 }
0x107a   :  { %v2598_v53 = vadd.f32 1.0, %v3630_v50 }
0x107b   :  { %3631 = vrcp.f32 %v2591_v33 }
0x107c   :  { %3633 = vrcp.f32 %v2598_v53 }
0x1085   :  { %v3632_v21 = vpop.eup %3631 }
0x1086   :  { %v2601_v52 = vmul.f32 %v3632_v21, %v2582_v4  ;;  %v3634_v54 = vpop.eup %3633 }
0x1087   :  { %v2604_v55 = vsub.f32 1.0, %v3634_v54  ;;  %v2606_v56 = vmul.f32 %v3634_v54, %v5113_v57 }
0x1088   :  { %v2602_v41 = vadd.f32 %v2601_v52, %v1555_v17 }
0x108a   :  { %3635 = vtanh.f32 %v2602_v41 }
0x1094   :  { %v3636_v3 = vpop.eup %3635 }
0x1095   :  { %v2605_v35 = vmul.f32 %v3636_v3, %v2604_v55 }
0x1097   :  { %v2607_v0 = vadd.f32 %v2606_v56, %v2605_v35 }
0x1099   :  { %v2608_v6 = vpack.c.bf16 %v2607_v0, %v2607_v0 }
0x109b   :  { %3365 = vmatmul.mubr.bf16.vlgmr.msra.gmra.mrb[80].mxu0 %v2608_v6 }
0x116e   :  { %v2714_v7 = vpop.f32.mrb[80].mxu0 }
0x116f   :  { %v2715_v8 = vadd.f32 %v2830_v1, %v2714_v7  ;;  %v3366_v13 = vpop.f32.mrb[81].mxu0 }
0x1170   :  { %v2717_v9 = vpop.f32.mrb[82].mxu0 }
0x1171   :  { %2720 = vst [vmem:[%s5178_s12] sm:$0xff] %v2715_v8  ;;  %v3367_v11 = vpop.f32.mrb[83].mxu0 }

</bundles_post_ra>
